<compile_context>
chip_gen: v7x
topology: tpu7x:2x2x1
jax: 0.10.0
libtpu: 0.0.40
codegen_flags: <defaults>
</compile_context>

<pallas_src>
import functools

import jax
import jax.numpy as jnp
from jax.experimental import pallas as pl
from jax.experimental.pallas import tpu as pltpu


# ---------------------------------------------------------------------------
# fused kernel
# ---------------------------------------------------------------------------
def _layernorm(x, g, b, eps=1e-5):
    # float32 elementwise math (matches torch.nn.LayerNorm: biased var, eps=1e-5)
    mu = jnp.mean(x, axis=-1, keepdims=True)
    var = jnp.mean((x - mu) ** 2, axis=-1, keepdims=True)
    return (x - mu) * jax.lax.rsqrt(var + eps) * g + b


def _fused_mapper_kernel(B, S, clip_length, num_heads,
                         # grid-invariant inputs (fetched once, stay in VMEM)
                         xclip_ref, wlin_ref, blin_ref, prefix_ref,
                         # per-layer streamed inputs
                         smallp_ref, wqkv_ref, wp_ref, w1_ref, b1_ref, w2_ref,
                         # output
                         out_ref,
                         # scratch
                         acc_ref):
    l = pl.program_id(0)
    M, D = acc_ref.shape
    H = num_heads
    hd = D // H
    scale = hd ** (-0.5)

    # ----- l == 0: build the initial (B*S, D) activation with one block store
    @pl.when(l == 0)
    def _init():
        lin = (jnp.dot(xclip_ref[...], wlin_ref[...],
                       preferred_element_type=jnp.float32)
               + blin_ref[...])                              # (B, clip*D) f32
        lin3 = lin.reshape(B, clip_length, D)                # clip tokens
        pref = jnp.broadcast_to(prefix_ref[...], (B, S - clip_length, D))
        acc_ref[...] = jnp.concatenate([lin3, pref], axis=1).reshape(M, D)

    x = acc_ref[...]                                         # (M, D) f32

    # coalesced small per-layer params: one (6, D) block
    sp = smallp_ref[...]
    ln1g, ln1b, bp = sp[0:1], sp[1:2], sp[2:3]
    ln2g, ln2b, b2 = sp[3:4], sp[4:5], sp[5:6]

    # ----- attention block: x = x + project(MHA(norm1(x))) ------------------
    h = _layernorm(x, ln1g, ln1b)
    hb = h.astype(jnp.bfloat16)
    qkv = jnp.dot(hb, wqkv_ref[...], preferred_element_type=jnp.float32)  # (M, 3D)

    # ONE layout transform: (M, 3D) -> (B, 3H, S, hd); Q/K/V are free
    # major-dim slices along axis 1 (128-aligned column blocks of the weight).
    t = jnp.transpose(qkv.reshape(B, S, 3 * H, hd), (0, 2, 1, 3))
    qh = t[:, :H].reshape(B * H, S, hd)
    kh = t[:, H:2 * H].reshape(B * H, S, hd)
    vh = t[:, 2 * H:].reshape(B * H, S, hd)

    s = jnp.einsum('bqd,bkd->bqk', qh, kh,
                   preferred_element_type=jnp.float32) * scale          # (BH,S,S)
    s = s - jnp.max(s, axis=-1, keepdims=True)
    p = jnp.exp(s)
    p = p * pl.reciprocal(jnp.sum(p, axis=-1, keepdims=True), approx=True)
    o = jnp.einsum('bqk,bkd->bqd', p, vh,
                   preferred_element_type=jnp.float32)                  # (BH,S,hd)
    attn = jnp.transpose(o.reshape(B, H, S, hd), (0, 2, 1, 3)).reshape(M, D)

    proj = (jnp.dot(attn.astype(jnp.bfloat16), wp_ref[...],
                    preferred_element_type=jnp.float32) + bp)
    x = x + proj

    # ----- MLP block: x = x + fc2(relu(fc1(norm2(x)))) -----------------------
    h2 = _layernorm(x, ln2g, ln2b)
    m = (jnp.dot(h2.astype(jnp.bfloat16), w1_ref[...],
                 preferred_element_type=jnp.float32) + b1_ref[...])
    m = jnp.maximum(m, 0.0)
    m = (jnp.dot(m.astype(jnp.bfloat16), w2_ref[...],
                 preferred_element_type=jnp.float32) + b2)
    x = x + m                                # dropout(p=0.0) == identity

    acc_ref[...] = x

    # ----- last layer: emit prefix rows directly from the live value --------
    @pl.when(l == pl.num_programs(0) - 1)
    def _write_out():
        out_ref[...] = x.reshape(B, S, D)[:, clip_length:, :]


# ---------------------------------------------------------------------------
# wrapper
# ---------------------------------------------------------------------------
def _inv_spec(shape):
    """Grid-invariant full-block spec: DMA'd once, resident across layers."""
    n = len(shape)
    return pl.BlockSpec(tuple(shape), lambda l, n=n: (0,) * n)


def _layer_spec(shape):
    """Per-layer block of an (L, ...)-stacked parameter, streamed over grid."""
    n = len(shape)
    return pl.BlockSpec((None,) + tuple(shape), lambda l, n=n: (l,) + (0,) * n)


def transformer_mapper_forward(x, params, *, clip_length, prefix_length, num_heads):
    B, dim_clip = x.shape
    D = params["prefix_const"].shape[1]
    L = params["wqkv"].shape[0]
    Hm = params["w1"].shape[2]
    S = clip_length + prefix_length
    M = B * S
    assert D % num_heads == 0

    # pre-cast clip features: half the input DMA, no in-kernel cast
    x = x.astype(jnp.bfloat16)

    kernel = functools.partial(_fused_mapper_kernel, B, S, clip_length, num_heads)

    in_specs = [
        _inv_spec((B, dim_clip)),                 # clip features (bf16)
        _inv_spec((dim_clip, clip_length * D)),   # w_lin (bf16)
        _inv_spec((1, clip_length * D)),          # b_lin
        _inv_spec((prefix_length, D)),            # prefix_const
        _layer_spec((6, D)),                      # [ln1_g, ln1_b, bp, ln2_g, ln2_b, b2]
        _layer_spec((D, 3 * D)),                  # fused wqkv (no bias)
        _layer_spec((D, D)),                      # wp (projection)
        _layer_spec((D, Hm)),                     # fc1 weight
        _layer_spec((1, Hm)),                     # fc1 bias
        _layer_spec((Hm, D)),                     # fc2 weight
    ]
    out_spec = pl.BlockSpec((B, prefix_length, D), lambda l: (0, 0, 0))

    return pl.pallas_call(
        kernel,
        grid=(L,),
        in_specs=in_specs,
        out_specs=out_spec,
        out_shape=jax.ShapeDtypeStruct((B, prefix_length, D), jnp.float32),
        scratch_shapes=[pltpu.VMEM((M, D), jnp.float32)],   # resident activation
        compiler_params=pltpu.CompilerParams(
            dimension_semantics=("arbitrary",),             # layers are sequential
            vmem_limit_bytes=16 * 1024 * 1024,              # right-sized (fits v7x)
        ),
    )(
        x, params["w_lin"], params["b_lin"], params["prefix_const"],
        params["smallp"], params["wqkv"], params["wp"],
        params["w1"], params["b1"], params["w2"],
    )


# ---------------------------------------------------------------------------
# deterministic parameter construction (shapes per TransformerMapper.__init__)
# weights bf16 (DMA/VMEM savings); biases / LN params / prefix stay f32
# ---------------------------------------------------------------------------
def init_params(key, dim_clip, dim_embedding, prefix_length, clip_length,
                num_layers, mlp_ratio=2.0):
    D = dim_embedding
    Hm = int(D * mlp_ratio)
    L = num_layers
    std = 0.02
    ks = jax.random.split(key, 8)

    def w(k, shape):
        return (std * jax.random.normal(k, shape, jnp.float32)).astype(jnp.bfloat16)

    # coalesced small per-layer params, row order:
    # 0 ln1_gamma, 1 ln1_beta, 2 proj_bias, 3 ln2_gamma, 4 ln2_beta, 5 fc2_bias
    smallp = jnp.zeros((L, 6, D), jnp.float32)
    smallp = smallp.at[:, 0, :].set(1.0)
    smallp = smallp.at[:, 3, :].set(1.0)

    return {
        "w_lin": w(ks[0], (dim_clip, clip_length * D)),
        "b_lin": jnp.zeros((1, clip_length * D), jnp.float32),
        "prefix_const": jax.random.normal(ks[1], (prefix_length, D), jnp.float32),
        "smallp": smallp,
        "wqkv": w(ks[2], (L, D, 3 * D)),   # columns [Q | K | V], head-major within
        "wp":   w(ks[3], (L, D, D)),
        "w1":   w(ks[4], (L, D, Hm)),
        "b1":   jnp.zeros((L, 1, Hm), jnp.float32),
        "w2":   w(ks[5], (L, Hm, D)),
    }


if __name__ == "__main__":
    # Small, lane-dense shapes consistent with the module (num_heads = 8).
    B = 2
    dim_clip = 128
    dim_embedding = 128      # head_dim = 16
    clip_length = 4
    prefix_length = 4        # S = 8, M = B*S = 16
    num_layers = 3           # small synthetic depth (module default is 8)
    num_heads = 8            # fixed by TransformerMapper.__init__

    key = jax.random.PRNGKey(0)
    kx, kp = jax.random.split(key)
    x = jax.random.normal(kx, (B, dim_clip), jnp.float32)
    params = init_params(kp, dim_clip, dim_embedding, prefix_length,
                         clip_length, num_layers)

    fwd = jax.jit(functools.partial(transformer_mapper_forward,
                                    clip_length=clip_length,
                                    prefix_length=prefix_length,
                                    num_heads=num_heads))
    out = fwd(x, params)
    out = jax.block_until_ready(out)
    assert out.shape == (B, prefix_length, dim_embedding)
    assert bool(jnp.all(jnp.isfinite(out)))
    print("KERNEL_OK")
</pallas_src>

<mosaic_0001>
module attributes {stable_mosaic.version = 11 : i64} {
  func.func @_fused_mapper_kernel(%arg0: i32, %arg1: memref<2x128xbf16, #tpu.memory_space<vmem>>, %arg2: memref<128x512xbf16, #tpu.memory_space<vmem>>, %arg3: memref<1x512xf32, #tpu.memory_space<vmem>>, %arg4: memref<4x128xf32, #tpu.memory_space<vmem>>, %arg5: memref<1x6x128xf32, #tpu.memory_space<vmem>>, %arg6: memref<1x128x384xbf16, #tpu.memory_space<vmem>>, %arg7: memref<1x128x128xbf16, #tpu.memory_space<vmem>>, %arg8: memref<1x128x256xbf16, #tpu.memory_space<vmem>>, %arg9: memref<1x1x256xf32, #tpu.memory_space<vmem>>, %arg10: memref<1x256x128xbf16, #tpu.memory_space<vmem>>, %arg11: memref<2x4x128xf32, #tpu.memory_space<vmem>>, %arg12: memref<16x128xf32, #tpu.memory_space<vmem>>) attributes {dimension_semantics = [#tpu.dimension_semantics<arbitrary>], iteration_bounds = array<i64: 3>, scalar_prefetch = 0 : i64, scratch_operands = 1 : i64, tpu.core_type = #tpu.core_type<tc>, window_params = [{pipeline_mode = #tpu.pipeline_mode<synchronous>, transform_indices = @transform_0, window_bounds = array<i64: 2, 128>}, {pipeline_mode = #tpu.pipeline_mode<synchronous>, transform_indices = @transform_1, window_bounds = array<i64: 128, 512>}, {pipeline_mode = #tpu.pipeline_mode<synchronous>, transform_indices = @transform_2, window_bounds = array<i64: 1, 512>}, {pipeline_mode = #tpu.pipeline_mode<synchronous>, transform_indices = @transform_3, window_bounds = array<i64: 4, 128>}, {transform_indices = @transform_4, window_bounds = array<i64: 1, 6, 128>}, {transform_indices = @transform_5, window_bounds = array<i64: 1, 128, 384>}, {transform_indices = @transform_6, window_bounds = array<i64: 1, 128, 128>}, {transform_indices = @transform_7, window_bounds = array<i64: 1, 128, 256>}, {transform_indices = @transform_8, window_bounds = array<i64: 1, 1, 256>}, {transform_indices = @transform_9, window_bounds = array<i64: 1, 256, 128>}, {pipeline_mode = #tpu.pipeline_mode<synchronous>, transform_indices = @transform_10, window_bounds = array<i64: 2, 4, 128>}]} {
    %c0_i32 = arith.constant 0 : i32
    %0 = arith.cmpi eq, %arg0, %c0_i32 : i32
    %1 = arith.extui %0 : i1 to i32
    %c0_i32_0 = arith.constant 0 : i32
    %2 = arith.cmpi ne, %1, %c0_i32_0 : i32
    scf.if %2 {
      %c0_42 = arith.constant 0 : index
      %c0_43 = arith.constant 0 : index
      %113 = vector.load %arg1[%c0_42, %c0_43] : memref<2x128xbf16, #tpu.memory_space<vmem>>, vector<2x128xbf16>
      %c0_44 = arith.constant 0 : index
      %c0_45 = arith.constant 0 : index
      %114 = vector.load %arg2[%c0_44, %c0_45] : memref<128x512xbf16, #tpu.memory_space<vmem>>, vector<128x512xbf16>
      %cst_46 = arith.constant dense<0.000000e+00> : vector<2x512xf32>
      %115 = tpu.matmul %113, %114, %cst_46 {dimension_numbers = #tpu.dot_dimension_numbers<[1], [0], [0], [1], [0, 0, 1, 1], [], []>} : vector<2x128xbf16>, vector<128x512xbf16>, vector<2x512xf32> -> vector<2x512xf32>
      %c0_47 = arith.constant 0 : index
      %c0_48 = arith.constant 0 : index
      %116 = vector.load %arg3[%c0_47, %c0_48] : memref<1x512xf32, #tpu.memory_space<vmem>>, vector<1x512xf32>
      %117 = vector.broadcast %116 : vector<1x512xf32> to vector<2x512xf32>
      %118 = arith.addf %115, %117 : vector<2x512xf32>
      %119 = vector.shape_cast %118 : vector<2x512xf32> to vector<2x4x128xf32>
      %c0_49 = arith.constant 0 : index
      %c0_50 = arith.constant 0 : index
      %120 = vector.load %arg4[%c0_49, %c0_50] : memref<4x128xf32, #tpu.memory_space<vmem>>, vector<4x128xf32>
      %121 = vector.shape_cast %120 : vector<4x128xf32> to vector<1x4x128xf32>
      %122 = vector.broadcast %121 : vector<1x4x128xf32> to vector<2x4x128xf32>
      %123 = tpu.concatenate %119, %122 in 1 : vector<2x4x128xf32>, vector<2x4x128xf32> -> vector<2x8x128xf32>
      %124 = vector.shape_cast %123 : vector<2x8x128xf32> to vector<16x128xf32>
      %c0_51 = arith.constant 0 : index
      %c0_52 = arith.constant 0 : index
      %125 = vector.load %arg12[%c0_51, %c0_52] : memref<16x128xf32, #tpu.memory_space<vmem>>, vector<16x128xf32>
      tpu.vector_store %arg12[%c0_51, %c0_52], %124 {strides = array<i32>} : memref<16x128xf32, #tpu.memory_space<vmem>>, vector<16x128xf32>,
    } else {
    }
    %c0 = arith.constant 0 : index
    %c0_1 = arith.constant 0 : index
    %3 = vector.load %arg12[%c0, %c0_1] : memref<16x128xf32, #tpu.memory_space<vmem>>, vector<16x128xf32>
    %c0_2 = arith.constant 0 : index
    %c0_3 = arith.constant 0 : index
    %c0_4 = arith.constant 0 : index
    %4 = vector.load %arg5[%c0_2, %c0_3, %c0_4] : memref<1x6x128xf32, #tpu.memory_space<vmem>>, vector<1x6x128xf32>
    %5 = vector.shape_cast %4 : vector<1x6x128xf32> to vector<6x128xf32>
    %6 = vector.extract_strided_slice %5 {offsets = [0, 0], sizes = [1, 128], strides = [1, 1]} : vector<6x128xf32> to vector<1x128xf32>
    %7 = vector.extract_strided_slice %5 {offsets = [1, 0], sizes = [1, 128], strides = [1, 1]} : vector<6x128xf32> to vector<1x128xf32>
    %8 = vector.extract_strided_slice %5 {offsets = [2, 0], sizes = [1, 128], strides = [1, 1]} : vector<6x128xf32> to vector<1x128xf32>
    %9 = vector.extract_strided_slice %5 {offsets = [3, 0], sizes = [1, 128], strides = [1, 1]} : vector<6x128xf32> to vector<1x128xf32>
    %10 = vector.extract_strided_slice %5 {offsets = [4, 0], sizes = [1, 128], strides = [1, 1]} : vector<6x128xf32> to vector<1x128xf32>
    %11 = vector.extract_strided_slice %5 {offsets = [5, 0], sizes = [1, 128], strides = [1, 1]} : vector<6x128xf32> to vector<1x128xf32>
    %cst = arith.constant dense<0.000000e+00> : vector<16xf32>
    %12 = vector.multi_reduction <add>, %3, %cst [1] : vector<16x128xf32> to vector<16xf32>
    %13 = vector.shape_cast %12 : vector<16xf32> to vector<16x1xf32>
    %cst_5 = arith.constant 1.280000e+02 : f32
    %14 = vector.broadcast %cst_5 : f32 to vector<16x1xf32>
    %15 = arith.divf %13, %14 : vector<16x1xf32>
    %16 = vector.broadcast %15 : vector<16x1xf32> to vector<16x128xf32>
    %17 = arith.subf %3, %16 : vector<16x128xf32>
    %18 = arith.mulf %17, %17 : vector<16x128xf32>
    %cst_6 = arith.constant dense<0.000000e+00> : vector<16xf32>
    %19 = vector.multi_reduction <add>, %18, %cst_6 [1] : vector<16x128xf32> to vector<16xf32>
    %20 = vector.shape_cast %19 : vector<16xf32> to vector<16x1xf32>
    %cst_7 = arith.constant 1.280000e+02 : f32
    %21 = vector.broadcast %cst_7 : f32 to vector<16x1xf32>
    %22 = arith.divf %20, %21 : vector<16x1xf32>
    %23 = vector.broadcast %15 : vector<16x1xf32> to vector<16x128xf32>
    %24 = arith.subf %3, %23 : vector<16x128xf32>
    %cst_8 = arith.constant 9.99999974E-6 : f32
    %25 = vector.broadcast %cst_8 : f32 to vector<16x1xf32>
    %26 = arith.addf %22, %25 : vector<16x1xf32>
    %27 = math.rsqrt %26 : vector<16x1xf32>
    %28 = vector.broadcast %27 : vector<16x1xf32> to vector<16x128xf32>
    %29 = arith.mulf %24, %28 : vector<16x128xf32>
    %30 = vector.broadcast %6 : vector<1x128xf32> to vector<16x128xf32>
    %31 = arith.mulf %29, %30 : vector<16x128xf32>
    %32 = vector.broadcast %7 : vector<1x128xf32> to vector<16x128xf32>
    %33 = arith.addf %31, %32 : vector<16x128xf32>
    %34 = arith.truncf %33 : vector<16x128xf32> to vector<16x128xbf16>
    %c0_9 = arith.constant 0 : index
    %c0_10 = arith.constant 0 : index
    %c0_11 = arith.constant 0 : index
    %35 = vector.load %arg6[%c0_9, %c0_10, %c0_11] : memref<1x128x384xbf16, #tpu.memory_space<vmem>>, vector<1x128x384xbf16>
    %36 = vector.shape_cast %35 : vector<1x128x384xbf16> to vector<128x384xbf16>
    %cst_12 = arith.constant dense<0.000000e+00> : vector<16x384xf32>
    %37 = tpu.matmul %34, %36, %cst_12 {dimension_numbers = #tpu.dot_dimension_numbers<[1], [0], [0], [1], [0, 0, 1, 1], [], []>} : vector<16x128xbf16>, vector<128x384xbf16>, vector<16x384xf32> -> vector<16x384xf32>
    %38 = vector.shape_cast %37 : vector<16x384xf32> to vector<2x8x24x16xf32>
    %39 = tpu.transpose %38, [0, 2, 1, 3] : vector<2x8x24x16xf32> -> vector<2x24x8x16xf32>
    %40 = vector.extract_strided_slice %39 {offsets = [0, 0, 0, 0], sizes = [2, 8, 8, 16], strides = [1, 1, 1, 1]} : vector<2x24x8x16xf32> to vector<2x8x8x16xf32>
    %41 = vector.shape_cast %40 : vector<2x8x8x16xf32> to vector<16x8x16xf32>
    %42 = vector.extract_strided_slice %39 {offsets = [0, 8, 0, 0], sizes = [2, 8, 8, 16], strides = [1, 1, 1, 1]} : vector<2x24x8x16xf32> to vector<2x8x8x16xf32>
    %43 = vector.shape_cast %42 : vector<2x8x8x16xf32> to vector<16x8x16xf32>
    %44 = vector.extract_strided_slice %39 {offsets = [0, 16, 0, 0], sizes = [2, 8, 8, 16], strides = [1, 1, 1, 1]} : vector<2x24x8x16xf32> to vector<2x8x8x16xf32>
    %45 = vector.shape_cast %44 : vector<2x8x8x16xf32> to vector<16x8x16xf32>
    "tpu.trace_start"() <{level = 10 : i32, message = "bqd,bkd->bqk"}> : () -> ()
    %cst_13 = arith.constant dense<0.000000e+00> : vector<16x8x8xf32>
    %46 = tpu.matmul %41, %43, %cst_13 {dimension_numbers = #tpu.dot_dimension_numbers<[2], [2], [1], [1], [0, 0, 0, 1, 1, 1], [0], [0]>} : vector<16x8x16xf32>, vector<16x8x16xf32>, vector<16x8x8xf32> -> vector<16x8x8xf32>
    "tpu.trace_stop"() : () -> ()
    %cst_14 = arith.constant 2.500000e-01 : f32
    %47 = vector.broadcast %cst_14 : f32 to vector<16x8x8xf32>
    %48 = arith.mulf %46, %47 : vector<16x8x8xf32>
    %cst_15 = arith.constant dense<0xFF800000> : vector<16x8xf32>
    %49 = vector.multi_reduction <maximumf>, %48, %cst_15 [2] : vector<16x8x8xf32> to vector<16x8xf32>
    %50 = vector.shape_cast %49 : vector<16x8xf32> to vector<16x8x1xf32>
    %51 = vector.broadcast %50 : vector<16x8x1xf32> to vector<16x8x8xf32>
    %52 = arith.subf %48, %51 : vector<16x8x8xf32>
    %53 = math.exp %52 : vector<16x8x8xf32>
    %cst_16 = arith.constant dense<0.000000e+00> : vector<16x8xf32>
    %54 = vector.multi_reduction <add>, %53, %cst_16 [2] : vector<16x8x8xf32> to vector<16x8xf32>
    %55 = vector.shape_cast %54 : vector<16x8xf32> to vector<16x8x1xf32>
    %56 = tpu.reciprocal %55 {approx = true} : vector<16x8x1xf32> -> vector<16x8x1xf32>
    %57 = vector.broadcast %56 : vector<16x8x1xf32> to vector<16x8x8xf32>
    %58 = arith.mulf %53, %57 : vector<16x8x8xf32>
    "tpu.trace_start"() <{level = 10 : i32, message = "bqk,bkd->bqd"}> : () -> ()
    %cst_17 = arith.constant dense<0.000000e+00> : vector<16x8x16xf32>
    %59 = tpu.matmul %58, %45, %cst_17 {dimension_numbers = #tpu.dot_dimension_numbers<[2], [1], [1], [2], [0, 0, 0, 1, 1, 2], [0], [0]>} : vector<16x8x8xf32>, vector<16x8x16xf32>, vector<16x8x16xf32> -> vector<16x8x16xf32>
    "tpu.trace_stop"() : () -> ()
    %60 = vector.shape_cast %59 : vector<16x8x16xf32> to vector<2x8x8x16xf32>
    %61 = tpu.transpose %60, [0, 2, 1, 3] : vector<2x8x8x16xf32> -> vector<2x8x8x16xf32>
    %62 = vector.shape_cast %61 : vector<2x8x8x16xf32> to vector<16x128xf32>
    %63 = arith.truncf %62 : vector<16x128xf32> to vector<16x128xbf16>
    %c0_18 = arith.constant 0 : index
    %c0_19 = arith.constant 0 : index
    %c0_20 = arith.constant 0 : index
    %64 = vector.load %arg7[%c0_18, %c0_19, %c0_20] : memref<1x128x128xbf16, #tpu.memory_space<vmem>>, vector<1x128x128xbf16>
    %65 = vector.shape_cast %64 : vector<1x128x128xbf16> to vector<128x128xbf16>
    %cst_21 = arith.constant dense<0.000000e+00> : vector<16x128xf32>
    %66 = tpu.matmul %63, %65, %cst_21 {dimension_numbers = #tpu.dot_dimension_numbers<[1], [0], [0], [1], [0, 0, 1, 1], [], []>} : vector<16x128xbf16>, vector<128x128xbf16>, vector<16x128xf32> -> vector<16x128xf32>
    %67 = vector.broadcast %8 : vector<1x128xf32> to vector<16x128xf32>
    %68 = arith.addf %66, %67 : vector<16x128xf32>
    %69 = arith.addf %3, %68 : vector<16x128xf32>
    %cst_22 = arith.constant dense<0.000000e+00> : vector<16xf32>
    %70 = vector.multi_reduction <add>, %69, %cst_22 [1] : vector<16x128xf32> to vector<16xf32>
    %71 = vector.shape_cast %70 : vector<16xf32> to vector<16x1xf32>
    %cst_23 = arith.constant 1.280000e+02 : f32
    %72 = vector.broadcast %cst_23 : f32 to vector<16x1xf32>
    %73 = arith.divf %71, %72 : vector<16x1xf32>
    %74 = vector.broadcast %73 : vector<16x1xf32> to vector<16x128xf32>
    %75 = arith.subf %69, %74 : vector<16x128xf32>
    %76 = arith.mulf %75, %75 : vector<16x128xf32>
    %cst_24 = arith.constant dense<0.000000e+00> : vector<16xf32>
    %77 = vector.multi_reduction <add>, %76, %cst_24 [1] : vector<16x128xf32> to vector<16xf32>
    %78 = vector.shape_cast %77 : vector<16xf32> to vector<16x1xf32>
    %cst_25 = arith.constant 1.280000e+02 : f32
    %79 = vector.broadcast %cst_25 : f32 to vector<16x1xf32>
    %80 = arith.divf %78, %79 : vector<16x1xf32>
    %81 = vector.broadcast %73 : vector<16x1xf32> to vector<16x128xf32>
    %82 = arith.subf %69, %81 : vector<16x128xf32>
    %cst_26 = arith.constant 9.99999974E-6 : f32
    %83 = vector.broadcast %cst_26 : f32 to vector<16x1xf32>
    %84 = arith.addf %80, %83 : vector<16x1xf32>
    %85 = math.rsqrt %84 : vector<16x1xf32>
    %86 = vector.broadcast %85 : vector<16x1xf32> to vector<16x128xf32>
    %87 = arith.mulf %82, %86 : vector<16x128xf32>
    %88 = vector.broadcast %9 : vector<1x128xf32> to vector<16x128xf32>
    %89 = arith.mulf %87, %88 : vector<16x128xf32>
    %90 = vector.broadcast %10 : vector<1x128xf32> to vector<16x128xf32>
    %91 = arith.addf %89, %90 : vector<16x128xf32>
    %92 = arith.truncf %91 : vector<16x128xf32> to vector<16x128xbf16>
    %c0_27 = arith.constant 0 : index
    %c0_28 = arith.constant 0 : index
    %c0_29 = arith.constant 0 : index
    %93 = vector.load %arg8[%c0_27, %c0_28, %c0_29] : memref<1x128x256xbf16, #tpu.memory_space<vmem>>, vector<1x128x256xbf16>
    %94 = vector.shape_cast %93 : vector<1x128x256xbf16> to vector<128x256xbf16>
    %cst_30 = arith.constant dense<0.000000e+00> : vector<16x256xf32>
    %95 = tpu.matmul %92, %94, %cst_30 {dimension_numbers = #tpu.dot_dimension_numbers<[1], [0], [0], [1], [0, 0, 1, 1], [], []>} : vector<16x128xbf16>, vector<128x256xbf16>, vector<16x256xf32> -> vector<16x256xf32>
    %c0_31 = arith.constant 0 : index
    %c0_32 = arith.constant 0 : index
    %c0_33 = arith.constant 0 : index
    %96 = vector.load %arg9[%c0_31, %c0_32, %c0_33] : memref<1x1x256xf32, #tpu.memory_space<vmem>>, vector<1x1x256xf32>
    %97 = vector.shape_cast %96 : vector<1x1x256xf32> to vector<1x256xf32>
    %98 = vector.broadcast %97 : vector<1x256xf32> to vector<16x256xf32>
    %99 = arith.addf %95, %98 : vector<16x256xf32>
    %cst_34 = arith.constant 0.000000e+00 : f32
    %100 = vector.broadcast %cst_34 : f32 to vector<16x256xf32>
    %101 = arith.maximumf %99, %100 : vector<16x256xf32>
    %102 = arith.truncf %101 : vector<16x256xf32> to vector<16x256xbf16>
    %c0_35 = arith.constant 0 : index
    %c0_36 = arith.constant 0 : index
    %c0_37 = arith.constant 0 : index
    %103 = vector.load %arg10[%c0_35, %c0_36, %c0_37] : memref<1x256x128xbf16, #tpu.memory_space<vmem>>, vector<1x256x128xbf16>
    %104 = vector.shape_cast %103 : vector<1x256x128xbf16> to vector<256x128xbf16>
    %cst_38 = arith.constant dense<0.000000e+00> : vector<16x128xf32>
    %105 = tpu.matmul %102, %104, %cst_38 {dimension_numbers = #tpu.dot_dimension_numbers<[1], [0], [0], [1], [0, 0, 1, 1], [], []>} : vector<16x256xbf16>, vector<256x128xbf16>, vector<16x128xf32> -> vector<16x128xf32>
    %106 = vector.broadcast %11 : vector<1x128xf32> to vector<16x128xf32>
    %107 = arith.addf %105, %106 : vector<16x128xf32>
    %108 = arith.addf %69, %107 : vector<16x128xf32>
    %c0_39 = arith.constant 0 : index
    %c0_40 = arith.constant 0 : index
    %109 = vector.load %arg12[%c0_39, %c0_40] : memref<16x128xf32, #tpu.memory_space<vmem>>, vector<16x128xf32>
    tpu.vector_store %arg12[%c0_39, %c0_40], %108 {strides = array<i32>} : memref<16x128xf32, #tpu.memory_space<vmem>>, vector<16x128xf32>,
    %c2_i32 = arith.constant 2 : i32
    %110 = arith.cmpi eq, %arg0, %c2_i32 : i32
    %111 = arith.extui %110 : i1 to i32
    %c0_i32_41 = arith.constant 0 : i32
    %112 = arith.cmpi ne, %111, %c0_i32_41 : i32
    scf.if %112 {
      %113 = vector.shape_cast %108 : vector<16x128xf32> to vector<2x8x128xf32>
      %114 = vector.extract_strided_slice %113 {offsets = [0, 4, 0], sizes = [2, 4, 128], strides = [1, 1, 1]} : vector<2x8x128xf32> to vector<2x4x128xf32>
      %c0_42 = arith.constant 0 : index
      %c0_43 = arith.constant 0 : index
      %c0_44 = arith.constant 0 : index
      %115 = vector.load %arg11[%c0_42, %c0_43, %c0_44] : memref<2x4x128xf32, #tpu.memory_space<vmem>>, vector<2x4x128xf32>
      tpu.vector_store %arg11[%c0_42, %c0_43, %c0_44], %114 {strides = array<i32>} : memref<2x4x128xf32, #tpu.memory_space<vmem>>, vector<2x4x128xf32>,
    } else {
    }
    return
  }
  func.func @transform_0(%arg0: i32) -> (i32, i32) {
    %c0_i32 = arith.constant 0 : i32
    %c0_i32_0 = arith.constant 0 : i32
    %c0_i32_1 = arith.constant 0 : i32
    return %c0_i32, %c0_i32_0 : i32, i32
  }
  func.func @transform_1(%arg0: i32) -> (i32, i32) {
    %c0_i32 = arith.constant 0 : i32
    %c0_i32_0 = arith.constant 0 : i32
    %c0_i32_1 = arith.constant 0 : i32
    return %c0_i32, %c0_i32_0 : i32, i32
  }
  func.func @transform_2(%arg0: i32) -> (i32, i32) {
    %c0_i32 = arith.constant 0 : i32
    %c0_i32_0 = arith.constant 0 : i32
    %c0_i32_1 = arith.constant 0 : i32
    return %c0_i32, %c0_i32_0 : i32, i32
  }
  func.func @transform_3(%arg0: i32) -> (i32, i32) {
    %c0_i32 = arith.constant 0 : i32
    %c0_i32_0 = arith.constant 0 : i32
    %c0_i32_1 = arith.constant 0 : i32
    return %c0_i32, %c0_i32_0 : i32, i32
  }
  func.func @transform_4(%arg0: i32) -> (i32, i32, i32) {
    %c0_i32 = arith.constant 0 : i32
    %c0_i32_0 = arith.constant 0 : i32
    %c0_i32_1 = arith.constant 0 : i32
    return %arg0, %c0_i32, %c0_i32_0 : i32, i32, i32
  }
  func.func @transform_5(%arg0: i32) -> (i32, i32, i32) {
    %c0_i32 = arith.constant 0 : i32
    %c0_i32_0 = arith.constant 0 : i32
    %c0_i32_1 = arith.constant 0 : i32
    return %arg0, %c0_i32, %c0_i32_0 : i32, i32, i32
  }
  func.func @transform_6(%arg0: i32) -> (i32, i32, i32) {
    %c0_i32 = arith.constant 0 : i32
    %c0_i32_0 = arith.constant 0 : i32
    %c0_i32_1 = arith.constant 0 : i32
    return %arg0, %c0_i32, %c0_i32_0 : i32, i32, i32
  }
  func.func @transform_7(%arg0: i32) -> (i32, i32, i32) {
    %c0_i32 = arith.constant 0 : i32
    %c0_i32_0 = arith.constant 0 : i32
    %c0_i32_1 = arith.constant 0 : i32
    return %arg0, %c0_i32, %c0_i32_0 : i32, i32, i32
  }
  func.func @transform_8(%arg0: i32) -> (i32, i32, i32) {
    %c0_i32 = arith.constant 0 : i32
    %c0_i32_0 = arith.constant 0 : i32
    %c0_i32_1 = arith.constant 0 : i32
    return %arg0, %c0_i32, %c0_i32_0 : i32, i32, i32
  }
  func.func @transform_9(%arg0: i32) -> (i32, i32, i32) {
    %c0_i32 = arith.constant 0 : i32
    %c0_i32_0 = arith.constant 0 : i32
    %c0_i32_1 = arith.constant 0 : i32
    return %arg0, %c0_i32, %c0_i32_0 : i32, i32, i32
  }
  func.func @transform_10(%arg0: i32) -> (i32, i32, i32) {
    %c0_i32 = arith.constant 0 : i32
    %c0_i32_0 = arith.constant 0 : i32
    %c0_i32_1 = arith.constant 0 : i32
    %c0_i32_2 = arith.constant 0 : i32
    return %c0_i32, %c0_i32_0, %c0_i32_1 : i32, i32, i32
  }
}

</mosaic_0001>

<bundles_post_ra>
// kernel: transformer_mapper_forward.1
= control target key start
LH: loop header
LB: loop body
LE: loop exit
PB: predicated region body
PF: predicated region fallthrough
CT: control target
= control target key end

     0   :  { %s9598_s0 = inlined_call_operand.vmem [shape: bf16[2,128], index: 0, kind: input, shape index: {}]   ;;  %s9599_s1 = inlined_call_operand.hbm [shape: bf16[128,512], index: 1, kind: input, shape index: {}]   ;;  %s9600_s2 = inlined_call_operand.vmem [shape: f32[1,512], index: 2, kind: input, shape index: {}]   ;;  %s9601_s3 = inlined_call_operand.vmem [shape: f32[4,128], index: 3, kind: input, shape index: {}]   ;;  %s9602_s4 = inlined_call_operand.hbm [shape: f32[3,6,128], index: 4, kind: input, shape index: {}]   ;;  %s9603_s5 = inlined_call_operand.hbm [shape: bf16[3,128,384], index: 5, kind: input, shape index: {}]   ;;  %s9604_s6 = inlined_call_operand.hbm [shape: bf16[3,128,128], index: 6, kind: input, shape index: {}]   ;;  %s9605_s7 = inlined_call_operand.hbm [shape: bf16[3,128,256], index: 7, kind: input, shape index: {}]   ;;  %s9606_s8 = inlined_call_operand.vmem [shape: f32[3,1,256], index: 8, kind: input, shape index: {}]   ;;  %s9607_s9 = inlined_call_operand.hbm [shape: bf16[3,256,128], index: 9, kind: input, shape index: {}]   ;;  %s9608_s10 = inlined_call_operand.hbm [shape: f32[2,4,128], index: 10, kind: output, shape index: {}]  }
   0x1   :  { %9623 = sst [smem:[#allocation23_spill]] %s9598_s0 }
   0x2   :  { %9624 = sst [smem:[#allocation24_spill]] %s9600_s2 }
   0x3   :  { %9625 = sst [smem:[#allocation25_spill]] %s9601_s3 }
   0x4   :  { %9626 = sst [smem:[#allocation26_spill]] %s9602_s4 }
   0x5   :  { %9627 = sst [smem:[#allocation27_spill]] %s9604_s6 }
   0x6   :  { %9628 = sst [smem:[#allocation28_spill]] %s9608_s10 }
   0x7   :  { %15 = vsyncpa [#allocation4], 0 }
   0x8   :  { %16 = vsyncpa [#allocation7], 0 }
   0x9   :  { %18 = vsyncpa [#allocation7 + $0x1], 0 }
   0xa   :  { %19 = vsyncpa [#allocation10], 0 }
   0xb   :  { %21 = vsyncpa [#allocation10 + $0x1], 0 }
   0xc   :  { %22 = vsyncpa [#allocation13], 0 }
   0xd   :  { %24 = vsyncpa [#allocation13 + $0x1], 0 }
   0xe   :  { %25 = vsyncpa [#allocation5], 0  ;;  %s8016_s13 = smov 0   ;;  %s8018_s14 = smov 0  }
   0xf   :  { %s8020_s15 = smov 0   ;;  %s8022_s16 = smov 0  }
  0x10 LB: > { %9629 = sst [smem:[#allocation20_spill]] %s7923_s15  ;;  %s8037_s17 = sadd.s32 1, %s7927_s16   ;;  %s7927_s16 = sphi %s8022_s16, %s9653_s16   ;;  %s7923_s15 = sphi %s8020_s15, %s9655_s15   ;;  %s7919_s14 = sphi %s8018_s14, %s9657_s14   ;;  %s7915_s13 = sphi %s8016_s13, %s9656_s13  }
  0x11   : > { %9630 = sst [smem:[#allocation21_spill]] %s8037_s17  ;;  %s122_s18 = sadd.s32 1, %s7923_s15 }
  0x12   : > { %s119_s19 = ssub.s32 %s7927_s16, %s8037_s17  ;;  %p129_p0 = scmp.ne.s32.totalorder %s7923_s15, %s7919_s14 }
  0x13   : > { %p120_p1 = scmp.eq.s32.totalorder %s119_s19, 0  ;;  %p130_p2 = scmp.eq.s32.totalorder %s7927_s16, 0 }
  0x14   : > { %p7372_p3 = scmp.lt.s32.totalorder %s7927_s16, 3  ;;  %s9609_s21 = sand.u32 1, %s7927_s16  }
  0x15   : > { %s8047_s20 = scalar_select %p120_p1, %s7923_s15, %s122_s18  }
  0x16   : > { %p131_p4 = por %p130_p2, %p129_p0  ;;  %s8051_s22 = sand.u32 1, %s7923_s15  }
  0x17   : > { %9631 = sst [smem:[#allocation22_spill]] %s8047_s20  ;;  %s6790_s23 = sshll.u32 %s8051_s22, 3 }
  0x18   : > { %s6791_s24 = sshll.u32 %s7927_s16, 7  ;;  %s9632_s4 = sld [smem:[#allocation26_spill]] }
  0x19   : > { %s336_s28 = scalar_lea.vmem [#allocation6], %s6790_s23  ;;  %p8060_p5 = pnand %p7372_p3, %p131_p4 }
  0x1a   : > { %s343_s29 = sshll.u32 %s336_s28, 4  ;;  %s6793_s11 = sshll.u32 %s8051_s22, 6  ;;  %s8064_s29 = int_to_ptr.vmem [resolvable:$true] %s343_s29 }
  0x1b   : > { %s9633_s30 = scalar_select %p8060_p5, 1, 0 }
  0x1c   : > { %s8069_s12 = scalar_lea.sflag [#allocation7], %s9609_s21  ;;  %p8075_p7 = pneg %p8060_p5 }
  0x1e   : > { %s8058_s27 = scalar_lea.hbm %s9632_s4, %s6791_s24  ;;  %s7678_s25 = scalar_lea.hbm %s9632_s4, 384 }
  0x1f   : > { %s7673_s18 = scalar_lea.hbm %s8058_s27, 128  ;;  %p7679_p10 = scmp.lt.u32.totalorder %s8058_s27, %s9632_s4 }
  0x20   : > { %p7674_p6 = scmp.ne.s32.totalorder %s8058_s27, %s7673_s18  ;;  %p7680_p11 = scmp.lt.u32.totalorder %s7678_s25, %s7673_s18 }
  0x21   : > { %s9634_s19 = scalar_select %p8075_p7, 1, 0 }
  0x22   : > { %p7676_p8 = pnand %p8075_p7, %p7674_p6  ;;  %p7681_p12 = por %p7680_p11, %p7679_p10 }
  0x23   : > { %p7682_p13 = scmp.lt.u32.totalorder %s7673_s18, %s8058_s27 }
  0x24   : > { %p7677_p9 = pneg %p7676_p8 }
  0x25   : > { %p7683_p0 = por %p7682_p13, %p7681_p12 }
  0x27   : > { %p7684_p1 = pnand %p7683_p0, %p7677_p9 }
  0x29   : > { %7687 = shalt.err (!%p7684_p1)
}
  0x2a   : > { %s7688_s21 = scalar_lea.vmem %s8064_s29, 128  ;;  %s7929_s23 = smov [#allocation6]  }
  0x2b   : > { %p7689_p2 = scmp.ne.s32.totalorder %s8064_s29, %s7688_s21  ;;  %s7693_s24 = sshll.u32 %s7929_s23, 4  ;;  %s7694_s24 = int_to_ptr.vmem [resolvable:$false] %s7693_s24 }
  0x2c   : > { %s7695_s26 = scalar_lea.vmem %s7694_s24, 256  ;;  %p7696_p6 = scmp.lt.s32.totalorder %s8064_s29, %s7694_s24 }
  0x2d   : > { %p7691_p3 = pnand %p7689_p2, %p8075_p7  ;;  %p7697_p8 = scmp.lt.s32.totalorder %s7695_s26, %s7688_s21 }
  0x2f   : > { %p7692_p4 = pneg %p7691_p3  ;;  %p7698_p10 = por %p7697_p8, %p7696_p6 }
  0x31   : > { %p7699_p11 = pnand %p7698_p10, %p7692_p4 }
  0x33   : > { %7702 = shalt.err (!%p7699_p11)
}
  0x34   : > { %7358 = dma.hbm_to_vmem [thread:$0]  (!%p8060_p5), %s8058_s27, 128, %s8064_s29, %s8069_s12  }
  0x35   : > { %s7023_s18 = sshll.u32 %s7927_s16, 10  ;;  %s9635_s6 = sld [smem:[#allocation27_spill]] }
  0x36   : > { %s375_s21 = scalar_lea.vmem [#allocation9], %s6793_s11  ;;  %s9636_s26 = sand.u32 1, %s7927_s16  }
  0x37   : > { %s382_s24 = sshll.u32 %s375_s21, 4  ;;  %s8111_s4 = scalar_lea.sflag [#allocation10], %s9636_s26  ;;  %s8107_s24 = int_to_ptr.vmem [resolvable:$true] %s382_s24 }
  0x3b   : > { %s8103_s23 = scalar_lea.hbm %s9635_s6, %s7023_s18  ;;  %s7708_s18 = scalar_lea.hbm %s9635_s6, 3072 }
  0x3c   : > { %s7703_s20 = scalar_lea.hbm %s8103_s23, 1024  ;;  %p7709_p0 = scmp.lt.u32.totalorder %s8103_s23, %s9635_s6 }
  0x3d   : > { %p7704_p9 = scmp.ne.s32.totalorder %s8103_s23, %s7703_s20  ;;  %p7710_p1 = scmp.lt.u32.totalorder %s7708_s18, %s7703_s20 }
  0x3e   : > { %p7712_p3 = scmp.lt.u32.totalorder %s7703_s20, %s8103_s23 }
  0x3f   : > { %p7706_p12 = pnand %p7704_p9, %p8075_p7  ;;  %p7711_p2 = por %p7710_p1, %p7709_p0 }
  0x41   : > { %p7707_p13 = pneg %p7706_p12  ;;  %p7713_p4 = por %p7712_p3, %p7711_p2 }
  0x43   : > { %p7714_p6 = pnand %p7713_p4, %p7707_p13 }
  0x45   : > { %7717 = shalt.err (!%p7714_p6)
}
  0x46   : > { %s7718_s11 = scalar_lea.vmem %s8107_s24, 1024  ;;  %s7930_s21 = smov [#allocation9]  }
  0x47   : > { %p7719_p8 = scmp.ne.s32.totalorder %s8107_s24, %s7718_s11  ;;  %s7723_s26 = sshll.u32 %s7930_s21, 4  ;;  %s7724_s26 = int_to_ptr.vmem [resolvable:$false] %s7723_s26 }
  0x48   : > { %s7725_s27 = scalar_lea.vmem %s7724_s26, 2048  ;;  %p7726_p9 = scmp.lt.s32.totalorder %s8107_s24, %s7724_s26 }
  0x49   : > { %p7721_p10 = pnand %p7719_p8, %p8075_p7  ;;  %p7727_p12 = scmp.lt.s32.totalorder %s7725_s27, %s7718_s11 }
  0x4b   : > { %p7722_p11 = pneg %p7721_p10  ;;  %p7728_p0 = por %p7727_p12, %p7726_p9 }
  0x4d   : > { %p7729_p1 = pnand %p7728_p0, %p7722_p11 }
  0x4f   : > { %7732 = shalt.err (!%p7729_p1)
}
  0x50   : > { %s9610_s20 = smov 64   ;;  %s9611_s29 = smov 4  }
  0x51   : > { %7364 = dma.hbm_to_vmem [thread:$0]  (!%p8060_p5), %s8103_s23, 1024, %s8107_s24, %s8111_s4, %s9610_s20, %s9610_s20, %s9611_s29  }
  0x52   : > { %s8139_s18 = sadd.s32 4294967295, %s7927_s16   ;;  %p135_p13 = scmp.ne.s32.totalorder %s7919_s14, %s7915_s13 }
  0x53   : > { %p9616_p2 = scmp.eq.s32.totalorder %s8139_s18, 0  ;;  %p6787_p3 = scmp.ge.s32.totalorder %s7927_s16, 1 }
  0x54   : > { %p297_p4 = scmp.lt.s32.totalorder %s7927_s16, 4  ;;  %s7933_s23 = smov [#allocation3]  }
  0x55   : > { %p8148_p6 = por %p9616_p2, %p135_p13  ;;  %s312_s24 = sshll.u32 %s7933_s23, 4  ;;  %s313_s24 = int_to_ptr.vmem [resolvable:$true] %s312_s24 }
  0x56   : > { %p8153_p10 = pnand %p6787_p3, %p297_p4  ;;  %s7330_s13 = smul.u32 192, %s8051_s22 }
  0x57   : > { %s9637_s25 = scalar_select %p8148_p6, 1, 0 }
  0x58   : > { %s9638_s28 = scalar_select %p8153_p10, 1, 0 }
  0x59   : > { %p7351_p11 = pneg %p8153_p10  ;;  %s7331_s21 = smul.u32 3072, %s7927_s16 }
  0x5a   : > { %s7733_s23 = scalar_lea.hbm %s9599_s1, 4096 }
  0x5b   : > { %p8162_p9 = pnand %p7351_p11, %p9616_p2  ;;  %s8170_s20 = scalar_lea.hbm %s9603_s5, %s7331_s21 }
  0x5c   : > { %p7734_p12 = scmp.ne.s32.totalorder %s9599_s1, %s7733_s23  ;;  %p7740_p3 = scmp.lt.u32.totalorder %s7733_s23, %s9599_s1 }
  0x5d   : > { %p7735_p0 = pneg %p8162_p9 }
  0x5f   : > { %p7736_p1 = pnand %p7735_p0, %p7734_p12 }
  0x61   : > { %p7737_p13 = pneg %p7736_p1 }
  0x63   : > { %p7742_p4 = pnand %p7740_p3, %p7737_p13 }
  0x65   : > { %7745 = shalt.err (!%p7742_p4)
}
  0x66   : > { %s7746_s21 = scalar_lea.vmem %s313_s24, 4096  ;;  %p7754_p6 = scmp.lt.s32.totalorder %s313_s24, %s313_s24 }
  0x67   : > { %p7747_p11 = scmp.ne.s32.totalorder %s313_s24, %s7746_s21  ;;  %p7755_p10 = scmp.lt.s32.totalorder %s7746_s21, %s7746_s21 }
  0x69   : > { %p7749_p8 = pnand %p7747_p11, %p7735_p0  ;;  %p7756_p5 = por %p7755_p10, %p7754_p6 }
  0x6b   : > { %p7750_p2 = pneg %p7749_p8 }
  0x6d   : > { %p7757_p7 = pnand %p7756_p5, %p7750_p2 }
  0x6f   : > { %7760 = shalt.err (!%p7757_p7)
}
  0x70   : > { %s7934_s6 = smov 256   ;;  %s7935_s3 = smov 16  }
  0x71   : > { %7354 = dma.hbm_to_vmem [thread:$0]  (!%p8162_p9), %s9599_s1, 4096, %s313_s24, [#allocation4], %s7934_s6, %s7934_s6, %s7935_s3  }
  0x72   : > { %s354_s17 = scalar_lea.vmem [#allocation8], %s7330_s13  ;;  %s6796_s26 = sshll.u32 %s8051_s22, 7 }
  0x73   : > { %s361_s29 = sshll.u32 %s354_s17, 4  ;;  %s7761_s27 = scalar_lea.hbm %s8170_s20, 3072  ;;  %s8188_s29 = int_to_ptr.vmem [resolvable:$true] %s361_s29 }
  0x74   : > { %p7762_p5 = scmp.ne.s32.totalorder %s8170_s20, %s7761_s27  ;;  %p9640_p7 = scmp.ne.s32.totalorder %s9634_s19, 0 }
  0x75   : > { %s7766_s2 = scalar_lea.hbm %s9603_s5, 9216  ;;  %p7767_p8 = scmp.lt.u32.totalorder %s8170_s20, %s9603_s5 }
  0x76   : > { %p7764_p2 = pnand %p7762_p5, %p9640_p7  ;;  %p7768_p10 = scmp.lt.u32.totalorder %s7766_s2, %s7761_s27 }
  0x77   : > { %p7770_p12 = scmp.lt.u32.totalorder %s7761_s27, %s8170_s20 }
  0x78   : > { %p7765_p6 = pneg %p7764_p2  ;;  %p7769_p9 = por %p7768_p10, %p7767_p8 }
  0x7a   : > { %p7771_p0 = por %p7770_p12, %p7769_p9 }
  0x7c   : > { %p7772_p1 = pnand %p7771_p0, %p7765_p6 }
  0x7e   : > { %7775 = shalt.err (!%p7772_p1)
}
  0x7f   : > { %s7776_s24 = scalar_lea.vmem %s8188_s29, 3072  ;;  %s7936_s13 = smov [#allocation8]  }
  0x80   : > { %p7777_p13 = scmp.ne.s32.totalorder %s8188_s29, %s7776_s24  ;;  %s7781_s6 = sshll.u32 %s7936_s13, 4  ;;  %s7782_s6 = int_to_ptr.vmem [resolvable:$false] %s7781_s6 }
  0x81   : > { %s7783_s0 = scalar_lea.vmem %s7782_s6, 6144  ;;  %p7784_p11 = scmp.lt.s32.totalorder %s8188_s29, %s7782_s6 }
  0x82   : > { %p7779_p3 = pnand %p7777_p13, %p9640_p7  ;;  %p7785_p5 = scmp.lt.s32.totalorder %s7783_s0, %s7776_s24 }
  0x84   : > { %p7780_p4 = pneg %p7779_p3  ;;  %p7786_p2 = por %p7785_p5, %p7784_p11 }
  0x86   : > { %p7787_p8 = pnand %p7786_p2, %p7780_p4 }
  0x88   : > { %7790 = shalt.err (!%p7787_p8)
}
  0x89   : > { %s7937_s2 = smov 192   ;;  %s7938_s3 = smov 12  }
  0x8a   : > { %p9641_p6 = scmp.ne.s32.totalorder %s9633_s30, 0  ;;  %s7024_s10 = sshll.u32 %s7927_s16, 11 }
  0x8b   : > { %s8219_s27 = scalar_lea.hbm %s9605_s7, %s7024_s10  ;;  %s396_s23 = scalar_lea.vmem [#allocation11], %s6796_s26 }
  0x8c   : > { %7361 = dma.hbm_to_vmem [thread:$0]  (!%p9641_p6), %s8170_s20, 3072, %s8188_s29, %s8069_s12, %s7937_s2, %s7937_s2, %s7938_s3  }
  0x8d   : > { %s403_s21 = sshll.u32 %s396_s23, 4  ;;  %s7791_s11 = scalar_lea.hbm %s8219_s27, 2048  ;;  %s8223_s21 = int_to_ptr.vmem [resolvable:$true] %s403_s21 }
  0x8e   : > { %p7792_p10 = scmp.ne.s32.totalorder %s8219_s27, %s7791_s11  ;;  %s7796_s29 = scalar_lea.hbm %s9605_s7, 6144 }
  0x8f   : > { %p7797_p0 = scmp.lt.u32.totalorder %s8219_s27, %s9605_s7  ;;  %p7798_p1 = scmp.lt.u32.totalorder %s7796_s29, %s7791_s11 }
  0x90   : > { %p7794_p9 = pnand %p7792_p10, %p9640_p7  ;;  %p7800_p3 = scmp.lt.u32.totalorder %s7791_s11, %s8219_s27 }
  0x91   : > { %p7799_p13 = por %p7798_p1, %p7797_p0 }
  0x92   : > { %p7795_p12 = pneg %p7794_p9 }
  0x93   : > { %p7801_p4 = por %p7800_p3, %p7799_p13 }
  0x95   : > { %p7802_p11 = pnand %p7801_p4, %p7795_p12 }
  0x97   : > { %7805 = shalt.err (!%p7802_p11)
}
  0x98   : > { %s7806_s6 = scalar_lea.vmem %s8223_s21, 2048  ;;  %s7939_s0 = smov [#allocation11]  }
  0x99   : > { %p7807_p5 = scmp.ne.s32.totalorder %s8223_s21, %s7806_s6  ;;  %s7811_s2 = sshll.u32 %s7939_s0, 4  ;;  %s7812_s2 = int_to_ptr.vmem [resolvable:$false] %s7811_s2 }
  0x9a   : > { %s7813_s3 = scalar_lea.vmem %s7812_s2, 4096  ;;  %p7814_p10 = scmp.lt.s32.totalorder %s8223_s21, %s7812_s2 }
  0x9b   : > { %p7809_p2 = pnand %p7807_p5, %p9640_p7  ;;  %p7815_p9 = scmp.lt.s32.totalorder %s7813_s3, %s7806_s6 }
  0x9d   : > { %p7810_p8 = pneg %p7809_p2  ;;  %p7816_p0 = por %p7815_p9, %p7814_p10 }
  0x9f   : > { %p7817_p1 = pnand %p7816_p0, %p7810_p8 }
  0xa1   : > { %7820 = shalt.err (!%p7817_p1)
}
  0xa2   : > { %s7940_s15 = smov 128   ;;  %s7941_s17 = smov 8  }
  0xa3   : > { %7367 = dma.hbm_to_vmem [thread:$0]  (!%p9641_p6), %s8219_s27, 2048, %s8223_s21, %s8111_s4, %s7940_s15, %s7940_s15, %s7941_s17  }
  0xa4   : > { %s8252_s12 = scalar_lea.hbm %s9607_s9, %s7024_s10  ;;  %s424_s20 = scalar_lea.vmem [#allocation12], %s6796_s26 }
  0xa5   : > { %s431_s29 = sshll.u32 %s424_s20, 4  ;;  %s421_s24 = scalar_lea.sflag [#allocation13], %s8051_s22  ;;  %s8256_s29 = int_to_ptr.vmem [resolvable:$true] %s431_s29 }
  0xa6   : > { %s7821_s13 = scalar_lea.hbm %s8252_s12, 2048  ;;  %s7826_s10 = scalar_lea.hbm %s9607_s9, 6144 }
  0xa7   : > { %p7822_p12 = scmp.ne.s32.totalorder %s8252_s12, %s7821_s13  ;;  %p7827_p4 = scmp.lt.u32.totalorder %s8252_s12, %s9607_s9 }
  0xa8   : > { %p7828_p11 = scmp.lt.u32.totalorder %s7826_s10, %s7821_s13  ;;  %p7830_p2 = scmp.lt.u32.totalorder %s7821_s13, %s8252_s12 }
  0xa9   : > { %p7824_p13 = pnand %p7822_p12, %p9640_p7 }
  0xaa   : > { %p7829_p5 = por %p7828_p11, %p7827_p4 }
  0xab   : > { %p7825_p3 = pneg %p7824_p13 }
  0xac   : > { %p7831_p8 = por %p7830_p2, %p7829_p5 }
  0xae   : > { %p7832_p10 = pnand %p7831_p8, %p7825_p3 }
  0xb0   : > { %7835 = shalt.err (!%p7832_p10)
}
  0xb1   : > { %s7836_s26 = scalar_lea.vmem %s8256_s29, 2048  ;;  %s7942_s6 = smov [#allocation12]  }
  0xb2   : > { %p7837_p9 = scmp.ne.s32.totalorder %s8256_s29, %s7836_s26  ;;  %s7841_s0 = sshll.u32 %s7942_s6, 4  ;;  %s7842_s0 = int_to_ptr.vmem [resolvable:$false] %s7841_s0 }
  0xb3   : > { %s7843_s2 = scalar_lea.vmem %s7842_s0, 4096  ;;  %p7844_p12 = scmp.lt.s32.totalorder %s8256_s29, %s7842_s0 }
  0xb4   : > { %p7839_p0 = pnand %p7837_p9, %p9640_p7  ;;  %p7845_p13 = scmp.lt.s32.totalorder %s7843_s2, %s7836_s26 }
  0xb6   : > { %p7840_p1 = pneg %p7839_p0  ;;  %p7846_p4 = por %p7845_p13, %p7844_p12 }
  0xb8   : > { %p7847_p11 = pnand %p7846_p4, %p7840_p1 }
  0xba   : > { %7850 = shalt.err (!%p7847_p11)
}
  0xbb   : > { %s9642_s3 = smov 4   ;;  %s9643_s15 = smov 64  }
  0xbc   : > { %7370 = dma.hbm_to_vmem [thread:$0]  (!%p9641_p6), %s8252_s12, 2048, %s8256_s29, %s421_s24, %s9643_s15, %s9643_s15, %s9642_s3  }
  0xbd   : > { %p9644_p7 = scmp.ne.s32.totalorder %s9638_s28, 0 }
  0xbe   : > { %p9645_p3 = scmp.eq.s32.totalorder (!%p9644_p7), %s8139_s18, 0 }
  0xbf   : > { %443 = sbr.rel (%p9644_p7) target bundleno = 3193 (0xc79), region = 60 }
  0xc6   : > { %7894 = dma.done.wait (%p9645_p3), [#allocation4], 4096   ;;  %p9646_p5 = pmov %p9645_p3 }
  0xc7   : > { %s449_s30 = sand.u32 1, %s8139_s18   ;;  %s451_s19 = sand.u32 1, %s7919_s14  }
  0xc8   : > { %7896 = vsyncadd (%p9646_p5), [#allocation4], 4294963200  ;;  %s6804_s17 = sshll.u32 %s451_s19, 3  ;;  %s450_s23 = scalar_lea.sflag [#allocation7], %s449_s30 }
  0xc9   : > { %s8293_s22 = scalar_lea.vmem [#allocation6], %s6804_s17  ;;  %p9647_p2 = scmp.ne.s32.totalorder %s9637_s25, 0 }
  0xcb   : > { %7898 = dma.done.wait (%p9647_p2), %s450_s23, 3200  }
  0xcc   : > { %7900 = vsyncadd (%p9647_p2), %s450_s23, 4294964096  ;;  %s7332_s28 = smul.u32 192, %s451_s19  ;;  %s6805_s11 = sshll.u32 %s451_s19, 6 }
  0xcd   : > { %s468_s20 = scalar_lea.sflag [#allocation10], %s449_s30  ;;  %s8301_s29 = scalar_lea.vmem [#allocation9], %s6805_s11 }
  0xce   : > { %s8299_s12 = scalar_lea.vmem [#allocation8], %s7332_s28 }
  0xcf   : > { %7902 = dma.done.wait (%p9647_p2), %s468_s20, 3072  }
  0xd0   : > { %7904 = vsyncadd (%p9647_p2), %s468_s20, 4294964224  ;;  %s6806_s24 = sshll.u32 %s451_s19, 7  ;;  %s486_s4 = scalar_lea.sflag [#allocation13], %s451_s19 }
  0xd1   : > { %s8307_s13 = scalar_lea.vmem [#allocation11], %s6806_s24  ;;  %s8309_s16 = scalar_lea.vmem [#allocation12], %s6806_s24 }
  0xd2   : > { %7906 = dma.done.wait (%p9647_p2), %s486_s4, 2048  }
  0xd3   : > { %7908 = vsyncadd (%p9647_p2), %s486_s4, 4294965248  ;;  %p545_p6 = scmp.lt.s32.totalorder %s8139_s18, 2  ;;  %p9648_p8 = scmp.ne.s32.totalorder %s8139_s18, 0 }
  0xd4   : > { %v7435_v0 = vld [vmem:[#allocation3 + $0x4] ss:$16 sps:$4 sm:$0xff] (!%p9648_p8)   ;;  %v7437_v1 = vld [vmem:[#allocation3 + $0xc] ss:$16 sps:$4 sm:$0xff] (!%p9648_p8)   ;;  %v7943_v2 = vmov (!%p9648_p8), 0   ;;  %s9649_s2 = sld [smem:[#allocation23_spill]] (!%p9648_p8)  ;;  %v589_v34 = vlaneseq (!%p9648_p8) }
  0xd5   : > { %s546_s10 = scalar_select %p545_p6, %s8139_s18, 2 }
  0xd6   : > { %553 = sbr.rel (%p9648_p8) target bundleno = 474 (0x1da), region = 88  ;;  %801 = vmatprep.mubr.bf16.mxu0 (!%p9648_p8), %v7943_v2  ;;  %842 = vmatprep.mubr.bf16.mxu1 (!%p9648_p8), %v7943_v2  ;;  %v7439_v3 = vld [vmem:[#allocation3] ss:$16 sps:$4 sm:$0xff] (!%p9648_p8)   ;;  %v7440_v4 = vld [vmem:[#allocation3 + $0x8] ss:$16 sps:$4 sm:$0xff] (!%p9648_p8)   ;;  %v590_v35 = vshrl.u32 (!%p9648_p8), %v589_v34, 7 }
  0xd7   : > { %s6808_s27 = sshll.u32 %s546_s10, 1  ;;  %769 = vmatprep.subr.bf16.mxu0 (!%p9648_p8), %v7435_v0  ;;  %810 = vmatprep.subr.bf16.mxu1 (!%p9648_p8), %v7437_v1  ;;  %v7441_v5 = vld [vmem:[#allocation3 + $0x24] ss:$16 sps:$4 sm:$0xff] (!%p9648_p8)   ;;  %v7443_v6 = vld [vmem:[#allocation3 + $0x2c] ss:$16 sps:$4 sm:$0xff] (!%p9648_p8)   ;;  %s9650_s30 = sld [smem:[#allocation24_spill]] (!%p9648_p8) }
  0xd8   : > { %s8320_s6 = scalar_lea.vmem %s9606_s8, %s6808_s27  ;;  %770 = vmatpush1.bf16.msra.mxu0 (!%p9648_p8), %v7439_v3  ;;  %811 = vmatpush1.bf16.msra.mxu1 (!%p9648_p8), %v7440_v4  ;;  %v7445_v7 = vld [vmem:[#allocation3 + $0x20] ss:$16 sps:$4 sm:$0xff] (!%p9648_p8)   ;;  %v7446_v8 = vld [vmem:[#allocation3 + $0x28] ss:$16 sps:$4 sm:$0xff] (!%p9648_p8)   ;;  %v7447_v9 = vld [vmem:[#allocation3 + $0x44] ss:$16 sps:$4 sm:$0xff] (!%p9648_p8)  }
  0xd9   : > { %771 = vmatprep.subr.bf16.mxu0 (!%p9648_p8), %v7441_v5  ;;  %812 = vmatprep.subr.bf16.mxu1 (!%p9648_p8), %v7443_v6  ;;  %v7449_v10 = vld [vmem:[#allocation3 + $0x4c] ss:$16 sps:$4 sm:$0xff] (!%p9648_p8)   ;;  %v7451_v11 = vld [vmem:[#allocation3 + $0x40] ss:$16 sps:$4 sm:$0xff] (!%p9648_p8)   ;;  %v7452_v12 = vld [vmem:[#allocation3 + $0x48] ss:$16 sps:$4 sm:$0xff] (!%p9648_p8)  }
  0xda   : > { %v7453_v13 = vld [vmem:[#allocation3 + $0x64] ss:$16 sps:$4 sm:$0xff] (!%p9648_p8)   ;;  %v7455_v14 = vld [vmem:[#allocation3 + $0x6c] ss:$16 sps:$4 sm:$0xff] (!%p9648_p8)   ;;  %v7457_v15 = vld [vmem:[#allocation3 + $0x60] ss:$16 sps:$4 sm:$0xff] (!%p9648_p8)  }
  0xdb   : > { %v7458_v16 = vld [vmem:[#allocation3 + $0x68] ss:$16 sps:$4 sm:$0xff] (!%p9648_p8)   ;;  %v7459_v17 = vld [vmem:[#allocation3 + $0x84] ss:$16 sps:$4 sm:$0xff] (!%p9648_p8)   ;;  %v7461_v18 = vld [vmem:[#allocation3 + $0x8c] ss:$16 sps:$4 sm:$0xff] (!%p9648_p8)  }
  0xdc   : > { %772 = vmatpush1.bf16.msra.mxu0 (!%p9648_p8), %v7445_v7  ;;  %813 = vmatpush1.bf16.msra.mxu1 (!%p9648_p8), %v7446_v8  ;;  %v7463_v19 = vld [vmem:[#allocation3 + $0x80] ss:$16 sps:$4 sm:$0xff] (!%p9648_p8)   ;;  %v7464_v20 = vld [vmem:[#allocation3 + $0x88] ss:$16 sps:$4 sm:$0xff] (!%p9648_p8)   ;;  %v7465_v21 = vld [vmem:[#allocation3 + $0xa4] ss:$16 sps:$4 sm:$0xff] (!%p9648_p8)  }
  0xdd   : > { %773 = vmatprep.subr.bf16.mxu0 %v7447_v9  ;;  %814 = vmatprep.subr.bf16.mxu1 %v7449_v10  ;;  %v7467_v22 = vld [vmem:[#allocation3 + $0xac] ss:$16 sps:$4 sm:$0xff]   ;;  %v7469_v23 = vld [vmem:[#allocation3 + $0xa0] ss:$16 sps:$4 sm:$0xff]   ;;  %v7470_v24 = vld [vmem:[#allocation3 + $0xa8] ss:$16 sps:$4 sm:$0xff]  }
  0xde   : > { %v7471_v25 = vld [vmem:[#allocation3 + $0xc4] ss:$16 sps:$4 sm:$0xff]   ;;  %v7473_v26 = vld [vmem:[#allocation3 + $0xcc] ss:$16 sps:$4 sm:$0xff]   ;;  %v7475_v27 = vld [vmem:[#allocation3 + $0xc0] ss:$16 sps:$4 sm:$0xff]  }
  0xdf   : > { %v7476_v28 = vld [vmem:[#allocation3 + $0xc8] ss:$16 sps:$4 sm:$0xff]   ;;  %v7477_v29 = vld [vmem:[#allocation3 + $0xe4] ss:$16 sps:$4 sm:$0xff]   ;;  %v7479_v30 = vld [vmem:[#allocation3 + $0xec] ss:$16 sps:$4 sm:$0xff]  }
  0xe0   : > { %774 = vmatpush1.bf16.msra.mxu0 %v7451_v11  ;;  %815 = vmatpush1.bf16.msra.mxu1 %v7452_v12  ;;  %v7481_v31 = vld [vmem:[#allocation3 + $0xe0] ss:$16 sps:$4 sm:$0xff]   ;;  %v7482_v32 = vld [vmem:[#allocation3 + $0xe8] ss:$16 sps:$4 sm:$0xff]   ;;  %v591_v36 = vsub.s32 0, %v590_v35  ;;  %v599_v37 = vsub.s32 2, %v590_v35 }
  0xe1   : > { %775 = vmatprep.subr.bf16.mxu0 %v7453_v13  ;;  %816 = vmatprep.subr.bf16.mxu1 %v7455_v14  ;;  %v554_v33 = vld [vmem:[%s9649_s2] sm:$0x1]  ;;  %v7944_v38 = vmov 1983009808   ;;  %v595_v41 = vsub.s32 1, %v590_v35  ;;  %v603_v42 = vsub.s32 3, %v590_v35 }
  0xe2   : > { %v853_v39 = vunpack.c.l.s4 %v7944_v38  ;;  %v587_v40 = vld [vmem:[%s9650_s30] sm:$0xf]  ;;  %v7945_v48 = vmov 1934713408   ;;  %s9651_s23 = sld [smem:[#allocation25_spill]]  ;;  %vm880_vm0 = vcmask 1043456  }
  0xe3   : > { %v592_v43 = vrot.slane %v587_v40, %v591_v36  ;;  %v600_v44 = vrot.slane %v587_v40, %v599_v37  ;;  %v596_v46 = vrot.slane %v587_v40, %v595_v41  ;;  %v604_v47 = vrot.slane %v587_v40, %v603_v42 }
  0xe4   : > { %776 = vmatpush1.bf16.msra.mxu0 %v7457_v15  ;;  %817 = vmatpush1.bf16.msra.mxu1 %v7458_v16  ;;  %v854_v45 = vunpack.c.0.s8 %v853_v39  ;;  %v869_v49 = vunpack.c.l.s4 %v7945_v48  ;;  %v7946_v9 = vmov 0.0  }
  0xe5   : > { %777 = vmatprep.subr.bf16.mxu0 %v7459_v17  ;;  %818 = vmatprep.subr.bf16.mxu1 %v7461_v18 }
  0xe6   : > { %v857_v54 = vsub.s32 %v854_v45, %v590_v35  ;;  %v870_v59 = vunpack.c.0.s8 %v869_v49 }
  0xe8   : > { %778 = vmatpush1.bf16.msra.mxu0 %v7463_v19  ;;  %819 = vmatpush1.bf16.msra.mxu1 %v7464_v20  ;;  %v876_v3 = vld [vmem:[%s9651_s23] sm:$0xf]  ;;  %v873_v5 = vsub.s32 %v870_v59, %v590_v35 }
  0xe9   : > { %779 = vmatprep.subr.bf16.mxu0 %v7465_v21  ;;  %820 = vmatprep.subr.bf16.mxu1 %v7467_v22  ;;  %v878_v7 = vrot.slane %v876_v3, 4 }
  0xec   : > { %780 = vmatpush1.bf16.msra.mxu0 %v7469_v23  ;;  %821 = vmatpush1.bf16.msra.mxu1 %v7470_v24 }
  0xed   : > { %781 = vmatprep.subr.bf16.mxu0 %v7471_v25  ;;  %822 = vmatprep.subr.bf16.mxu1 %v7473_v26 }
  0xf0   : > { %782 = vmatpush1.bf16.msra.mxu0 %v7475_v27  ;;  %823 = vmatpush1.bf16.msra.mxu1 %v7476_v28 }
  0xf1   : > { %783 = vmatprep.subr.bf16.mxu0 %v7477_v29  ;;  %824 = vmatprep.subr.bf16.mxu1 %v7479_v30 }
  0xf4   : > { %784 = vmatpush1.bf16.msra.mxu0 %v7481_v31  ;;  %825 = vmatpush1.bf16.msra.mxu1 %v7482_v32 }
  0xf7   : > { %802 = vmatmul.mubr.bf16.vlgmr.msra.gmra.mrb[0].mxu0 %v554_v33  ;;  %843 = vmatmul.mubr.bf16.vlgmr.msra.gmra.mrb[0].mxu1 %v554_v33 }
 0x1ca   : > { %v803_v50 = vpop.f32.mrb[0].mxu0  ;;  %v844_v51 = vpop.f32.mrb[0].mxu1 }
 0x1cb   : > { %v804_v52 = vadd.f32 %v803_v50, %v592_v43  ;;  %v845_v53 = vadd.f32 %v844_v51, %v600_v44  ;;  %v805_v55 = vpop.f32.mrb[1].mxu0  ;;  %v846_v56 = vpop.f32.mrb[1].mxu1 }
 0x1cc   : > { %v806_v57 = vadd.f32 %v805_v55, %v596_v46  ;;  %v847_v58 = vadd.f32 %v846_v56, %v604_v47  ;;  %v807_v60 = vpop.f32.mrb[2].mxu0  ;;  %v848_v61 = vpop.f32.mrb[2].mxu1 }
 0x1cd   : > { %v851_v62 = vcombine.low %v804_v52, %v845_v53  ;;  %v808_v63 = vpop.f32.mrb[3].mxu0  ;;  %v849_v0 = vpop.f32.mrb[3].mxu1 }
 0x1ce   : > { %v859_v1 = vcombine.low %v806_v57, %v847_v58 }
 0x1cf   : > { %v858_v2 = vrot.slane %v851_v62, %v857_v54 }
 0x1d0   : > { %v866_v4 = vrot.slane %v859_v1, %v857_v54 }
 0x1d2   : > { %v867_v6 = vcombine.low %v858_v2, %v866_v4 }
 0x1d4   : > { %v874_v8 = vrot.slane %v867_v6, %v873_v5 }
 0x1d6   : > { %v875_v10 = vcombine.high %v874_v8, %v7946_v9  ;;  %v881_v11 = vsel %vm880_vm0, %v874_v8, %v878_v7 }
 0x1d7   : > { %883 = vst [vmem:[#allocation2] sm:$0xff] %v881_v11 }
 0x1d8   : > { %v882_v12 = vsel %vm880_vm0, %v875_v10, %v878_v7 }
 0x1d9   : > { %884 = vst [vmem:[#allocation2 + $0x8] sm:$0xff] %v882_v12 }
 0x1da PF: > { %v7518_v15 = vld [vmem:[%s8299_s12 + $0x4] ss:$12 sps:$4 sm:$0xff]   ;;  %v7520_v16 = vld [vmem:[%s8299_s12] ss:$12 sps:$4 sm:$0xff]   ;;  %v7947_v17 = vmov 0.0   ;;  %v7948_v43 = vmov 0   ;;  %v911_v53 = vlaneseq }
 0x1db   : > { %7130 = vmatprep.subr.bf16.mxu1 %v7947_v17  ;;  %v7521_v18 = vld [vmem:[%s8299_s12 + $0x8] ss:$12 sps:$4 sm:$0xff]   ;;  %1084 = vmatprep.subr.bf16.mxu0 %v7518_v15  ;;  %v7524_v28 = vld [vmem:[%s8299_s12 + $0x18] ss:$12 sps:$4 sm:$0xff]   ;;  %v7525_v29 = vld [vmem:[%s8299_s12 + $0x20] ss:$12 sps:$4 sm:$0xff]  }
 0x1dc   : > { %v7522_v19 = vld [vmem:[%s8299_s12 + $0x1c] ss:$12 sps:$4 sm:$0xff]   ;;  %1085 = vmatpush1.bf16.msra.mxu0 %v7520_v16  ;;  %7131 = vmatpush3.bf16.msra.mxu1 %v7521_v18  ;;  %v7526_v30 = vld [vmem:[%s8299_s12 + $0x34] ss:$12 sps:$4 sm:$0xff]   ;;  %v7529_v32 = vld [vmem:[%s8299_s12 + $0x38] ss:$12 sps:$4 sm:$0xff]  }
 0x1dd   : > { %1086 = vmatprep.subr.bf16.mxu0 %v7522_v19  ;;  %7132 = vmatprep.subr.bf16.mxu1 %v7947_v17  ;;  %v7528_v31 = vld [vmem:[%s8299_s12 + $0x30] ss:$12 sps:$4 sm:$0xff]   ;;  %v7530_v33 = vld [vmem:[%s8299_s12 + $0x4c] ss:$12 sps:$4 sm:$0xff]   ;;  %v7532_v34 = vld [vmem:[%s8299_s12 + $0x48] ss:$12 sps:$4 sm:$0xff]  }
 0x1de   : > { %v885_v13 = vld [vmem:[#allocation2] sm:$0xff]  ;;  %v7533_v35 = vld [vmem:[%s8299_s12 + $0x50] ss:$12 sps:$4 sm:$0xff]   ;;  %v7537_v38 = vld [vmem:[%s8299_s12 + $0x68] ss:$12 sps:$4 sm:$0xff]   ;;  %1116 = vmatprep.mubr.bf16.mxu0 %v7948_v43  ;;  %vm7949_vm1 = vmmov 0  }
 0x1df   : > { %888 = vadd.xlane.f32.xlu0 %v885_v13  ;;  %v7534_v36 = vld [vmem:[%s8299_s12 + $0x64] ss:$12 sps:$4 sm:$0xff]   ;;  %v7536_v37 = vld [vmem:[%s8299_s12 + $0x60] ss:$12 sps:$4 sm:$0xff]   ;;  %v7538_v39 = vld [vmem:[%s8299_s12 + $0x7c] ss:$12 sps:$4 sm:$0xff]   ;;  %7146 = vmatprep.mubr.msk.bf16.mxu1 %vm7949_vm1, %v7947_v17 }
 0x1e0   : > { %v886_v14 = vld [vmem:[#allocation2 + $0x8] sm:$0xff]  ;;  %1087 = vmatpush1.bf16.msra.mxu0 %v7524_v28  ;;  %7133 = vmatpush3.bf16.msra.mxu1 %v7525_v29  ;;  %v7540_v40 = vld [vmem:[%s8299_s12 + $0x78] ss:$12 sps:$4 sm:$0xff]   ;;  %v7542_v42 = vld [vmem:[%s8299_s12 + $0x94] ss:$12 sps:$4 sm:$0xff]   ;;  %v8378_v56 = vshrl.u32 %v911_v53, 7 }
 0x1e1   : > { %7134 = vmatprep.subr.bf16.mxu1 %v7947_v17  ;;  %1088 = vmatprep.subr.bf16.mxu0 %v7526_v30  ;;  %v7541_v41 = vld [vmem:[%s8299_s12 + $0x80] ss:$12 sps:$4 sm:$0xff]   ;;  %v7544_v44 = vld [vmem:[%s8299_s12 + $0x90] ss:$12 sps:$4 sm:$0xff]   ;;  %v7545_v45 = vld [vmem:[%s8299_s12 + $0x98] ss:$12 sps:$4 sm:$0xff]  }
 0x1e2   : > { %v7546_v46 = vld [vmem:[%s8299_s12 + $0xac] ss:$12 sps:$4 sm:$0xff]   ;;  %v7548_v47 = vld [vmem:[%s8299_s12 + $0xa8] ss:$12 sps:$4 sm:$0xff]   ;;  %v7549_v48 = vld [vmem:[%s8299_s12 + $0xb0] ss:$12 sps:$4 sm:$0xff]  }
 0x1e3   : > { %890 = vadd.xlane.f32.xlu0 %v886_v14  ;;  %v913_v57 = vsub.s32 0, %v8378_v56  ;;  %v887_v58 = vld [vmem:[%s8293_s22] sm:$0x3f]  ;;  %v919_v62 = vsub.s32 1, %v8378_v56  ;;  %s7950_s28 = smov 96   ;;  %s7951_s11 = smov 112  }
 0x1e4   : > { %1089 = vmatpush1.bf16.msra.mxu0 %v7528_v31  ;;  %7135 = vmatpush3.bf16.msra.mxu1 %v7529_v32  ;;  %s7952_s12 = smov 80   ;;  %s7953_s20 = smov 64   ;;  %v7957_v15 = vmov 1983009808   ;;  %v7958_v18 = vmov 1934713408  }
 0x1e5   : > { %7136 = vmatprep.subr.bf16.mxu1 %v7947_v17  ;;  %1090 = vmatprep.subr.bf16.mxu0 %v7530_v33  ;;  %v914_v61 = vrot.slane %v887_v58, %v913_v57  ;;  %v920_v2 = vrot.slane %v887_v58, %v919_v62  ;;  %s7954_s24 = smov 32   ;;  %s7955_s4 = smov 48   ;;  %v1303_v16 = vunpack.c.l.s4 %v7957_v15  ;;  %v1367_v19 = vunpack.c.l.s4 %v7958_v18 }
 0x1e6   : > { %s7956_s10 = smov 16   ;;  %vm2932_vm2 = vcmask 130048   ;;  %vm4165_vm3 = vcmask 64512   ;;  %vm6112_vm4 = vcmask 261120   ;;  %vm6115_vm5 = vcmask 392192   ;;  %p7018_p10 = scmp.ne.s32.totalorder %s8139_s18, 2 }
 0x1e7   : > { %vm6118_vm6 = vcmask 523264   ;;  %vm6121_vm7 = vcmask 654336   ;;  %vm6124_vm8 = vcmask 785408   ;;  %vm6127_vm9 = vcmask 916480  }
 0x1e8   : > { %1091 = vmatpush1.bf16.msra.mxu0 %v7532_v34  ;;  %7137 = vmatpush3.bf16.msra.mxu1 %v7533_v35 }
 0x1e9   : > { %7138 = vmatprep.subr.bf16.mxu1 %v7947_v17  ;;  %1092 = vmatprep.subr.bf16.mxu0 %v7534_v36 }
 0x1ec   : > { %1093 = vmatpush1.bf16.msra.mxu0 %v7536_v37  ;;  %7139 = vmatpush3.bf16.msra.mxu1 %v7537_v38 }
 0x1ed   : > { %1094 = vmatprep.subr.bf16.mxu0 %v7538_v39  ;;  %7140 = vmatprep.subr.bf16.mxu1 %v7947_v17 }
 0x1f0   : > { %1095 = vmatpush1.bf16.msra.mxu0 %v7540_v40  ;;  %7141 = vmatpush3.bf16.msra.mxu1 %v7541_v41 }
 0x1f1   : > { %1096 = vmatprep.subr.bf16.mxu0 %v7542_v42  ;;  %7142 = vmatprep.subr.bf16.mxu1 %v7947_v17 }
 0x1f4   : > { %1097 = vmatpush1.bf16.msra.mxu0 %v7544_v44  ;;  %7143 = vmatpush3.bf16.msra.mxu1 %v7545_v45 }
 0x1f5   : > { %1098 = vmatprep.subr.bf16.mxu0 %v7546_v46  ;;  %7144 = vmatprep.subr.bf16.mxu1 %v7947_v17 }
 0x1f8   : > { %1099 = vmatpush1.bf16.msra.mxu0 %v7548_v47  ;;  %7145 = vmatpush3.bf16.msra.mxu1 %v7549_v48 }
 0x1f9   : > { %7150 = vmatprep.subr.mxu1 %v7947_v17  ;;  %7190 = vmatprep.subr.mxu0 %v7947_v17 }
 0x26c   : > { %v889_v20 = vpop.xlane.xlu0 %888 }
 0x26d   : > { %v893_v21 = vmul.f32 0.0078125, %v889_v20  ;;  %v1304_v20 = vunpack.c.0.s8 %v1303_v16 }
 0x26f   : > { %v8339_v22 = vsub.f32 %v885_v13, %v893_v21 }
 0x270   : > { %v891_v23 = vpop.xlane.xlu0 %890 }
 0x271   : > { %v894_v24 = vmul.f32 0.0078125, %v891_v23  ;;  %v897_v25 = vmul.f32 %v8339_v22, %v8339_v22  ;;  %v1368_v23 = vunpack.c.0.s8 %v1367_v19 }
 0x273   : > { %v8343_v26 = vsub.f32 %v886_v14, %v894_v24  ;;  %899 = vadd.xlane.f32.xlu1 %v897_v25  ;;  %v8478_v24 = vsub.s32 %v1304_v20, %v8378_v56  ;;  %v8483_v31 = vsub.s32 %v1368_v23, %v8378_v56 }
 0x275   : > { %v898_v27 = vmul.f32 %v8343_v26, %v8343_v26 }
 0x277   : > { %901 = vadd.xlane.f32.xlu1 %v898_v27 }
 0x300   : > { %v900_v49 = vpop.xlane.xlu1 %899 }
 0x301   : > { %v903_v50 = vmul.f32 0.0078125, %v900_v49 }
 0x303   : > { %v905_v51 = vadd.f32 1e-05, %v903_v50 }
 0x304   : > { %v902_v52 = vpop.xlane.xlu1 %901 }
 0x305   : > { %7598 = vrsqrt.f32 %v905_v51  ;;  %v904_v54 = vmul.f32 0.0078125, %v902_v52 }
 0x307   : > { %v906_v55 = vadd.f32 1e-05, %v904_v54 }
 0x309   : > { %7600 = vrsqrt.f32 %v906_v55 }
 0x30f   : > { %v7599_v59 = vpop.eup %7598 }
 0x310   : > { %v909_v60 = vmul.f32 %v7599_v59, %v8339_v22 }
 0x312   : > { %v915_v1 = vmul.f32 %v914_v61, %v909_v60 }
 0x313   : > { %v7601_v63 = vpop.eup %7600 }
 0x314   : > { %v910_v0 = vmul.f32 %v7601_v63, %v8343_v26  ;;  %v921_v4 = vadd.f32 %v920_v2, %v915_v1 }
 0x316   : > { %v916_v3 = vmul.f32 %v914_v61, %v910_v0 }
 0x318   : > { %v922_v5 = vadd.f32 %v920_v2, %v916_v3 }
 0x31a   : > { %v923_v6 = vpack.c.bf16 %v922_v5, %v921_v4 }
 0x31c   : > { %1117 = vmatmul.mubr.bf16.vlgmr.msra.gmra.mrb[0].mxu0 %v923_v6  ;;  %7147 = vmatmul.mubr.bf16.vlgmr.msra.gmra.mrb[0].mxu1 %v923_v6 }
 0x31d   : > { %7152 = vmatprep.mubr.msk.f32.mxu1 %vm7949_vm1, %v7947_v17  ;;  %7192 = vmatprep.mubr.msk.f32.mxu0 %vm7949_vm1, %v7947_v17 }
 0x3ef   : > { %v8393_v7 = vpop.f32.mrb[0].mxu0  ;;  %v8395_v8 = vpop.f32.mrb[0].mxu1 }
 0x3f0   : > { %v7148_v9 = vpop.f32.mrb[1].mxu1  ;;  %1176 = vrot.lane.b32.xlu0 %v8393_v7, %s7950_s28  ;;  %1170 = vrot.lane.b32.xlu1 %v8393_v7, %s7951_s11  ;;  %v8401_v10 = vpop.f32.mrb[1].mxu0 }
 0x3f1   : > { %v8403_v11 = vpop.f32.mrb[2].mxu0  ;;  %v8405_v12 = vpop.f32.mrb[2].mxu1 }
 0x3f2   : > { %v8407_v13 = vpop.f32.mrb[3].mxu0  ;;  %v7149_v14 = vpop.f32.mrb[3].mxu1 }
 0x3f4   : > { %1182 = vrot.lane.b32.xlu1 %v8393_v7, %s7952_s12  ;;  %1214 = vrot.lane.b32.xlu0 %v8401_v10, %s7951_s11 }
 0x3f8   : > { %1220 = vrot.lane.b32.xlu1 %v8401_v10, %s7950_s28  ;;  %1188 = vrot.lane.b32.xlu0 %v8393_v7, %s7953_s20 }
 0x3fc   : > { %1226 = vrot.lane.b32.xlu1 %v8401_v10, %s7952_s12  ;;  %1200 = vrot.lane.b32.xlu0 %v8393_v7, %s7954_s24 }
 0x400   : > { %1194 = vrot.lane.b32.xlu1 %v8393_v7, %s7955_s4  ;;  %1232 = vrot.lane.b32.xlu0 %v8401_v10, %s7953_s20 }
 0x404   : > { %1206 = vrot.lane.b32.xlu1 %v8393_v7, %s7956_s10  ;;  %1244 = vrot.lane.b32.xlu0 %v8401_v10, %s7954_s24 }
 0x408   : > { %1238 = vrot.lane.b32.xlu1 %v8401_v10, %s7955_s4  ;;  %1178 = vrot.lane.b32.xlu0 %v8403_v11, %s7950_s28 }
 0x40c   : > { %1250 = vrot.lane.b32.xlu1 %v8401_v10, %s7956_s10  ;;  %1190 = vrot.lane.b32.xlu0 %v8403_v11, %s7953_s20 }
 0x410   : > { %1172 = vrot.lane.b32.xlu1 %v8403_v11, %s7951_s11  ;;  %1216 = vrot.lane.b32.xlu0 %v8407_v13, %s7951_s11 }
 0x414   : > { %1184 = vrot.lane.b32.xlu1 %v8403_v11, %s7952_s12  ;;  %1228 = vrot.lane.b32.xlu0 %v8407_v13, %s7952_s12 }
 0x418   : > { %1196 = vrot.lane.b32.xlu1 %v8403_v11, %s7955_s4  ;;  %1234 = vrot.lane.b32.xlu0 %v8407_v13, %s7953_s20 }
 0x41c   : > { %1222 = vrot.lane.b32.xlu1 %v8407_v13, %s7950_s28  ;;  %1246 = vrot.lane.b32.xlu0 %v8407_v13, %s7954_s24 }
 0x420   : > { %1240 = vrot.lane.b32.xlu1 %v8407_v13, %s7955_s4  ;;  %1202 = vrot.lane.b32.xlu0 %v8403_v11, %s7954_s24 }
 0x424   : > { %1252 = vrot.lane.b32.xlu1 %v8407_v13, %s7956_s10  ;;  %1258 = vrot.lane.b32.xlu0 %v8395_v8, %s7951_s11 }
 0x428   : > { %1208 = vrot.lane.b32.xlu1 %v8403_v11, %s7956_s10  ;;  %1282 = vrot.lane.b32.xlu0 %v8395_v8, %s7955_s4 }
 0x42c   : > { %1264 = vrot.lane.b32.xlu1 %v8395_v8, %s7950_s28 }
 0x430   : > { %1270 = vrot.lane.b32.xlu1 %v8395_v8, %s7952_s12 }
 0x434   : > { %1276 = vrot.lane.b32.xlu1 %v8395_v8, %s7953_s20 }
 0x438   : > { %1288 = vrot.lane.b32.xlu1 %v8395_v8, %s7954_s24 }
 0x43c   : > { %1294 = vrot.lane.b32.xlu1 %v8395_v8, %s7956_s10 }
 0x440   : > { %1260 = vrot.lane.b32.xlu1 %v8405_v12, %s7951_s11 }
 0x462   : > { %v1177_v21 = vpop.permute.xlu0 %1176  ;;  %v1171_v22 = vpop.permute.xlu1 %1170 }
 0x463   : > { %v1300_v25 = vcombine.low %v8393_v7, %v1177_v21  ;;  %v1301_v26 = vcombine.high %v8393_v7, %v1177_v21 }
 0x465   : > { %v1308_v32 = vrot.slane %v1300_v25, %v8478_v24  ;;  %v1315_v33 = vrot.slane %v1301_v26, %v8478_v24 }
 0x466   : > { %v1183_v27 = vpop.permute.xlu1 %1182  ;;  %v1215_v28 = vpop.permute.xlu0 %1214 }
 0x467   : > { %v1316_v29 = vcombine.low %v1171_v22, %v1183_v27  ;;  %v1317_v30 = vcombine.high %v1171_v22, %v1183_v27 }
 0x469   : > { %v1324_v34 = vrot.slane %v1316_v29, %v8478_v24  ;;  %v1331_v35 = vrot.slane %v1317_v30, %v8478_v24 }
 0x46a   : > { %v1221_v36 = vpop.permute.xlu1 %1220  ;;  %v1189_v37 = vpop.permute.xlu0 %1188 }
 0x46b   : > { %v1364_v38 = vcombine.low %v1308_v32, %v1324_v34  ;;  %v1365_v39 = vcombine.high %v1308_v32, %v1324_v34  ;;  %v1380_v40 = vcombine.low %v1315_v33, %v1331_v35  ;;  %v1381_v41 = vcombine.high %v1315_v33, %v1331_v35 }
 0x46c   : > { %v1436_v42 = vcombine.low %v8401_v10, %v1221_v36  ;;  %v1437_v44 = vcombine.high %v8401_v10, %v1221_v36 }
 0x46d   : > { %v1372_v45 = vrot.slane %v1364_v38, %v8483_v31  ;;  %v1379_v46 = vrot.slane %v1365_v39, %v8483_v31  ;;  %v1388_v47 = vrot.slane %v1380_v40, %v8483_v31  ;;  %v1395_v48 = vrot.slane %v1381_v41, %v8483_v31 }
 0x46e   : > { %v1444_v49 = vrot.slane %v1436_v42, %v8478_v24  ;;  %v1451_v50 = vrot.slane %v1437_v44, %v8478_v24  ;;  %v1227_v51 = vpop.permute.xlu1 %1226  ;;  %v1201_v52 = vpop.permute.xlu0 %1200 }
 0x46f   : > { %v6866_v53 = vcombine.low %v1372_v45, %v1379_v46  ;;  %v6868_v54 = vcombine.high %v1372_v45, %v1379_v46  ;;  %v6870_v55 = vcombine.low %v1388_v47, %v1395_v48  ;;  %v6872_v58 = vcombine.high %v1388_v47, %v1395_v48 }
 0x470   : > { %v1452_v59 = vcombine.low %v1215_v28, %v1227_v51  ;;  %v1453_v60 = vcombine.high %v1215_v28, %v1227_v51  ;;  %v1332_v61 = vcombine.low %v1189_v37, %v1201_v52  ;;  %v1333_v63 = vcombine.high %v1189_v37, %v1201_v52 }
 0x471   : > { %v2124_v0 = vrot.slane %v6866_v53, %v8478_v24  ;;  %v2140_v1 = vrot.slane %v6868_v54, %v8478_v24  ;;  %v2156_v2 = vrot.slane %v6870_v55, %v8478_v24  ;;  %v2172_v3 = vrot.slane %v6872_v58, %v8478_v24 }
 0x472   : > { %v1460_v4 = vrot.slane %v1452_v59, %v8478_v24  ;;  %v1467_v5 = vrot.slane %v1453_v60, %v8478_v24  ;;  %v1340_v6 = vrot.slane %v1332_v61, %v8478_v24  ;;  %v1347_v7 = vrot.slane %v1333_v63, %v8478_v24  ;;  %v1195_v9 = vpop.permute.xlu1 %1194  ;;  %v1233_v10 = vpop.permute.xlu0 %1232 }
 0x473   : > { %v2180_v14 = vcombine.low %v2124_v0, %v2140_v1  ;;  %v2181_v15 = vcombine.high %v2124_v0, %v2140_v1  ;;  %v2212_v16 = vcombine.low %v2156_v2, %v2172_v3  ;;  %v2213_v18 = vcombine.high %v2156_v2, %v2172_v3 }
 0x474   : > { %v1500_v19 = vcombine.low %v1444_v49, %v1460_v4  ;;  %v1501_v20 = vcombine.high %v1444_v49, %v1460_v4  ;;  %v1516_v21 = vcombine.low %v1451_v50, %v1467_v5  ;;  %v1517_v22 = vcombine.high %v1451_v50, %v1467_v5 }
 0x475   : > { %v8506_v23 = vrot.slane %v2180_v14, %v8483_v31  ;;  %v8509_v25 = vrot.slane %v2212_v16, %v8483_v31  ;;  %v8512_v26 = vrot.slane %v2181_v15, %v8483_v31  ;;  %v8515_v27 = vrot.slane %v2213_v18, %v8483_v31 }
 0x476   : > { %v1508_v28 = vrot.slane %v1500_v19, %v8483_v31  ;;  %v1515_v29 = vrot.slane %v1501_v20, %v8483_v31  ;;  %v1524_v30 = vrot.slane %v1516_v21, %v8483_v31  ;;  %v1531_v32 = vrot.slane %v1517_v22, %v8483_v31  ;;  %v1207_v33 = vpop.permute.xlu1 %1206  ;;  %v1245_v34 = vpop.permute.xlu0 %1244 }
 0x477   : > { %v1348_v35 = vcombine.low %v1195_v9, %v1207_v33  ;;  %v1349_v36 = vcombine.high %v1195_v9, %v1207_v33  ;;  %v1468_v37 = vcombine.low %v1233_v10, %v1245_v34  ;;  %v1469_v38 = vcombine.high %v1233_v10, %v1245_v34 }
 0x478   : > { %v6874_v39 = vcombine.low %v1508_v28, %v1515_v29  ;;  %v6876_v40 = vcombine.high %v1508_v28, %v1515_v29  ;;  %v6878_v41 = vcombine.low %v1524_v30, %v1531_v32  ;;  %v6880_v42 = vcombine.high %v1524_v30, %v1531_v32 }
 0x479   : > { %v1356_v44 = vrot.slane %v1348_v35, %v8478_v24  ;;  %v1363_v45 = vrot.slane %v1349_v36, %v8478_v24  ;;  %v1476_v46 = vrot.slane %v1468_v37, %v8478_v24  ;;  %v1483_v47 = vrot.slane %v1469_v38, %v8478_v24 }
 0x47a   : > { %v2260_v48 = vrot.slane %v6874_v39, %v8478_v24  ;;  %v2276_v49 = vrot.slane %v6876_v40, %v8478_v24  ;;  %v2292_v50 = vrot.slane %v6878_v41, %v8478_v24  ;;  %v2308_v51 = vrot.slane %v6880_v42, %v8478_v24  ;;  %v1239_v52 = vpop.permute.xlu1 %1238  ;;  %v1179_v53 = vpop.permute.xlu0 %1178 }
 0x47b   : > { %v1396_v54 = vcombine.low %v1340_v6, %v1356_v44  ;;  %v1397_v55 = vcombine.high %v1340_v6, %v1356_v44  ;;  %v1412_v58 = vcombine.low %v1347_v7, %v1363_v45  ;;  %v1413_v59 = vcombine.high %v1347_v7, %v1363_v45 }
 0x47c   : > { %v2316_v60 = vcombine.low %v2260_v48, %v2276_v49  ;;  %v2317_v61 = vcombine.high %v2260_v48, %v2276_v49  ;;  %v2348_v63 = vcombine.low %v2292_v50, %v2308_v51  ;;  %v2349_v0 = vcombine.high %v2292_v50, %v2308_v51 }
 0x47d   : > { %v1404_v1 = vrot.slane %v1396_v54, %v8483_v31  ;;  %v1411_v2 = vrot.slane %v1397_v55, %v8483_v31  ;;  %v1420_v3 = vrot.slane %v1412_v58, %v8483_v31  ;;  %v1427_v4 = vrot.slane %v1413_v59, %v8483_v31 }
 0x47e   : > { %v1708_v5 = vcombine.low %v8403_v11, %v1179_v53  ;;  %v1709_v9 = vcombine.high %v8403_v11, %v1179_v53  ;;  %v1251_v10 = vpop.permute.xlu1 %1250  ;;  %v8535_v6 = vpop.permute.xlu0 %1190  ;;  %v2324_v7 = vrot.slane %v2316_v60, %v8483_v31  ;;  %v2356_v14 = vrot.slane %v2348_v63, %v8483_v31 }
 0x47f   : > { %v6867_v15 = vcombine.low %v1404_v1, %v1411_v2  ;;  %v6869_v16 = vcombine.high %v1404_v1, %v1411_v2  ;;  %v6871_v18 = vcombine.low %v1420_v3, %v1427_v4  ;;  %v6873_v19 = vcombine.high %v1420_v3, %v1427_v4 }
 0x480   : > { %v8540_v20 = vrot.slane %v1708_v5, %v8478_v24  ;;  %v8543_v21 = vrot.slane %v1709_v9, %v8478_v24  ;;  %v1484_v22 = vcombine.low %v1239_v52, %v1251_v10  ;;  %v1485_v28 = vcombine.high %v1239_v52, %v1251_v10 }
 0x481   : > { %v8546_v11 = vrot.slane %v6867_v15, %v8478_v24  ;;  %v8549_v29 = vrot.slane %v6869_v16, %v8478_v24  ;;  %v8552_v30 = vrot.slane %v6871_v18, %v8478_v24  ;;  %v8555_v32 = vrot.slane %v6873_v19, %v8478_v24 }
 0x482   : > { %v1492_v33 = vrot.slane %v1484_v22, %v8478_v24  ;;  %v1499_v34 = vrot.slane %v1485_v28, %v8478_v24  ;;  %v2380_v35 = vcombine.low %v2324_v7, %v2356_v14  ;;  %v1173_v36 = vpop.permute.xlu1 %1172  ;;  %v1217_v37 = vpop.permute.xlu0 %1216  ;;  %v2244_v38 = vcombine.low %v8506_v23, %v8509_v25 }
 0x483   : > { %v2196_v39 = vcombine.low %v8546_v11, %v8549_v29  ;;  %v2197_v40 = vcombine.high %v8546_v11, %v8549_v29  ;;  %v2228_v41 = vcombine.low %v8552_v30, %v8555_v32  ;;  %v2229_v42 = vcombine.high %v8552_v30, %v8555_v32 }
 0x484   : > { %v1532_v44 = vcombine.low %v1476_v46, %v1492_v33  ;;  %v1533_v45 = vcombine.high %v1476_v46, %v1492_v33  ;;  %v1548_v48 = vcombine.low %v1483_v47, %v1499_v34  ;;  %v1549_v49 = vcombine.high %v1483_v47, %v1499_v34  ;;  %7151 = vmatpush3.xpose.msk.msra.mxu1 %vm2932_vm2, %v2380_v35 }
 0x485   : > { %7155 = vmatprep.subr.mxu1 %v7947_v17  ;;  %v2381_v50 = vcombine.high %v2324_v7, %v2356_v14  ;;  %v2245_v51 = vcombine.high %v8506_v23, %v8509_v25  ;;  %v8574_v52 = vrot.slane %v2317_v61, %v8483_v31  ;;  %v8577_v53 = vrot.slane %v2349_v0, %v8483_v31 }
 0x486   : > { %v1540_v54 = vrot.slane %v1532_v44, %v8483_v31  ;;  %v1547_v46 = vrot.slane %v1533_v45, %v8483_v31  ;;  %v1556_v47 = vrot.slane %v1548_v48, %v8483_v31  ;;  %v1563_v55 = vrot.slane %v1549_v49, %v8483_v31  ;;  %v1185_v58 = vpop.permute.xlu1 %1184  ;;  %v1229_v59 = vpop.permute.xlu0 %1228 }
 0x487   : > { %7153 = vmatmul.mubr.msk.f32.vlgmr.msra.gmra.mrb[4].mxu1 %vm2932_vm2, %v2244_v38  ;;  %v1724_v60 = vcombine.low %v1173_v36, %v1185_v58  ;;  %v1725_v23 = vcombine.high %v1173_v36, %v1185_v58  ;;  %v1860_v25 = vcombine.low %v1217_v37, %v1229_v59  ;;  %v1861_v61 = vcombine.high %v1217_v37, %v1229_v59 }
 0x488   : > { %v6875_v63 = vcombine.low %v1540_v54, %v1547_v46  ;;  %v6877_v1 = vcombine.high %v1540_v54, %v1547_v46  ;;  %v6879_v0 = vcombine.low %v1556_v47, %v1563_v55  ;;  %v6881_v2 = vcombine.high %v1556_v47, %v1563_v55  ;;  %7156 = vmatpush3.xpose.msk.msra.mxu1 %vm2932_vm2, %v2381_v50 }
 0x489   : > { %v1732_v3 = vrot.slane %v1724_v60, %v8478_v24  ;;  %v1739_v4 = vrot.slane %v1725_v23, %v8478_v24  ;;  %v8588_v5 = vrot.slane %v1860_v25, %v8478_v24  ;;  %v8591_v9 = vrot.slane %v1861_v61, %v8478_v24  ;;  %7157 = vmatprep.mubr.msk.f32.mxu1 %vm7949_vm1, %v7947_v17 }
 0x48a   : > { %v8596_v10 = vrot.slane %v6875_v63, %v8478_v24  ;;  %v8599_v7 = vrot.slane %v6877_v1, %v8478_v24  ;;  %v8602_v14 = vrot.slane %v6879_v0, %v8478_v24  ;;  %v8605_v15 = vrot.slane %v6881_v2, %v8478_v24  ;;  %7160 = vmatprep.subr.mxu1 %v7947_v17  ;;  %v8608_v16 = vpop.permute.xlu1 %1196  ;;  %v1235_v18 = vpop.permute.xlu0 %1234 }
 0x48b   : > { %v1772_v19 = vcombine.low %v8540_v20, %v1732_v3  ;;  %v1773_v22 = vcombine.high %v8540_v20, %v1732_v3  ;;  %v1788_v28 = vcombine.low %v8543_v21, %v1739_v4  ;;  %v1789_v33 = vcombine.high %v8543_v21, %v1739_v4  ;;  %7158 = vmatmul.mubr.msk.f32.vlgmr.msra.gmra.mrb[6].mxu1 %vm2932_vm2, %v2245_v51 }
 0x48c   : > { %v2332_v34 = vcombine.low %v8596_v10, %v8599_v7  ;;  %v2333_v35 = vcombine.high %v8596_v10, %v8599_v7  ;;  %v2364_v36 = vcombine.low %v8602_v14, %v8605_v15  ;;  %v2365_v37 = vcombine.high %v8602_v14, %v8605_v15  ;;  %7162 = vmatprep.mubr.msk.f32.mxu1 %vm7949_vm1, %v7947_v17 }
 0x48d   : > { %v1780_v20 = vrot.slane %v1772_v19, %v8483_v31  ;;  %v1787_v21 = vrot.slane %v1773_v22, %v8483_v31  ;;  %v1796_v38 = vrot.slane %v1788_v28, %v8483_v31  ;;  %v1803_v44 = vrot.slane %v1789_v33, %v8483_v31 }
 0x48e   : > { %v2382_v45 = vcombine.low %v8574_v52, %v8577_v53  ;;  %v2246_v48 = vcombine.low %v8512_v26, %v8515_v27  ;;  %v2383_v49 = vcombine.high %v8574_v52, %v8577_v53  ;;  %v1223_v50 = vpop.permute.xlu1 %1222  ;;  %v1247_v51 = vpop.permute.xlu0 %1246  ;;  %v2247_v54 = vcombine.high %v8512_v26, %v8515_v27 }
 0x48f   : > { %v6890_v46 = vcombine.low %v1780_v20, %v1787_v21  ;;  %v6892_v47 = vcombine.high %v1780_v20, %v1787_v21  ;;  %v6894_v55 = vcombine.low %v1796_v38, %v1803_v44  ;;  %v6896_v58 = vcombine.high %v1796_v38, %v1803_v44 }
 0x490   : > { %7161 = vmatpush3.xpose.msk.msra.mxu1 %vm2932_vm2, %v2382_v45  ;;  %v1844_v59 = vcombine.low %v8407_v13, %v1223_v50  ;;  %v1845_v60 = vcombine.high %v8407_v13, %v1223_v50  ;;  %v1876_v23 = vcombine.low %v1235_v18, %v1247_v51  ;;  %v1877_v25 = vcombine.high %v1235_v18, %v1247_v51 }
 0x491   : > { %v8641_v61 = vrot.slane %v6890_v46, %v8478_v24  ;;  %v8644_v52 = vrot.slane %v6892_v47, %v8478_v24  ;;  %v8647_v26 = vrot.slane %v6894_v55, %v8478_v24  ;;  %v8650_v27 = vrot.slane %v6896_v58, %v8478_v24  ;;  %7165 = vmatprep.subr.mxu1 %v7947_v17 }
 0x492   : > { %v1852_v53 = vrot.slane %v1844_v59, %v8478_v24  ;;  %v1859_v13 = vrot.slane %v1845_v60, %v8478_v24  ;;  %v8656_v63 = vrot.slane %v1876_v23, %v8478_v24  ;;  %v8659_v1 = vrot.slane %v1877_v25, %v8478_v24  ;;  %v1241_v0 = vpop.permute.xlu1 %1240  ;;  %v1203_v2 = vpop.permute.xlu0 %1202 }
 0x493   : > { %v2588_v3 = vcombine.low %v8641_v61, %v8644_v52  ;;  %v2589_v4 = vcombine.high %v8641_v61, %v8644_v52  ;;  %v2620_v18 = vcombine.low %v8647_v26, %v8650_v27  ;;  %v2621_v19 = vcombine.high %v8647_v26, %v8650_v27  ;;  %7163 = vmatmul.mubr.msk.f32.vlgmr.msra.gmra.mrb[8].mxu1 %vm2932_vm2, %v2246_v48 }
 0x494   : > { %7166 = vmatpush3.xpose.msk.msra.mxu1 %vm2932_vm2, %v2383_v49  ;;  %v1908_v22 = vcombine.low %v1852_v53, %v8588_v5  ;;  %v1909_v28 = vcombine.high %v1852_v53, %v8588_v5  ;;  %v1924_v33 = vcombine.low %v1859_v13, %v8591_v9  ;;  %v1925_v20 = vcombine.high %v1859_v13, %v8591_v9 }
 0x495   : > { %7167 = vmatprep.mubr.msk.f32.mxu1 %vm7949_vm1, %v7947_v17  ;;  %7170 = vmatprep.subr.mxu1 %v7947_v17  ;;  %v2340_v21 = vrot.slane %v2332_v34, %v8483_v31  ;;  %v2372_v38 = vrot.slane %v2364_v36, %v8483_v31  ;;  %v1740_v44 = vcombine.low %v8535_v6, %v1203_v2 }
 0x496   : > { %v1916_v45 = vrot.slane %v1908_v22, %v8483_v31  ;;  %v1923_v48 = vrot.slane %v1909_v28, %v8483_v31  ;;  %v1932_v5 = vrot.slane %v1924_v33, %v8483_v31  ;;  %v1939_v49 = vrot.slane %v1925_v20, %v8483_v31  ;;  %v1253_v9 = vpop.permute.xlu1 %1252 }
 0x497   : > { %7168 = vmatmul.mubr.msk.f32.vlgmr.msra.gmra.mrb[10].mxu1 %vm2932_vm2, %v2247_v54  ;;  %v2384_v50 = vcombine.low %v2340_v21, %v2372_v38  ;;  %v1741_v51 = vcombine.high %v8535_v6, %v1203_v2  ;;  %v8688_v34 = vrot.slane %v1740_v44, %v8478_v24  ;;  %v2204_v36 = vrot.slane %v2196_v39, %v8483_v31 }
 0x498   : > { %v6898_v46 = vcombine.low %v1916_v45, %v1923_v48  ;;  %v6900_v47 = vcombine.high %v1916_v45, %v1923_v48  ;;  %v6902_v55 = vcombine.low %v1932_v5, %v1939_v49  ;;  %v6904_v58 = vcombine.high %v1932_v5, %v1939_v49  ;;  %7172 = vmatprep.mubr.msk.f32.mxu1 %vm7949_vm1, %v7947_v17 }
 0x499   : > { %7171 = vmatpush3.xpose.msk.msra.mxu1 %vm2932_vm2, %v2384_v50  ;;  %v1755_v54 = vrot.slane %v1741_v51, %v8478_v24  ;;  %v2236_v6 = vrot.slane %v2228_v41, %v8483_v31  ;;  %v2385_v59 = vcombine.high %v2340_v21, %v2372_v38  ;;  %v1892_v60 = vcombine.low %v1241_v0, %v1253_v9 }
 0x49a   : > { %v8703_v39 = vrot.slane %v6898_v46, %v8478_v24  ;;  %v8706_v23 = vrot.slane %v6900_v47, %v8478_v24  ;;  %v8709_v25 = vrot.slane %v6902_v55, %v8478_v24  ;;  %v8712_v53 = vrot.slane %v6904_v58, %v8478_v24  ;;  %7175 = vmatprep.subr.mxu1 %v7947_v17  ;;  %v1209_v13 = vpop.permute.xlu1 %1208 }
 0x49b   : > { %v2248_v2 = vcombine.low %v2204_v36, %v2236_v6  ;;  %v1893_v22 = vcombine.high %v1241_v0, %v1253_v9  ;;  %v1900_v41 = vrot.slane %v1892_v60, %v8478_v24  ;;  %v2249_v28 = vcombine.high %v2204_v36, %v2236_v6 }
 0x49c   : > { %v2724_v33 = vcombine.low %v8703_v39, %v8706_v23  ;;  %v2725_v20 = vcombine.high %v8703_v39, %v8706_v23  ;;  %v2756_v21 = vcombine.low %v8709_v25, %v8712_v53  ;;  %v2757_v38 = vcombine.high %v8709_v25, %v8712_v53 }
 0x49d   : > { %7173 = vmatmul.mubr.msk.f32.vlgmr.msra.gmra.mrb[12].mxu1 %vm2932_vm2, %v2248_v2  ;;  %v1907_v44 = vrot.slane %v1893_v22, %v8478_v24  ;;  %v1940_v0 = vcombine.low %v8656_v63, %v1900_v41  ;;  %v1941_v45 = vcombine.high %v8656_v63, %v1900_v41  ;;  %v8732_v48 = vrot.slane %v2333_v35, %v8483_v31 }
 0x49e   : > { %7176 = vmatpush3.xpose.msk.msra.mxu1 %vm2932_vm2, %v2385_v59  ;;  %7177 = vmatprep.mubr.msk.f32.mxu1 %vm7949_vm1, %v7947_v17  ;;  %v8741_v5 = vrot.slane %v2365_v37, %v8483_v31  ;;  %v1756_v49 = vcombine.low %v8608_v16, %v1209_v13  ;;  %v1757_v63 = vcombine.high %v8608_v16, %v1209_v13  ;;  %v1265_v9 = vpop.permute.xlu1 %1264 }
 0x49f   : > { %v1948_v10 = vrot.slane %v1940_v0, %v8483_v31  ;;  %v1955_v7 = vrot.slane %v1941_v45, %v8483_v31  ;;  %v1956_v35 = vcombine.low %v8659_v1, %v1907_v44  ;;  %v1957_v50 = vcombine.high %v8659_v1, %v1907_v44  ;;  %7180 = vmatprep.subr.mxu1 %v7947_v17 }
 0x4a0   : > { %v2386_v14 = vcombine.low %v8732_v48, %v8741_v5  ;;  %v1764_v15 = vrot.slane %v1756_v49, %v8478_v24  ;;  %v1771_v37 = vrot.slane %v1757_v63, %v8478_v24  ;;  %v8758_v16 = vrot.slane %v2197_v40, %v8483_v31 }
 0x4a1   : > { %v1964_v51 = vrot.slane %v1956_v35, %v8483_v31  ;;  %v1971_v36 = vrot.slane %v1957_v50, %v8483_v31  ;;  %v6899_v1 = vcombine.low %v1948_v10, %v1955_v7  ;;  %v6901_v46 = vcombine.high %v1948_v10, %v1955_v7  ;;  %7178 = vmatmul.mubr.msk.f32.vlgmr.msra.gmra.mrb[14].mxu1 %vm2932_vm2, %v2249_v28 }
 0x4a2   : > { %7181 = vmatpush3.xpose.msk.msra.mxu1 %vm2932_vm2, %v2386_v14  ;;  %v1804_v47 = vcombine.low %v8688_v34, %v1764_v15  ;;  %v1805_v55 = vcombine.high %v8688_v34, %v1764_v15  ;;  %v1820_v58 = vcombine.low %v1755_v54, %v1771_v37  ;;  %v1821_v6 = vcombine.high %v1755_v54, %v1771_v37  ;;  %v1271_v54 = vpop.permute.xlu1 %1270 }
 0x4a3   : > { %v8767_v11 = vrot.slane %v6899_v1, %v8478_v24  ;;  %v8770_v29 = vrot.slane %v6901_v46, %v8478_v24  ;;  %v6903_v40 = vcombine.low %v1964_v51, %v1971_v36  ;;  %v6905_v59 = vcombine.high %v1964_v51, %v1971_v36  ;;  %7182 = vmatprep.mubr.msk.f32.mxu1 %vm7949_vm1, %v7947_v17 }
 0x4a4   : > { %v1812_v60 = vrot.slane %v1804_v47, %v8483_v31  ;;  %v1819_v13 = vrot.slane %v1805_v55, %v8483_v31  ;;  %v1828_v2 = vrot.slane %v1820_v58, %v8483_v31  ;;  %v1835_v34 = vrot.slane %v1821_v6, %v8483_v31  ;;  %7185 = vmatprep.subr.mxu1 %v7947_v17  ;;  %v1259_v55 = vpop.permute.xlu0 %1258 }
 0x4a5   : > { %v8780_v22 = vrot.slane %v6903_v40, %v8478_v24  ;;  %v8783_v41 = vrot.slane %v6905_v59, %v8478_v24  ;;  %v2740_v28 = vcombine.low %v8767_v11, %v8770_v29  ;;  %v2741_v44 = vcombine.high %v8767_v11, %v8770_v29 }
 0x4a6   : > { %v6891_v0 = vcombine.low %v1812_v60, %v1819_v13  ;;  %v6893_v45 = vcombine.high %v1812_v60, %v1819_v13  ;;  %v6895_v49 = vcombine.low %v1828_v2, %v1835_v34  ;;  %v6897_v63 = vcombine.high %v1828_v2, %v1835_v34  ;;  %v8823_v47 = vpop.permute.xlu1 %1276 }
 0x4a7   : > { %v2772_v10 = vcombine.low %v8780_v22, %v8783_v41  ;;  %v2773_v7 = vcombine.high %v8780_v22, %v8783_v41  ;;  %v2243_v35 = vrot.slane %v2229_v42, %v8483_v31  ;;  %v2387_v50 = vcombine.high %v8732_v48, %v8741_v5 }
 0x4a8   : > { %v8800_v14 = vrot.slane %v6891_v0, %v8478_v24  ;;  %v8803_v15 = vrot.slane %v6893_v45, %v8478_v24  ;;  %v8806_v37 = vrot.slane %v6895_v49, %v8478_v24  ;;  %v8809_v51 = vrot.slane %v6897_v63, %v8478_v24 }
 0x4a9   : > { %v2250_v36 = vcombine.low %v8758_v16, %v2243_v35  ;;  %v1572_v30 = vcombine.low %v8395_v8, %v1265_v9  ;;  %v1573_v32 = vcombine.high %v8395_v8, %v1265_v9  ;;  %v2251_v42 = vcombine.high %v8758_v16, %v2243_v35 }
 0x4aa   : > { %v2604_v48 = vcombine.low %v8800_v14, %v8803_v15  ;;  %v2605_v5 = vcombine.high %v8800_v14, %v8803_v15  ;;  %v2636_v1 = vcombine.low %v8806_v37, %v8809_v51  ;;  %v2637_v46 = vcombine.high %v8806_v37, %v8809_v51  ;;  %v1289_v0 = vpop.permute.xlu1 %1288 }
 0x4ab   : > { %7183 = vmatmul.mubr.msk.f32.vlgmr.msra.gmra.mrb[16].mxu1 %vm2932_vm2, %v2250_v36  ;;  %v1580_v8 = vrot.slane %v1572_v30, %v8478_v24  ;;  %v1587_v9 = vrot.slane %v1573_v32, %v8478_v24  ;;  %v2732_v16 = vrot.slane %v2724_v33, %v8483_v31  ;;  %v2764_v58 = vrot.slane %v2756_v21, %v8483_v31 }
 0x4ac   : > { %7186 = vmatpush3.xpose.msk.msra.mxu1 %vm2932_vm2, %v2387_v50  ;;  %7187 = vmatprep.mubr.msk.f32.mxu1 %vm7949_vm1, %v7947_v17  ;;  %v1588_v6 = vcombine.low %v1259_v55, %v1271_v54  ;;  %v1589_v40 = vcombine.high %v1259_v55, %v1271_v54  ;;  %v2596_v59 = vrot.slane %v2588_v3, %v8483_v31 }
 0x4ad   : > { %7195 = vmatprep.subr.mxu1 %v7947_v17  ;;  %v2788_v33 = vcombine.low %v2732_v16, %v2764_v58  ;;  %v2789_v60 = vcombine.high %v2732_v16, %v2764_v58  ;;  %v2628_v21 = vrot.slane %v2620_v18, %v8483_v31  ;;  %v2739_v13 = vrot.slane %v2725_v20, %v8483_v31 }
 0x4ae   : > { %v1596_v2 = vrot.slane %v1588_v6, %v8478_v24  ;;  %v1603_v34 = vrot.slane %v1589_v40, %v8478_v24  ;;  %v2771_v3 = vrot.slane %v2757_v38, %v8483_v31  ;;  %v2603_v54 = vrot.slane %v2589_v4, %v8483_v31  ;;  %v1295_v58 = vpop.permute.xlu1 %1294 }
 0x4af   : > { %7188 = vmatmul.mubr.msk.f32.vlgmr.msra.gmra.mrb[18].mxu1 %vm2932_vm2, %v2251_v42  ;;  %7191 = vmatpush3.xpose.msk.msra.mxu0 %vm2932_vm2, %v2788_v33  ;;  %v2652_v18 = vcombine.low %v2596_v59, %v2628_v21  ;;  %v2653_v39 = vcombine.high %v2596_v59, %v2628_v21  ;;  %v2635_v23 = vrot.slane %v2621_v19, %v8483_v31  ;;  %v1283_v33 = vpop.permute.xlu0 %1282 }
 0x4b0   : > { %7196 = vmatpush3.xpose.msk.msra.mxu1 %vm2932_vm2, %v2789_v60  ;;  %v1636_v25 = vcombine.low %v1580_v8, %v1596_v2  ;;  %v1637_v53 = vcombine.high %v1580_v8, %v1596_v2  ;;  %v1652_v20 = vcombine.low %v1587_v9, %v1603_v34  ;;  %v1653_v38 = vcombine.high %v1587_v9, %v1603_v34 }
 0x4b1   : > { %7197 = vmatprep.mubr.msk.f32.mxu1 %vm7949_vm1, %v7947_v17  ;;  %7200 = vmatprep.subr.mxu0 %v7947_v17  ;;  %v2790_v61 = vcombine.low %v2739_v13, %v2771_v3  ;;  %v2791_v52 = vcombine.high %v2739_v13, %v2771_v3  ;;  %v2654_v4 = vcombine.low %v2603_v54, %v2635_v23 }
 0x4b2   : > { %v1644_v45 = vrot.slane %v1636_v25, %v8483_v31  ;;  %v1651_v26 = vrot.slane %v1637_v53, %v8483_v31  ;;  %v1660_v27 = vrot.slane %v1652_v20, %v8483_v31  ;;  %v1667_v19 = vrot.slane %v1653_v38, %v8483_v31  ;;  %7193 = vmatmul.mubr.msk.f32.vlgmr.msra.gmra.mrb[4].mxu0 %vm2932_vm2, %v2652_v18 }
 0x4b3   : > { %7198 = vmatmul.mubr.msk.f32.vlgmr.msra.gmra.mrb[20].mxu1 %vm2932_vm2, %v2653_v39  ;;  %7205 = vmatprep.subr.mxu1 %v7947_v17  ;;  %v2655_v49 = vcombine.high %v2603_v54, %v2635_v23  ;;  %v2748_v63 = vrot.slane %v2740_v28, %v8483_v31  ;;  %v2780_v35 = vrot.slane %v2772_v10, %v8483_v31 }
 0x4b4   : > { %v6882_v50 = vcombine.low %v1644_v45, %v1651_v26  ;;  %v6884_v36 = vcombine.high %v1644_v45, %v1651_v26  ;;  %v6886_v30 = vcombine.low %v1660_v27, %v1667_v19  ;;  %v6888_v32 = vcombine.high %v1660_v27, %v1667_v19  ;;  %7201 = vmatpush3.xpose.msk.msra.mxu0 %vm2932_vm2, %v2790_v61 }
 0x4b5   : > { %7206 = vmatpush3.xpose.msk.msra.mxu1 %vm2932_vm2, %v2791_v52  ;;  %7202 = vmatprep.mubr.msk.f32.mxu0 %vm7949_vm1, %v7947_v17  ;;  %v2792_v42 = vcombine.low %v2748_v63, %v2780_v35  ;;  %v2793_v55 = vcombine.high %v2748_v63, %v2780_v35  ;;  %v1604_v8 = vcombine.low %v8823_v47, %v1289_v0 }
 0x4b6   : > { %v8890_v9 = vrot.slane %v6882_v50, %v8478_v24  ;;  %v8893_v28 = vrot.slane %v6884_v36, %v8478_v24  ;;  %v8896_v10 = vrot.slane %v6886_v30, %v8478_v24  ;;  %v8899_v16 = vrot.slane %v6888_v32, %v8478_v24  ;;  %7207 = vmatprep.mubr.msk.f32.mxu1 %vm7949_vm1, %v7947_v17 }
 0x4b7   : > { %7203 = vmatmul.mubr.msk.f32.vlgmr.msra.gmra.mrb[6].mxu0 %vm2932_vm2, %v2654_v4  ;;  %7210 = vmatprep.subr.mxu0 %v7947_v17  ;;  %v1605_v6 = vcombine.high %v8823_v47, %v1289_v0  ;;  %v1612_v40 = vrot.slane %v1604_v8, %v8478_v24  ;;  %v2612_v59 = vrot.slane %v2604_v48, %v8483_v31 }
 0x4b8   : > { %7208 = vmatmul.mubr.msk.f32.vlgmr.msra.gmra.mrb[22].mxu1 %vm2932_vm2, %v2655_v49  ;;  %7215 = vmatprep.subr.mxu1 %v7947_v17  ;;  %v2644_v60 = vrot.slane %v2636_v1, %v8483_v31  ;;  %v2755_v47 = vrot.slane %v2741_v44, %v8483_v31  ;;  %v2787_v48 = vrot.slane %v2773_v7, %v8483_v31 }
 0x4b9   : > { %7211 = vmatpush3.xpose.msk.msra.mxu0 %vm2932_vm2, %v2792_v42  ;;  %7216 = vmatpush3.xpose.msk.msra.mxu1 %vm2932_vm2, %v2793_v55  ;;  %v1619_v21 = vrot.slane %v1605_v6, %v8478_v24  ;;  %v1620_v13 = vcombine.low %v1283_v33, %v1295_v58  ;;  %v1621_v2 = vcombine.high %v1283_v33, %v1295_v58 }
 0x4ba   : > { %7212 = vmatprep.mubr.msk.f32.mxu0 %vm7949_vm1, %v7947_v17  ;;  %7217 = vmatprep.mubr.msk.f32.mxu1 %vm7949_vm1, %v7947_v17  ;;  %v2656_v11 = vcombine.low %v2612_v59, %v2644_v60  ;;  %v2657_v29 = vcombine.high %v2612_v59, %v2644_v60  ;;  %v2794_v44 = vcombine.low %v2755_v47, %v2787_v48 }
 0x4bb   : > { %7220 = vmatprep.subr.mxu0 %v7947_v17  ;;  %7225 = vmatprep.subr.mxu1 %v7947_v17  ;;  %v2795_v22 = vcombine.high %v2755_v47, %v2787_v48  ;;  %v1628_v41 = vrot.slane %v1620_v13, %v8478_v24  ;;  %v1635_v7 = vrot.slane %v1621_v2, %v8478_v24 }
 0x4bc   : > { %7213 = vmatmul.mubr.msk.f32.vlgmr.msra.gmra.mrb[8].mxu0 %vm2932_vm2, %v2656_v11  ;;  %7218 = vmatmul.mubr.msk.f32.vlgmr.msra.gmra.mrb[24].mxu1 %vm2932_vm2, %v2657_v29  ;;  %v2619_v1 = vrot.slane %v2605_v5, %v8483_v31  ;;  %v2651_v34 = vrot.slane %v2637_v46, %v8483_v31  ;;  %v2452_v3 = vcombine.low %v8890_v9, %v8893_v28 }
 0x4bd   : > { %7221 = vmatpush3.xpose.msk.msra.mxu0 %vm2932_vm2, %v2794_v44  ;;  %7226 = vmatpush3.xpose.msk.msra.mxu1 %vm2932_vm2, %v2795_v22  ;;  %v1668_v54 = vcombine.low %v1612_v40, %v1628_v41  ;;  %v1669_v18 = vcombine.high %v1612_v40, %v1628_v41  ;;  %v1684_v39 = vcombine.low %v1619_v21, %v1635_v7 }
 0x4be   : > { %v1685_v23 = vcombine.high %v1619_v21, %v1635_v7  ;;  %7222 = vmatprep.mubr.msk.f32.mxu0 %vm7949_vm1, %v7947_v17  ;;  %7227 = vmatprep.mubr.msk.f32.mxu1 %vm7949_vm1, %v7947_v17  ;;  %v2658_v14 = vcombine.low %v2619_v1, %v2651_v34  ;;  %v2659_v15 = vcombine.high %v2619_v1, %v2651_v34 }
 0x4bf   : > { %v1676_v37 = vrot.slane %v1668_v54, %v8483_v31  ;;  %v1683_v51 = vrot.slane %v1669_v18, %v8483_v31  ;;  %v1692_v5 = vrot.slane %v1684_v39, %v8483_v31  ;;  %7230 = vmatprep.subr.mxu0 %v7947_v17  ;;  %7235 = vmatprep.subr.mxu1 %v7947_v17 }
 0x4c0   : > { %v1699_v46 = vrot.slane %v1685_v23, %v8483_v31  ;;  %7223 = vmatmul.mubr.msk.f32.vlgmr.msra.gmra.mrb[10].mxu0 %vm2932_vm2, %v2658_v14  ;;  %7228 = vmatmul.mubr.msk.f32.vlgmr.msra.gmra.mrb[26].mxu1 %vm2932_vm2, %v2659_v15  ;;  %v2460_v25 = vrot.slane %v2452_v3, %v8483_v31  ;;  %v2484_v53 = vcombine.low %v8896_v10, %v8899_v16 }
 0x4c1   : > { %v6883_v20 = vcombine.low %v1676_v37, %v1683_v51  ;;  %v6885_v38 = vcombine.high %v1676_v37, %v1683_v51  ;;  %7232 = vmatprep.mubr.msk.f32.mxu0 %vm7949_vm1, %v7947_v17  ;;  %v2453_v0 = vcombine.high %v8890_v9, %v8893_v28  ;;  %v2485_v61 = vcombine.high %v8896_v10, %v8899_v16 }
 0x4c2   : > { %v6887_v52 = vcombine.low %v1692_v5, %v1699_v46  ;;  %v6889_v4 = vcombine.high %v1692_v5, %v1699_v46  ;;  %v2492_v45 = vrot.slane %v2484_v53, %v8483_v31  ;;  %7237 = vmatprep.mubr.msk.f32.mxu1 %vm7949_vm1, %v7947_v17 }
 0x4c3   : > { %v2403_v26 = vrot.slane %v6883_v20, %v8478_v24  ;;  %v2419_v27 = vrot.slane %v6885_v38, %v8478_v24  ;;  %v8977_v19 = vrot.slane %v2453_v0, %v8483_v31  ;;  %v8980_v49 = vrot.slane %v2485_v61, %v8483_v31 }
 0x4c4   : > { %v2435_v63 = vrot.slane %v6887_v52, %v8478_v24  ;;  %v2451_v35 = vrot.slane %v6889_v4, %v8478_v24  ;;  %v2516_v50 = vcombine.low %v2460_v25, %v2492_v45  ;;  %v2517_v36 = vcombine.high %v2460_v25, %v2492_v45 }
 0x4c5   : > { %v2518_v30 = vcombine.low %v8977_v19, %v8980_v49  ;;  %v2519_v32 = vcombine.high %v8977_v19, %v8980_v49  ;;  %v2468_v42 = vcombine.low %v2403_v26, %v2419_v27  ;;  %v2469_v55 = vcombine.high %v2403_v26, %v2419_v27 }
 0x4c6   : > { %7231 = vmatpush3.msra.mxu0 %v2516_v50  ;;  %7236 = vmatpush3.msra.mxu1 %v2517_v36  ;;  %v2500_v8 = vcombine.low %v2435_v63, %v2451_v35  ;;  %v2501_v9 = vcombine.high %v2435_v63, %v2451_v35 }
 0x4c7   : > { %7240 = vmatprep.subr.mxu0 %v7947_v17  ;;  %7245 = vmatprep.subr.mxu1 %v7947_v17  ;;  %v8991_v28 = vrot.slane %v2468_v42, %v8483_v31  ;;  %v8994_v10 = vrot.slane %v2469_v55, %v8483_v31 }
 0x4c8   : > { %v8997_v16 = vrot.slane %v2500_v8, %v8483_v31  ;;  %v9000_v58 = vrot.slane %v2501_v9, %v8483_v31 }
 0x4ca   : > { %v2520_v6 = vcombine.low %v8991_v28, %v8997_v16  ;;  %v2521_v40 = vcombine.high %v8991_v28, %v8997_v16  ;;  %v2522_v59 = vcombine.low %v8994_v10, %v9000_v58  ;;  %v2523_v33 = vcombine.high %v8994_v10, %v9000_v58 }
 0x55a   : > { %v3005_v60 = vpop.f32.mrb[4].mxu1 }
 0x55b   : > { %v9010_v47 = vmul.f32 0.25, %v3005_v60  ;;  %v7154_v48 = vpop.f32.mrb[5].mxu1 }
 0x55d   : > { %v4166_v21 = vsel %vm4165_vm3, %v9010_v47, -inf }
 0x55e   : > { %v3081_v13 = vpop.f32.mrb[6].mxu1  ;;  %4167 = vmax.xlane.f32.xlu0 %v4166_v21 }
 0x55f   : > { %v9014_v2 = vmul.f32 0.25, %v3081_v13  ;;  %v7159_v11 = vpop.f32.mrb[7].mxu1 }
 0x561   : > { %v4169_v29 = vsel %vm4165_vm3, %v9014_v2, -inf }
 0x562   : > { %4170 = vmax.xlane.f32.xlu1 %v4169_v29 }
 0x566   : > { %v3157_v44 = vpop.f32.mrb[8].mxu1 }
 0x567   : > { %v7164_v22 = vpop.f32.mrb[9].mxu1  ;;  %v9030_v45 = vmul.f32 0.25, %v3157_v44 }
 0x569   : > { %v4172_v42 = vsel %vm4165_vm3, %v9030_v45, -inf }
 0x56a   : > { %v3233_v41 = vpop.f32.mrb[10].mxu1 }
 0x56b   : > { %v7169_v7 = vpop.f32.mrb[11].mxu1  ;;  %v9038_v48 = vmul.f32 0.25, %v3233_v41 }
 0x56d   : > { %v4175_v11 = vsel %vm4165_vm3, %v9038_v48, -inf }
 0x570   : > { %v3309_v1 = vpop.f32.mrb[12].mxu1 }
 0x571   : > { %v7174_v34 = vpop.f32.mrb[13].mxu1  ;;  %v9046_v29 = vmul.f32 0.25, %v3309_v1 }
 0x573   : > { %v4178_v41 = vsel %vm4165_vm3, %v9046_v29, -inf }
 0x574   : > { %v3385_v3 = vpop.f32.mrb[14].mxu1 }
 0x575   : > { %v9018_v54 = vmul.f32 0.25, %v3385_v3  ;;  %v7179_v18 = vpop.f32.mrb[15].mxu1 }
 0x577   : > { %v4181_v39 = vsel %vm4165_vm3, %v9018_v54, -inf }
 0x578   : > { %4182 = vmax.xlane.f32.xlu1 %v4181_v39 }
 0x57e   : > { %v3461_v23 = vpop.f32.mrb[16].mxu1 }
 0x57f   : > { %v7184_v14 = vpop.f32.mrb[17].mxu1  ;;  %v9050_v22 = vmul.f32 0.25, %v3461_v23 }
 0x581   : > { %v4184_v7 = vsel %vm4165_vm3, %v9050_v22, -inf }
 0x582   : > { %v3537_v15 = vpop.f32.mrb[18].mxu1 }
 0x583   : > { %v7189_v37 = vpop.f32.mrb[19].mxu1  ;;  %v9056_v34 = vmul.f32 0.25, %v3537_v15 }
 0x585   : > { %v3613_v51 = vpop.f32.mrb[4].mxu0  ;;  %v4187_v1 = vsel %vm4165_vm3, %v9056_v34, -inf }
 0x586   : > { %v9022_v5 = vmul.f32 0.25, %v3613_v51  ;;  %v3689_v46 = vpop.f32.mrb[20].mxu1  ;;  %v7194_v25 = vpop.f32.mrb[5].mxu0 }
 0x587   : > { %v7199_v53 = vpop.f32.mrb[21].mxu1  ;;  %v9058_v3 = vmul.f32 0.25, %v3689_v46 }
 0x588   : > { %v4190_v20 = vsel %vm4165_vm3, %v9022_v5, -inf }
 0x589   : > { %4191 = vmax.xlane.f32.xlu0 %v4190_v20  ;;  %1272 = vrot.lane.b32.xlu1 %v8405_v12, %s7952_s12  ;;  %v4193_v39 = vsel %vm4165_vm3, %v9058_v3, -inf }
 0x58a   : > { %v3765_v38 = vpop.f32.mrb[6].mxu0 }
 0x58b   : > { %v3841_v0 = vpop.f32.mrb[22].mxu1  ;;  %v9028_v61 = vmul.f32 0.25, %v3765_v38  ;;  %v7204_v52 = vpop.f32.mrb[7].mxu0 }
 0x58c   : > { %v7209_v4 = vpop.f32.mrb[23].mxu1  ;;  %v9062_v18 = vmul.f32 0.25, %v3841_v0  ;;  %v9083_v0 = vpop.permute.xlu1 %1260 }
 0x58d   : > { %v4196_v26 = vsel %vm4165_vm3, %v9028_v61, -inf }
 0x58e   : > { %4197 = vmax.xlane.f32.xlu0 %v4196_v26  ;;  %v4199_v14 = vsel %vm4165_vm3, %v9062_v18, -inf }
 0x58f   : > { %v3917_v27 = vpop.f32.mrb[8].mxu0  ;;  %v3993_v63 = vpop.f32.mrb[24].mxu1 }
 0x590   : > { %v7214_v35 = vpop.f32.mrb[9].mxu0  ;;  %v7219_v50 = vpop.f32.mrb[25].mxu1  ;;  %v9034_v36 = vmul.f32 0.25, %v3917_v27  ;;  %v9066_v23 = vmul.f32 0.25, %v3993_v63 }
 0x592   : > { %4173 = vmax.xlane.f32.xlu0 %v4172_v42  ;;  %v4202_v21 = vsel %vm4165_vm3, %v9034_v36, -inf  ;;  %v4205_v37 = vsel %vm4165_vm3, %v9066_v23, -inf }
 0x593   : > { %v4069_v55 = vpop.f32.mrb[10].mxu0  ;;  %v4145_v8 = vpop.f32.mrb[26].mxu1 }
 0x594   : > { %v7224_v9 = vpop.f32.mrb[11].mxu0  ;;  %v7229_v60 = vpop.f32.mrb[27].mxu1  ;;  %v9042_v13 = vmul.f32 0.25, %v4069_v55  ;;  %v9070_v15 = vmul.f32 0.25, %v4145_v8 }
 0x596   : > { %4203 = vmax.xlane.f32.xlu0 %v4202_v21  ;;  %v4208_v44 = vsel %vm4165_vm3, %v9042_v13, -inf  ;;  %v4211_v51 = vsel %vm4165_vm3, %v9070_v15, -inf }
 0x59a   : > { %4176 = vmax.xlane.f32.xlu0 %v4175_v11 }
 0x59e   : > { %4209 = vmax.xlane.f32.xlu0 %v4208_v44 }
 0x5a2   : > { %4179 = vmax.xlane.f32.xlu0 %v4178_v41 }
 0x5a6   : > { %4185 = vmax.xlane.f32.xlu0 %v4184_v7 }
 0x5ad   : > { %4188 = vmax.xlane.f32.xlu1 %v4187_v1 }
 0x5b1   : > { %4194 = vmax.xlane.f32.xlu1 %v4193_v39 }
 0x5b5   : > { %4200 = vmax.xlane.f32.xlu1 %v4199_v14 }
 0x5b9   : > { %4206 = vmax.xlane.f32.xlu1 %v4205_v37 }
 0x5bc   : > { %1266 = vrot.lane.b32.xlu0 %v8405_v12, %s7950_s28 }
 0x5bd   : > { %4212 = vmax.xlane.f32.xlu1 %v4211_v51 }
 0x5eb   : > { %v4168_v46 = vpop.xlane.xlu0 %4167 }
 0x5ec   : > { %v4214_v25 = vsub.f32 %v9010_v47, %v4168_v46 }
 0x5ee   : > { %v4230_v53 = vmul.f32 1.442695, %v4214_v25 }
 0x5ef   : > { %v4171_v52 = vpop.xlane.xlu1 %4170 }
 0x5f0   : > { %7602 = vpow2.f32 %v4230_v53  ;;  %v4215_v63 = vsub.f32 %v9014_v2, %v4171_v52 }
 0x5f2   : > { %v4232_v42 = vmul.f32 1.442695, %v4215_v63 }
 0x5fa   : > { %v9079_v20 = vpop.eup %7602 }
 0x5fb   : > { %v4262_v38 = vsel %vm4165_vm3, %v9079_v20, 0.0 }
 0x5fc   : > { %4263 = vadd.xlane.f32.xlu0 %v4262_v38 }
 0x605   : > { %v4183_v4 = vpop.xlane.xlu1 %4182 }
 0x609   : > { %v9085_v26 = vpop.permute.xlu1 %1272 }
 0x60a   : > { %v1996_v27 = vcombine.low %v9083_v0, %v9085_v26  ;;  %v1997_v47 = vcombine.high %v9083_v0, %v9085_v26 }
 0x616   : > { %v4192_v35 = vpop.xlane.xlu0 %4191 }
 0x617   : > { %v4222_v50 = vsub.f32 %v9022_v5, %v4192_v35 }
 0x619   : > { %v4246_v55 = vmul.f32 1.442695, %v4222_v50 }
 0x61b   : > { %7604 = vpow2.f32 %v4246_v55  ;;  %v4198_v8 = vpop.xlane.xlu0 %4197 }
 0x61c   : > { %v4224_v9 = vsub.f32 %v9028_v61, %v4198_v8  ;;  %7606 = vpow2.f32 %v4232_v42 }
 0x61e   : > { %v4250_v60 = vmul.f32 1.442695, %v4224_v9 }
 0x61f   : > { %v4174_v21 = vpop.xlane.xlu0 %4173 }
 0x620   : > { %7608 = vpow2.f32 %v4250_v60  ;;  %v4216_v11 = vsub.f32 %v9030_v45, %v4174_v21  ;;  %v4219_v45 = vsub.f32 %v9018_v54, %v4183_v4 }
 0x622   : > { %v4234_v44 = vmul.f32 1.442695, %v4216_v11  ;;  %v2004_v11 = vrot.slane %v1996_v27, %v8478_v24 }
 0x623   : > { %v4204_v41 = vpop.xlane.xlu0 %4203 }
 0x624   : > { %7610 = vpow2.f32 %v4234_v44  ;;  %v4226_v2 = vsub.f32 %v9034_v36, %v4204_v41 }
 0x625   : > { %v9096_v7 = vpop.eup %7604 }
 0x626   : > { %v4254_v5 = vmul.f32 1.442695, %v4226_v2  ;;  %v4286_v1 = vsel %vm4165_vm3, %v9096_v7, 0.0  ;;  %v9100_v39 = vpop.eup %7606 }
 0x627   : > { %v4177_v61 = vpop.xlane.xlu0 %4176  ;;  %4287 = vadd.xlane.f32.xlu1 %v4286_v1  ;;  %v4265_v36 = vsel %vm4165_vm3, %v9100_v39, 0.0 }
 0x628   : > { %7612 = vpow2.f32 %v4254_v5  ;;  %v4217_v14 = vsub.f32 %v9038_v48, %v4177_v61  ;;  %v4240_v48 = vmul.f32 1.442695, %v4219_v45 }
 0x62a   : > { %v9103_v37 = vpop.eup %7608  ;;  %v4236_v51 = vmul.f32 1.442695, %v4217_v14 }
 0x62b   : > { %v4210_v46 = vpop.xlane.xlu0 %4209  ;;  %4266 = vadd.xlane.f32.xlu1 %v4265_v36  ;;  %v4292_v25 = vsel %vm4165_vm3, %v9103_v37, 0.0 }
 0x62c   : > { %7614 = vpow2.f32 %v4236_v51  ;;  %v4228_v53 = vsub.f32 %v9042_v13, %v4210_v46  ;;  %4293 = vadd.xlane.f32.xlu0 %v4292_v25 }
 0x62e   : > { %v9111_v38 = vpop.eup %7610  ;;  %v4258_v0 = vmul.f32 1.442695, %v4228_v53 }
 0x62f   : > { %v4180_v52 = vpop.xlane.xlu0 %4179  ;;  %v4268_v54 = vsel %vm4165_vm3, %v9111_v38, 0.0 }
 0x630   : > { %7616 = vpow2.f32 %v4258_v0  ;;  %v4218_v4 = vsub.f32 %v9046_v29, %v4180_v52  ;;  %4269 = vadd.xlane.f32.xlu0 %v4268_v54 }
 0x631   : > { %7618 = vpow2.f32 %v4240_v48 }
 0x632   : > { %v9116_v26 = vpop.eup %7612  ;;  %v4238_v63 = vmul.f32 1.442695, %v4218_v4 }
 0x633   : > { %v4186_v35 = vpop.xlane.xlu0 %4185  ;;  %v4298_v13 = vsel %vm4165_vm3, %v9116_v26, 0.0 }
 0x634   : > { %7620 = vpow2.f32 %v4238_v63  ;;  %v4220_v50 = vsub.f32 %v9050_v22, %v4186_v35  ;;  %4299 = vadd.xlane.f32.xlu1 %v4298_v13  ;;  %v2011_v22 = vrot.slane %v1997_v47, %v8478_v24 }
 0x636   : > { %v9121_v42 = vpop.eup %7614  ;;  %v4242_v55 = vmul.f32 1.442695, %v4220_v50 }
 0x637   : > { %v1267_v8 = vpop.permute.xlu0 %1266  ;;  %v4271_v29 = vsel %vm4165_vm3, %v9121_v42, 0.0 }
 0x638   : > { %7622 = vpow2.f32 %v4242_v55  ;;  %v1980_v9 = vcombine.low %v8405_v12, %v1267_v8  ;;  %v1981_v60 = vcombine.high %v8405_v12, %v1267_v8  ;;  %4272 = vadd.xlane.f32.xlu1 %v4271_v29 }
 0x63a   : > { %v9127_v21 = vpop.eup %7616  ;;  %v1988_v44 = vrot.slane %v1980_v9, %v8478_v24  ;;  %v1995_v41 = vrot.slane %v1981_v60, %v8478_v24  ;;  %v4189_v2 = vpop.xlane.xlu1 %4188 }
 0x63b   : > { %v4304_v5 = vsel %vm4165_vm3, %v9127_v21, 0.0  ;;  %v4221_v1 = vsub.f32 %v9056_v34, %v4189_v2  ;;  %v9136_v61 = vpop.eup %7618 }
 0x63c   : > { %v2044_v14 = vcombine.low %v1988_v44, %v2004_v11  ;;  %v2045_v45 = vcombine.high %v1988_v44, %v2004_v11  ;;  %v2060_v51 = vcombine.low %v1995_v41, %v2011_v22  ;;  %v2061_v36 = vcombine.high %v1995_v41, %v2011_v22  ;;  %4305 = vadd.xlane.f32.xlu0 %v4304_v5 }
 0x63d   : > { %v4244_v27 = vmul.f32 1.442695, %v4221_v1  ;;  %v4277_v34 = vsel %vm4165_vm3, %v9136_v61, 0.0 }
 0x63e   : > { %v9138_v46 = vpop.eup %7620  ;;  %v2052_v47 = vrot.slane %v2044_v14, %v8483_v31  ;;  %v2059_v25 = vrot.slane %v2045_v45, %v8483_v31  ;;  %v2068_v53 = vrot.slane %v2060_v51, %v8483_v31  ;;  %v2075_v48 = vrot.slane %v2061_v36, %v8483_v31  ;;  %v4195_v0 = vpop.xlane.xlu1 %4194 }
 0x63f   : > { %7624 = vpow2.f32 %v4244_v27  ;;  %v4274_v52 = vsel %vm4165_vm3, %v9138_v46, 0.0  ;;  %v4223_v54 = vsub.f32 %v9058_v3, %v4195_v0 }
 0x640   : > { %v6906_v4 = vcombine.low %v2052_v47, %v2059_v25  ;;  %v6908_v63 = vcombine.high %v2052_v47, %v2059_v25  ;;  %v6910_v35 = vcombine.low %v2068_v53, %v2075_v48  ;;  %v6912_v13 = vcombine.high %v2068_v53, %v2075_v48  ;;  %4278 = vadd.xlane.f32.xlu0 %v4277_v34 }
 0x641   : > { %4275 = vadd.xlane.f32.xlu1 %v4274_v52  ;;  %v4248_v50 = vmul.f32 1.442695, %v4223_v54 }
 0x642   : > { %v9149_v55 = vpop.eup %7622  ;;  %v2804_v8 = vrot.slane %v6906_v4, %v8478_v24  ;;  %v2820_v29 = vrot.slane %v6908_v63, %v8478_v24  ;;  %v2836_v9 = vrot.slane %v6910_v35, %v8478_v24  ;;  %v2852_v60 = vrot.slane %v6912_v13, %v8478_v24  ;;  %v4201_v11 = vpop.xlane.xlu1 %4200 }
 0x643   : > { %7626 = vpow2.f32 %v4248_v50  ;;  %v4280_v3 = vsel %vm4165_vm3, %v9149_v55, 0.0  ;;  %v4225_v22 = vsub.f32 %v9062_v18, %v4201_v11 }
 0x644   : > { %4281 = vadd.xlane.f32.xlu0 %v4280_v3  ;;  %v2860_v44 = vcombine.low %v2804_v8, %v2820_v29  ;;  %v2892_v41 = vcombine.low %v2836_v9, %v2852_v60  ;;  %v2861_v2 = vcombine.high %v2804_v8, %v2820_v29  ;;  %v2893_v5 = vcombine.high %v2836_v9, %v2852_v60 }
 0x645   : > { %v4252_v1 = vmul.f32 1.442695, %v4225_v22 }
 0x646   : > { %v4207_v14 = vpop.xlane.xlu1 %4206  ;;  %v9159_v45 = vrot.slane %v2860_v44, %v8483_v31  ;;  %v9162_v51 = vrot.slane %v2892_v41, %v8483_v31  ;;  %v9165_v36 = vrot.slane %v2861_v2, %v8483_v31  ;;  %v9168_v27 = vrot.slane %v2893_v5, %v8483_v31 }
 0x647   : > { %7628 = vpow2.f32 %v4252_v1  ;;  %v4227_v18 = vsub.f32 %v9066_v23, %v4207_v14 }
 0x648   : > { %v2924_v47 = vcombine.low %v9159_v45, %v9162_v51  ;;  %v2926_v25 = vcombine.low %v9165_v36, %v9168_v27  ;;  %v2925_v53 = vcombine.high %v9159_v45, %v9162_v51  ;;  %v2927_v48 = vcombine.high %v9165_v36, %v9168_v27 }
 0x649   : > { %v9179_v0 = vpop.eup %7624  ;;  %v4256_v34 = vmul.f32 1.442695, %v4227_v18 }
 0x64a   : > { %v4283_v52 = vsel %vm4165_vm3, %v9179_v0, 0.0  ;;  %v4213_v50 = vpop.xlane.xlu1 %4212 }
 0x64b   : > { %7630 = vpow2.f32 %v4256_v34  ;;  %4284 = vadd.xlane.f32.xlu0 %v4283_v52  ;;  %v4229_v8 = vsub.f32 %v9070_v15, %v4213_v50 }
 0x64d   : > { %v9183_v23 = vpop.eup %7626  ;;  %v4260_v29 = vmul.f32 1.442695, %v4229_v8 }
 0x64e   : > { %v4289_v54 = vsel %vm4165_vm3, %v9183_v23, 0.0 }
 0x64f   : > { %4290 = vadd.xlane.f32.xlu0 %v4289_v54  ;;  %7632 = vpow2.f32 %v4260_v29 }
 0x651   : > { %v9187_v4 = vpop.eup %7628 }
 0x652   : > { %1284 = vrot.lane.b32.xlu1 %v8405_v12, %s7955_s4  ;;  %v4295_v63 = vsel %vm4165_vm3, %v9187_v4, 0.0 }
 0x653   : > { %4296 = vadd.xlane.f32.xlu0 %v4295_v63 }
 0x655   : > { %v9193_v35 = vpop.eup %7630 }
 0x656   : > { %1290 = vrot.lane.b32.xlu1 %v8405_v12, %s7954_s24  ;;  %v4301_v13 = vsel %vm4165_vm3, %v9193_v35, 0.0 }
 0x657   : > { %4302 = vadd.xlane.f32.xlu0 %v4301_v13 }
 0x659   : > { %v9202_v9 = vpop.eup %7632 }
 0x65a   : > { %v4307_v60 = vsel %vm4165_vm3, %v9202_v9, 0.0 }
 0x66d   : > { %1278 = vrot.lane.b32.xlu0 %v8405_v12, %s7953_s20 }
 0x67a   : > { %4308 = vadd.xlane.f32.xlu1 %v4307_v60 }
 0x689   : > { %v4264_v11 = vpop.xlane.xlu0 %4263 }
 0x68a   : > { %7634 = vrcp.f32 %v4264_v11 }
 0x68b   : > { %1296 = vrot.lane.b32.xlu1 %v8405_v12, %s7956_s10 }
 0x694   : > { %v7635_v3 = vpop.eup %7634 }
 0x695   : > { %v4326_v22 = vmul.f32 %v7635_v3, %v9079_v20 }
 0x697   : > { %7233 = vmatmul.mubr.msk.f32.vlgmr.msra.gmra.mrb[12].mxu0 %vm4165_vm3, %v4326_v22 }
 0x698   : > { %7241 = vmatpush3.msra.mxu0 %v2518_v30  ;;  %7242 = vmatprep.mubr.msk.f32.mxu0 %vm7949_vm1, %v7947_v17 }
 0x699   : > { %7250 = vmatprep.subr.mxu0 %v7947_v17 }
 0x6b4   : > { %v4288_v15 = vpop.xlane.xlu1 %4287 }
 0x6b8   : > { %v4267_v44 = vpop.xlane.xlu1 %4266 }
 0x6b9   : > { %7636 = vrcp.f32 %v4267_v44  ;;  %v4294_v41 = vpop.xlane.xlu0 %4293 }
 0x6bd   : > { %v4270_v2 = vpop.xlane.xlu0 %4269 }
 0x6be   : > { %7638 = vrcp.f32 %v4270_v2 }
 0x6c1   : > { %v9216_v12 = vpop.xlane.xlu1 %4299 }
 0x6c3   : > { %v7637_v20 = vpop.eup %7636 }
 0x6c4   : > { %v4327_v5 = vmul.f32 %v7637_v20, %v9100_v39 }
 0x6c5   : > { %v4273_v1 = vpop.xlane.xlu1 %4272 }
 0x6c6   : > { %7640 = vrcp.f32 %v4273_v1  ;;  %7238 = vmatmul.mubr.msk.f32.vlgmr.msra.gmra.mrb[28].mxu1 %vm4165_vm3, %v4327_v5 }
 0x6c7   : > { %7246 = vmatpush3.msra.mxu1 %v2519_v32  ;;  %7247 = vmatprep.mubr.msk.f32.mxu1 %vm7949_vm1, %v7947_v17 }
 0x6c8   : > { %v7639_v30 = vpop.eup %7638  ;;  %7255 = vmatprep.subr.mxu1 %v7947_v17 }
 0x6c9   : > { %v4328_v14 = vmul.f32 %v7639_v30, %v9111_v38  ;;  %v9227_v18 = vpop.xlane.xlu0 %4305 }
 0x6cb   : > { %7243 = vmatmul.mubr.msk.f32.vlgmr.msra.gmra.mrb[14].mxu0 %vm4165_vm3, %v4328_v14 }
 0x6cc   : > { %7251 = vmatpush3.msra.mxu0 %v2520_v6  ;;  %7252 = vmatprep.mubr.msk.f32.mxu0 %vm7949_vm1, %v7947_v17 }
 0x6cd   : > { %v4279_v19 = vpop.xlane.xlu0 %4278  ;;  %7260 = vmatprep.subr.mxu0 %v7947_v17 }
 0x6ce   : > { %v4276_v49 = vpop.xlane.xlu1 %4275  ;;  %7642 = vrcp.f32 %v4279_v19 }
 0x6cf   : > { %7644 = vrcp.f32 %v4276_v49 }
 0x6d0   : > { %v7641_v32 = vpop.eup %7640 }
 0x6d1   : > { %v4329_v39 = vmul.f32 %v7641_v32, %v9121_v42  ;;  %v4282_v38 = vpop.xlane.xlu0 %4281 }
 0x6d2   : > { %7646 = vrcp.f32 %v4282_v38  ;;  %v1285_v51 = vpop.permute.xlu1 %1284 }
 0x6d3   : > { %7248 = vmatmul.mubr.msk.f32.vlgmr.msra.gmra.mrb[30].mxu1 %vm4165_vm3, %v4329_v39  ;;  %7648 = vrcp.f32 %v4288_v15 }
 0x6d4   : > { %7256 = vmatpush3.msra.mxu1 %v2521_v40  ;;  %7257 = vmatprep.mubr.msk.f32.mxu1 %vm7949_vm1, %v7947_v17  ;;  %7650 = vrcp.f32 %v4294_v41 }
 0x6d5   : > { %7265 = vmatprep.subr.mxu1 %v7947_v17 }
 0x6d8   : > { %v7643_v6 = vpop.eup %7642  ;;  %v4285_v34 = vpop.xlane.xlu0 %4284 }
 0x6d9   : > { %v7645_v52 = vpop.eup %7644  ;;  %v4331_v42 = vmul.f32 %v7643_v6, %v9136_v61  ;;  %7652 = vrcp.f32 %v4285_v34 }
 0x6da   : > { %v4330_v54 = vmul.f32 %v7645_v52, %v9138_v46 }
 0x6db   : > { %7258 = vmatmul.mubr.msk.f32.vlgmr.msra.gmra.mrb[32].mxu1 %vm4165_vm3, %v4331_v42 }
 0x6dc   : > { %v7647_v63 = vpop.eup %7646  ;;  %7253 = vmatmul.mubr.msk.f32.vlgmr.msra.gmra.mrb[16].mxu0 %vm4165_vm3, %v4330_v54  ;;  %7266 = vmatpush3.msra.mxu1 %v2523_v33  ;;  %v4291_v28 = vpop.xlane.xlu0 %4290 }
 0x6dd   : > { %v4332_v16 = vmul.f32 %v7647_v63, %v9149_v55  ;;  %7261 = vmatpush3.msra.mxu0 %v2522_v59  ;;  %7262 = vmatprep.mubr.msk.f32.mxu0 %vm7949_vm1, %v7947_v17  ;;  %7654 = vrcp.f32 %v4291_v28  ;;  %v7649_v40 = vpop.eup %7648 }
 0x6de   : > { %7270 = vmatprep.subr.mxu0 %v7947_v17  ;;  %7267 = vmatprep.mubr.msk.f32.mxu1 %vm7949_vm1, %v7947_v17  ;;  %v7651_v10 = vpop.eup %7650  ;;  %v4334_v58 = vmul.f32 %v7649_v40, %v9096_v7 }
 0x6df   : > { %7275 = vmatprep.subr.mxu1 %v7947_v17  ;;  %v4336_v46 = vmul.f32 %v7651_v10, %v9103_v37 }
 0x6e0   : > { %7263 = vmatmul.mubr.msk.f32.vlgmr.msra.gmra.mrb[18].mxu0 %vm4165_vm3, %v4332_v16  ;;  %v4297_v33 = vpop.xlane.xlu0 %4296 }
 0x6e1   : > { %7271 = vmatpush3.msra.mxu0 %v2924_v47  ;;  %7272 = vmatprep.mubr.msk.f32.mxu0 %vm7949_vm1, %v7947_v17  ;;  %7656 = vrcp.f32 %v4297_v33 }
 0x6e2   : > { %7280 = vmatprep.subr.mxu0 %v7947_v17  ;;  %7658 = vrcp.f32 %v9216_v12 }
 0x6e3   : > { %v7653_v59 = vpop.eup %7652 }
 0x6e4   : > { %v4333_v61 = vmul.f32 %v7653_v59, %v9179_v0  ;;  %7273 = vmatmul.mubr.msk.f32.vlgmr.msra.gmra.mrb[20].mxu0 %vm4165_vm3, %v4334_v58  ;;  %v4303_v47 = vpop.xlane.xlu0 %4302 }
 0x6e5   : > { %7281 = vmatpush3.msra.mxu0 %v2926_v25  ;;  %7282 = vmatprep.mubr.msk.f32.mxu0 %vm7949_vm1, %v7947_v17  ;;  %v1291_v25 = vpop.permute.xlu1 %1290  ;;  %7660 = vrcp.f32 %v4303_v47 }
 0x6e6   : > { %7268 = vmatmul.mubr.msk.f32.vlgmr.msra.gmra.mrb[34].mxu1 %vm4165_vm3, %v4333_v61  ;;  %7290 = vmatprep.subr.mxu0 %v7947_v17  ;;  %7662 = vrcp.f32 %v9227_v18 }
 0x6e7   : > { %v7655_v7 = vpop.eup %7654  ;;  %7276 = vmatpush3.msra.mxu1 %v2925_v53  ;;  %7277 = vmatprep.mubr.msk.f32.mxu1 %vm7949_vm1, %v7947_v17 }
 0x6e8   : > { %v4335_v55 = vmul.f32 %v7655_v7, %v9183_v23  ;;  %7283 = vmatmul.mubr.msk.f32.vlgmr.msra.gmra.mrb[22].mxu0 %vm4165_vm3, %v4336_v46  ;;  %7285 = vmatprep.subr.mxu1 %v7947_v17  ;;  %v1279_v53 = vpop.permute.xlu0 %1278 }
 0x6e9   : > { %7292 = vmatprep.mubr.msk.f32.mxu0 %vm7949_vm1, %v7947_v17  ;;  %v2012_v23 = vcombine.low %v1279_v53, %v1291_v25  ;;  %v2013_v36 = vcombine.high %v1279_v53, %v1291_v25 }
 0x6ea   : > { %7278 = vmatmul.mubr.msk.f32.vlgmr.msra.gmra.mrb[36].mxu1 %vm4165_vm3, %v4335_v55 }
 0x6eb   : > { %v7657_v37 = vpop.eup %7656  ;;  %7286 = vmatpush3.msra.mxu1 %v2927_v48  ;;  %7287 = vmatprep.mubr.msk.f32.mxu1 %vm7949_vm1, %v7947_v17  ;;  %v2027_v50 = vrot.slane %v2013_v36, %v8478_v24 }
 0x6ec   : > { %v4337_v45 = vmul.f32 %v7657_v37, %v9187_v4  ;;  %7295 = vmatprep.subr.mxu1 %v7947_v17  ;;  %v2020_v4 = vrot.slane %v2012_v23, %v8478_v24  ;;  %v7659_v49 = vpop.eup %7658 }
 0x6ed   : > { %v4338_v10 = vmul.f32 %v7659_v49, %v9116_v26 }
 0x6ee   : > { %7288 = vmatmul.mubr.msk.f32.vlgmr.msra.gmra.mrb[38].mxu1 %vm4165_vm3, %v4337_v45 }
 0x6ef   : > { %7297 = vmatprep.mubr.msk.f32.mxu1 %vm7949_vm1, %v7947_v17  ;;  %v7661_v34 = vpop.eup %7660 }
 0x6f0   : > { %v7663_v54 = vpop.eup %7662  ;;  %v4339_v58 = vmul.f32 %v7661_v34, %v9193_v35 }
 0x6f1   : > { %v4340_v46 = vmul.f32 %v7663_v54, %v9127_v21 }
 0x707   : > { %v4309_v0 = vpop.xlane.xlu1 %4308 }
 0x708   : > { %7664 = vrcp.f32 %v4309_v0 }
 0x70b   : > { %v1297_v27 = vpop.permute.xlu1 %1296 }
 0x70c   : > { %v2028_v48 = vcombine.low %v1285_v51, %v1297_v27  ;;  %v2029_v13 = vcombine.high %v1285_v51, %v1297_v27 }
 0x70e   : > { %v2036_v8 = vrot.slane %v2028_v48, %v8478_v24  ;;  %v2043_v29 = vrot.slane %v2029_v13, %v8478_v24 }
 0x710   : > { %v2076_v60 = vcombine.low %v2020_v4, %v2036_v8  ;;  %v2077_v11 = vcombine.high %v2020_v4, %v2036_v8  ;;  %v2092_v3 = vcombine.low %v2027_v50, %v2043_v29  ;;  %v2093_v22 = vcombine.high %v2027_v50, %v2043_v29 }
 0x712   : > { %v2084_v15 = vrot.slane %v2076_v60, %v8483_v31  ;;  %v2091_v44 = vrot.slane %v2077_v11, %v8483_v31  ;;  %v2100_v41 = vrot.slane %v2092_v3, %v8483_v31  ;;  %v2107_v2 = vrot.slane %v2093_v22, %v8483_v31  ;;  %v7665_v33 = vpop.eup %7664 }
 0x713   : > { %v4341_v7 = vmul.f32 %v7665_v33, %v9202_v9 }
 0x714   : > { %v6907_v12 = vcombine.low %v2084_v15, %v2091_v44  ;;  %v6909_v20 = vcombine.high %v2084_v15, %v2091_v44  ;;  %v6911_v5 = vcombine.low %v2100_v41, %v2107_v2  ;;  %v6913_v1 = vcombine.high %v2100_v41, %v2107_v2 }
 0x716   : > { %v2811_v30 = vrot.slane %v6907_v12, %v8478_v24  ;;  %v2827_v14 = vrot.slane %v6909_v20, %v8478_v24  ;;  %v2843_v19 = vrot.slane %v6911_v5, %v8478_v24  ;;  %v2859_v18 = vrot.slane %v6913_v1, %v8478_v24 }
 0x718   : > { %v2876_v32 = vcombine.low %v2811_v30, %v2827_v14  ;;  %v2908_v39 = vcombine.low %v2843_v19, %v2859_v18  ;;  %v2877_v38 = vcombine.high %v2811_v30, %v2827_v14  ;;  %v2909_v6 = vcombine.high %v2843_v19, %v2859_v18 }
 0x71a   : > { %v2884_v52 = vrot.slane %v2876_v32, %v8483_v31  ;;  %v2916_v42 = vrot.slane %v2908_v39, %v8483_v31  ;;  %v2891_v63 = vrot.slane %v2877_v38, %v8483_v31  ;;  %v2923_v28 = vrot.slane %v2909_v6, %v8483_v31 }
 0x71c   : > { %v2928_v16 = vcombine.low %v2884_v52, %v2916_v42  ;;  %v2929_v40 = vcombine.high %v2884_v52, %v2916_v42  ;;  %v2930_v59 = vcombine.low %v2891_v63, %v2923_v28  ;;  %v2931_v61 = vcombine.high %v2891_v63, %v2923_v28 }
 0x71e   : > { %7291 = vmatpush3.msra.mxu0 %v2928_v16  ;;  %7296 = vmatpush3.msra.mxu1 %v2929_v40 }
 0x71f   : > { %7293 = vmatmul.mubr.msk.f32.vlgmr.msra.gmra.mrb[24].mxu0 %vm4165_vm3, %v4338_v10  ;;  %7298 = vmatmul.mubr.msk.f32.vlgmr.msra.gmra.mrb[40].mxu1 %vm4165_vm3, %v4339_v58 }
 0x720   : > { %7300 = vmatprep.subr.mxu0 %v7947_v17  ;;  %7305 = vmatprep.subr.mxu1 %v7947_v17 }
 0x721   : > { %7301 = vmatpush3.msra.mxu0 %v2930_v59  ;;  %7306 = vmatpush3.msra.mxu1 %v2931_v61 }
 0x722   : > { %7302 = vmatprep.mubr.msk.f32.mxu0 %vm7949_vm1, %v7947_v17  ;;  %7307 = vmatprep.mubr.msk.f32.mxu1 %vm7949_vm1, %v7947_v17 }
 0x723   : > { %7303 = vmatmul.mubr.msk.f32.vlgmr.msra.gmra.mrb[26].mxu0 %vm4165_vm3, %v4340_v46  ;;  %7308 = vmatmul.mubr.msk.f32.vlgmr.msra.gmra.mrb[42].mxu1 %vm4165_vm3, %v4341_v7 }
 0x724   : > { %7310 = vmatprep.subr.bf16.mxu0 %v7947_v17  ;;  %7326 = vmatprep.mubr.msk.bf16.mxu0 %vm7949_vm1, %v7947_v17 }
 0x725   : > { %6417 = vmatprep.mubr.bf16.mxu1 %v7948_v43 }
 0x76a   : > { %v4411_v26 = vpop.f32.mrb[12].mxu0 }
 0x76b   : > { %v7234_v21 = vpop.f32.mrb[13].mxu0 }
 0x799   : > { %v4484_v35 = vpop.f32.mrb[28].mxu1 }
 0x79a   : > { %v7239_v9 = vpop.f32.mrb[29].mxu1 }
 0x79e   : > { %v4557_v55 = vpop.f32.mrb[14].mxu0 }
 0x79f   : > { %v5510_v37 = vcombine.low %v4411_v26, %v4557_v55  ;;  %v5511_v45 = vcombine.high %v4411_v26, %v4557_v55  ;;  %v7244_v51 = vpop.f32.mrb[15].mxu0 }
 0x7a1   : > { %v5518_v23 = vrot.slane %v5510_v37, %v8478_v24  ;;  %v5525_v36 = vrot.slane %v5511_v45, %v8478_v24 }
 0x7a6   : > { %v4630_v47 = vpop.f32.mrb[30].mxu1 }
 0x7a7   : > { %v5526_v25 = vcombine.low %v4484_v35, %v4630_v47  ;;  %v5527_v53 = vcombine.high %v4484_v35, %v4630_v47  ;;  %v7249_v0 = vpop.f32.mrb[31].mxu1 }
 0x7a9   : > { %v5534_v27 = vrot.slane %v5526_v25, %v8478_v24  ;;  %v5541_v43 = vrot.slane %v5527_v53, %v8478_v24 }
 0x7ab   : > { %v5574_v48 = vcombine.low %v5518_v23, %v5534_v27  ;;  %v5575_v13 = vcombine.high %v5518_v23, %v5534_v27  ;;  %v5590_v4 = vcombine.low %v5525_v36, %v5541_v43  ;;  %v5591_v50 = vcombine.high %v5525_v36, %v5541_v43 }
 0x7ad   : > { %v5582_v8 = vrot.slane %v5574_v48, %v8483_v31  ;;  %v5589_v29 = vrot.slane %v5575_v13, %v8483_v31  ;;  %v5598_v60 = vrot.slane %v5590_v4, %v8483_v31  ;;  %v5605_v11 = vrot.slane %v5591_v50, %v8483_v31 }
 0x7ae   : > { %v4776_v3 = vpop.f32.mrb[32].mxu1 }
 0x7af   : > { %v6962_v22 = vcombine.low %v5582_v8, %v5589_v29  ;;  %v6964_v15 = vcombine.high %v5582_v8, %v5589_v29  ;;  %v6966_v44 = vcombine.low %v5598_v60, %v5605_v11  ;;  %v6968_v41 = vcombine.high %v5598_v60, %v5605_v11  ;;  %v4703_v2 = vpop.f32.mrb[16].mxu0  ;;  %v7259_v12 = vpop.f32.mrb[33].mxu1 }
 0x7b0   : > { %v7254_v20 = vpop.f32.mrb[17].mxu0 }
 0x7b1   : > { %v5790_v5 = vrot.slane %v6962_v22, %v8478_v24  ;;  %v5806_v1 = vrot.slane %v6964_v15, %v8478_v24  ;;  %v5822_v30 = vrot.slane %v6966_v44, %v8478_v24  ;;  %v5838_v14 = vrot.slane %v6968_v41, %v8478_v24 }
 0x7b3   : > { %v4849_v19 = vpop.f32.mrb[18].mxu0  ;;  %v5847_v18 = vcombine.high %v5790_v5, %v5806_v1  ;;  %v5879_v49 = vcombine.high %v5822_v30, %v5838_v14  ;;  %v5846_v32 = vcombine.low %v5790_v5, %v5806_v1  ;;  %v5878_v39 = vcombine.low %v5822_v30, %v5838_v14 }
 0x7b4   : > { %v5542_v38 = vcombine.low %v4703_v2, %v4849_v19  ;;  %v5543_v6 = vcombine.high %v4703_v2, %v4849_v19  ;;  %v7264_v34 = vpop.f32.mrb[19].mxu0 }
 0x7b5   : > { %v9349_v52 = vrot.slane %v5847_v18, %v8483_v31  ;;  %v9352_v42 = vrot.slane %v5879_v49, %v8483_v31  ;;  %v9355_v54 = vrot.slane %v5846_v32, %v8483_v31  ;;  %v9358_v63 = vrot.slane %v5878_v39, %v8483_v31 }
 0x7b6   : > { %v5550_v26 = vrot.slane %v5542_v38, %v8478_v24  ;;  %v5557_v51 = vrot.slane %v5543_v6, %v8478_v24 }
 0x7b7   : > { %v4995_v28 = vpop.f32.mrb[20].mxu0  ;;  %v5912_v16 = vcombine.low %v9349_v52, %v9352_v42  ;;  %v5910_v40 = vcombine.low %v9355_v54, %v9358_v63  ;;  %v5911_v33 = vcombine.high %v9355_v54, %v9358_v63  ;;  %v5913_v10 = vcombine.high %v9349_v52, %v9352_v42  ;;  %v7555_v52 = vld [vmem:[%s8301_s29 + $0x28] sm:$0xff]  }
 0x7b8   : > { %v7274_v58 = vpop.f32.mrb[21].mxu0 }
 0x7b9   : > { %v4922_v59 = vpop.f32.mrb[34].mxu1 }
 0x7ba   : > { %v5558_v61 = vcombine.low %v4776_v3, %v4922_v59  ;;  %v5559_v46 = vcombine.high %v4776_v3, %v4922_v59  ;;  %v7269_v7 = vpop.f32.mrb[35].mxu1 }
 0x7bb   : > { %v5141_v21 = vpop.f32.mrb[22].mxu0 }
 0x7bc   : > { %v5646_v35 = vcombine.low %v4995_v28, %v5141_v21  ;;  %v5647_v9 = vcombine.high %v4995_v28, %v5141_v21  ;;  %v7284_v55 = vpop.f32.mrb[23].mxu0  ;;  %v5566_v37 = vrot.slane %v5558_v61, %v8478_v24  ;;  %v5573_v45 = vrot.slane %v5559_v46, %v8478_v24 }
 0x7bd   : > { %v5068_v47 = vpop.f32.mrb[36].mxu1 }
 0x7be   : > { %v5606_v25 = vcombine.low %v5550_v26, %v5566_v37  ;;  %v5607_v53 = vcombine.high %v5550_v26, %v5566_v37  ;;  %v7279_v0 = vpop.f32.mrb[37].mxu1  ;;  %v5622_v23 = vcombine.low %v5557_v51, %v5573_v45  ;;  %v5623_v36 = vcombine.high %v5557_v51, %v5573_v45 }
 0x7bf   : > { %v5654_v3 = vrot.slane %v5646_v35, %v8478_v24  ;;  %v5661_v22 = vrot.slane %v5647_v9, %v8478_v24 }
 0x7c0   : > { %v5614_v27 = vrot.slane %v5606_v25, %v8483_v31  ;;  %v5621_v43 = vrot.slane %v5607_v53, %v8483_v31  ;;  %v5630_v48 = vrot.slane %v5622_v23, %v8483_v31  ;;  %v5637_v13 = vrot.slane %v5623_v36, %v8483_v31 }
 0x7c1   : > { %v5214_v4 = vpop.f32.mrb[38].mxu1 }
 0x7c2   : > { %v6963_v50 = vcombine.low %v5614_v27, %v5621_v43  ;;  %v6965_v8 = vcombine.high %v5614_v27, %v5621_v43  ;;  %v5662_v29 = vcombine.low %v5068_v47, %v5214_v4  ;;  %v5663_v60 = vcombine.high %v5068_v47, %v5214_v4  ;;  %v7289_v11 = vpop.f32.mrb[39].mxu1 }
 0x7c3   : > { %v6967_v15 = vcombine.low %v5630_v48, %v5637_v13  ;;  %v6969_v44 = vcombine.high %v5630_v48, %v5637_v13  ;;  %v7550_v48 = vld [vmem:[%s8301_s29] sm:$0xff]  }
 0x7c4   : > { %v5797_v41 = vrot.slane %v6963_v50, %v8478_v24  ;;  %v5813_v2 = vrot.slane %v6965_v8, %v8478_v24  ;;  %v5670_v12 = vrot.slane %v5662_v29, %v8478_v24  ;;  %v5677_v20 = vrot.slane %v5663_v60, %v8478_v24  ;;  %7311 = vmatpush3.bf16.msra.mxu0 %v7550_v48  ;;  %v7551_v29 = vld [vmem:[%s8301_s29 + $0x8] sm:$0xff]  }
 0x7c5   : > { %v5829_v5 = vrot.slane %v6967_v15, %v8478_v24  ;;  %v5845_v1 = vrot.slane %v6969_v44, %v8478_v24  ;;  %7312 = vmatprep.subr.bf16.mxu0 %v7947_v17 }
 0x7c6   : > { %v5710_v30 = vcombine.low %v5654_v3, %v5670_v12  ;;  %v5711_v14 = vcombine.high %v5654_v3, %v5670_v12  ;;  %v5726_v19 = vcombine.low %v5661_v22, %v5677_v20  ;;  %v5727_v18 = vcombine.high %v5661_v22, %v5677_v20  ;;  %v7553_v12 = vld [vmem:[%s8301_s29 + $0x18] sm:$0xff]  }
 0x7c7   : > { %v5862_v49 = vcombine.low %v5797_v41, %v5813_v2  ;;  %v5894_v32 = vcombine.low %v5829_v5, %v5845_v1  ;;  %v5863_v39 = vcombine.high %v5797_v41, %v5813_v2  ;;  %v5895_v38 = vcombine.high %v5829_v5, %v5845_v1  ;;  %v7552_v2 = vld [vmem:[%s8301_s29 + $0x10] sm:$0xff]  }
 0x7c8   : > { %v5718_v6 = vrot.slane %v5710_v30, %v8483_v31  ;;  %v5725_v34 = vrot.slane %v5711_v14, %v8483_v31  ;;  %v5734_v28 = vrot.slane %v5726_v19, %v8483_v31  ;;  %v5741_v58 = vrot.slane %v5727_v18, %v8483_v31  ;;  %7313 = vmatpush3.bf16.msra.mxu0 %v7551_v29 }
 0x7c9   : > { %v9389_v59 = vrot.slane %v5862_v49, %v8483_v31  ;;  %v9392_v61 = vrot.slane %v5894_v32, %v8483_v31  ;;  %v9395_v46 = vrot.slane %v5863_v39, %v8483_v31  ;;  %v9398_v7 = vrot.slane %v5895_v38, %v8483_v31  ;;  %7314 = vmatprep.subr.bf16.mxu0 %v7947_v17 }
 0x7ca   : > { %v6970_v26 = vcombine.low %v5718_v6, %v5725_v34  ;;  %v6972_v21 = vcombine.high %v5718_v6, %v5725_v34  ;;  %v6974_v35 = vcombine.low %v5734_v28, %v5741_v58  ;;  %v6976_v9 = vcombine.high %v5734_v28, %v5741_v58 }
 0x7cb   : > { %v5915_v55 = vcombine.high %v9389_v59, %v9392_v61  ;;  %v5914_v37 = vcombine.low %v9389_v59, %v9392_v61  ;;  %v5917_v45 = vcombine.high %v9395_v46, %v9398_v7  ;;  %v5916_v51 = vcombine.low %v9395_v46, %v9398_v7 }
 0x7cc   : > { %v5926_v47 = vrot.slane %v6970_v26, %v8478_v24  ;;  %v5942_v25 = vrot.slane %v6972_v21, %v8478_v24  ;;  %v5958_v53 = vrot.slane %v6974_v35, %v8478_v24  ;;  %v5974_v0 = vrot.slane %v6976_v9, %v8478_v24  ;;  %7315 = vmatpush3.bf16.msra.mxu0 %v7552_v2 }
 0x7cd   : > { %7316 = vmatprep.subr.bf16.mxu0 %v7947_v17 }
 0x7ce   : > { %v5983_v23 = vcombine.high %v5926_v47, %v5942_v25  ;;  %v6015_v36 = vcombine.high %v5958_v53, %v5974_v0  ;;  %v5982_v27 = vcombine.low %v5926_v47, %v5942_v25  ;;  %v6014_v43 = vcombine.low %v5958_v53, %v5974_v0 }
 0x7d0   : > { %v5997_v13 = vrot.slane %v5983_v23, %v8483_v31  ;;  %v6029_v4 = vrot.slane %v6015_v36, %v8483_v31  ;;  %v9416_v50 = vrot.slane %v5982_v27, %v8483_v31  ;;  %v9419_v8 = vrot.slane %v6014_v43, %v8483_v31  ;;  %7317 = vmatpush3.bf16.msra.mxu0 %v7553_v12  ;;  %v7557_v12 = vld [vmem:[%s8301_s29 + $0x38] sm:$0xff]  }
 0x7d1   : > { %7318 = vmatprep.subr.bf16.mxu0 %v7947_v17 }
 0x7d2   : > { %v6048_v60 = vcombine.low %v5997_v13, %v6029_v4  ;;  %v6047_v11 = vcombine.high %v9416_v50, %v9419_v8  ;;  %v6046_v3 = vcombine.low %v9416_v50, %v9419_v8  ;;  %v6049_v22 = vcombine.high %v5997_v13, %v6029_v4  ;;  %v7556_v4 = vld [vmem:[%s8301_s29 + $0x30] sm:$0xff]  }
 0x7d4   : > { %v7488_v15 = vpack.i.bf16 %v6048_v60, %v5912_v16  ;;  %v7483_v44 = vpack.i.bf16 %v6047_v11, %v5911_v33  ;;  %v7493_v41 = vpack.i.bf16 %v6049_v22, %v5913_v10  ;;  %v7554_v16 = vld [vmem:[%s8301_s29 + $0x20] sm:$0xff]  }
 0x7d5   : > { %7319 = vmatpush3.bf16.msra.mxu0 %v7554_v16 }
 0x7d6   : > { %7489 = vrot.lane.b32.xlu1 %v7488_v15, %s7954_s24  ;;  %7484 = vrot.lane.b32.xlu0 %v7483_v44, %s7956_s10 }
 0x7d7   : > { %7320 = vmatprep.subr.bf16.mxu0 %v7947_v17 }
 0x7d9   : > { %7321 = vmatpush3.bf16.msra.mxu0 %v7555_v52 }
 0x7da   : > { %7494 = vrot.lane.b32.xlu0 %v7493_v41, %s7955_s4  ;;  %7322 = vmatprep.subr.bf16.mxu0 %v7947_v17 }
 0x7dd   : > { %7323 = vmatpush3.bf16.msra.mxu0 %v7556_v4  ;;  %v7671_v4 = vld [vmem:[#allocation2] sm:$0xff] }
 0x7de   : > { %7324 = vmatprep.subr.bf16.mxu0 %v7947_v17 }
 0x7e1   : > { %7325 = vmatpush3.bf16.msra.mxu0 %v7557_v12  ;;  %v7561_v12 = vld [vmem:[%s8307_s13 + $0x10] ss:$8 sps:$4 sm:$0xff]  }
 0x7f2   : > { %v5287_v42 = vpop.f32.mrb[24].mxu0  ;;  %v5360_v33 = vpop.f32.mrb[40].mxu1 }
 0x7f3   : > { %v7294_v10 = vpop.f32.mrb[25].mxu0  ;;  %v7299_v20 = vpop.f32.mrb[41].mxu1 }
 0x7f6   : > { %v5433_v5 = vpop.f32.mrb[26].mxu0  ;;  %v5506_v1 = vpop.f32.mrb[42].mxu1 }
 0x7f7   : > { %v5678_v30 = vcombine.low %v5287_v42, %v5433_v5  ;;  %v5679_v14 = vcombine.high %v5287_v42, %v5433_v5  ;;  %v5694_v19 = vcombine.low %v5360_v33, %v5506_v1  ;;  %v5695_v18 = vcombine.high %v5360_v33, %v5506_v1  ;;  %v7304_v49 = vpop.f32.mrb[27].mxu0  ;;  %v7309_v32 = vpop.f32.mrb[43].mxu1 }
 0x7f9   : > { %v5686_v39 = vrot.slane %v5678_v30, %v8478_v24  ;;  %v5693_v38 = vrot.slane %v5679_v14, %v8478_v24  ;;  %v5702_v6 = vrot.slane %v5694_v19, %v8478_v24  ;;  %v5709_v34 = vrot.slane %v5695_v18, %v8478_v24 }
 0x7fb   : > { %v5742_v28 = vcombine.low %v5686_v39, %v5702_v6  ;;  %v5743_v58 = vcombine.high %v5686_v39, %v5702_v6  ;;  %v5758_v26 = vcombine.low %v5693_v38, %v5709_v34  ;;  %v5759_v21 = vcombine.high %v5693_v38, %v5709_v34 }
 0x7fd   : > { %v5750_v35 = vrot.slane %v5742_v28, %v8483_v31  ;;  %v5757_v9 = vrot.slane %v5743_v58, %v8483_v31  ;;  %v5766_v47 = vrot.slane %v5758_v26, %v8483_v31  ;;  %v5773_v25 = vrot.slane %v5759_v21, %v8483_v31 }
 0x7ff   : > { %v6971_v53 = vcombine.low %v5750_v35, %v5757_v9  ;;  %v6973_v0 = vcombine.high %v5750_v35, %v5757_v9  ;;  %v6975_v23 = vcombine.low %v5766_v47, %v5773_v25  ;;  %v6977_v36 = vcombine.high %v5766_v47, %v5773_v25 }
 0x801   : > { %v5933_v27 = vrot.slane %v6971_v53, %v8478_v24  ;;  %v5949_v43 = vrot.slane %v6973_v0, %v8478_v24  ;;  %v5965_v48 = vrot.slane %v6975_v23, %v8478_v24  ;;  %v5981_v13 = vrot.slane %v6977_v36, %v8478_v24  ;;  %v9493_v23 = vld [vmem:[%s8293_s22] sm:$0x3f] }
 0x802   : > { %v6149_v0 = vsub.s32 2, %v8378_v56 }
 0x803   : > { %v5998_v29 = vcombine.low %v5933_v27, %v5949_v43  ;;  %v6030_v60 = vcombine.low %v5965_v48, %v5981_v13  ;;  %v5999_v11 = vcombine.high %v5933_v27, %v5949_v43  ;;  %v6031_v22 = vcombine.high %v5965_v48, %v5981_v13 }
 0x804   : > { %v6150_v36 = vrot.slane %v9493_v23, %v6149_v0 }
 0x805   : > { %v6006_v15 = vrot.slane %v5998_v29, %v8483_v31  ;;  %v6038_v44 = vrot.slane %v6030_v60, %v8483_v31  ;;  %v6013_v41 = vrot.slane %v5999_v11, %v8483_v31  ;;  %v6045_v2 = vrot.slane %v6031_v22, %v8483_v31  ;;  %v7672_v22 = vld [vmem:[#allocation2 + $0x8] sm:$0xff] }
 0x807   : > { %v6051_v16 = vcombine.high %v6006_v15, %v6038_v44  ;;  %v6050_v52 = vcombine.low %v6006_v15, %v6038_v44  ;;  %v6053_v24 = vcombine.high %v6013_v41, %v6045_v2  ;;  %v6052_v42 = vcombine.low %v6013_v41, %v6045_v2  ;;  %v7558_v44 = vld [vmem:[%s8307_s13] ss:$8 sps:$4 sm:$0xff]   ;;  %v7560_v41 = vld [vmem:[%s8307_s13 + $0x4] ss:$8 sps:$4 sm:$0xff]   ;;  %v7563_v2 = vld [vmem:[%s8307_s13 + $0x14] ss:$8 sps:$4 sm:$0xff]  }
 0x808   : > { %6385 = vmatprep.subr.bf16.mxu1 %v7560_v41  ;;  %v6293_v41 = vld [vmem:[%s8320_s6] sm:$0x3] }
 0x809   : > { %v7503_v33 = vpack.i.bf16 %v6051_v16, %v5915_v55  ;;  %v7498_v17 = vpack.i.bf16 %v6050_v52, %v5914_v37  ;;  %v7513_v10 = vpack.i.bf16 %v6053_v24, %v5917_v45  ;;  %v7508_v31 = vpack.i.bf16 %v6052_v42, %v5916_v51  ;;  %6386 = vmatpush1.bf16.msra.mxu1 %v7558_v44  ;;  %v7597_v44 = vld [vmem:[%s8309_s16 + $0x38] sm:$0xff]  }
 0x80a   : > { %6387 = vmatprep.subr.bf16.mxu1 %v7563_v2  ;;  %v6298_v2 = vrot.slane %v6293_v41, %v913_v57  ;;  %v6468_v57 = vsub.s32 5, %v8378_v56 }
 0x80b   : > { %7504 = vrot.lane.b32.xlu0 %v7503_v33, %s7952_s12  ;;  %7499 = vrot.lane.b32.xlu1 %v7498_v17, %s7953_s20 }
 0x80d   : > { %6388 = vmatpush1.bf16.msra.mxu1 %v7561_v12  ;;  %v6302_v12 = vrot.slane %v6293_v41, %v919_v62  ;;  %v6469_v62 = vrot.slane %v9493_v23, %v6468_v57 }
 0x80f   : > { %7514 = vrot.lane.b32.xlu0 %v7513_v10, %s7951_s11  ;;  %7509 = vrot.lane.b32.xlu1 %v7508_v31, %s7950_s28 }
 0x848   : > { %v7485_v55 = vpop.permute.xlu0 %7484  ;;  %v7490_v20 = vpop.permute.xlu1 %7489 }
 0x849   : > { %v7487_v59 = vunpack.i.h.bf16 %v7485_v55  ;;  %v7486_v61 = vunpack.i.l.bf16 %v7485_v55  ;;  %v7492_v5 = vunpack.i.h.bf16 %v7490_v20  ;;  %v7491_v1 = vunpack.i.l.bf16 %v7490_v20  ;;  %v7564_v55 = vld [vmem:[%s8307_s13 + $0x20] ss:$8 sps:$4 sm:$0xff]   ;;  %v7566_v20 = vld [vmem:[%s8307_s13 + $0x24] ss:$8 sps:$4 sm:$0xff]  }
 0x84a   : > { %6389 = vmatprep.subr.bf16.mxu1 %v7566_v20 }
 0x84b   : > { %v6111_v46 = vsel %vm2932_vm2, %v6046_v3, %v7487_v59  ;;  %v6110_v7 = vsel %vm2932_vm2, %v5910_v40, %v7486_v61  ;;  %6390 = vmatpush1.bf16.msra.mxu1 %v7564_v55  ;;  %v7567_v59 = vld [vmem:[%s8307_s13 + $0x30] ss:$8 sps:$4 sm:$0xff]   ;;  %v7569_v61 = vld [vmem:[%s8307_s13 + $0x34] ss:$8 sps:$4 sm:$0xff]  }
 0x84c   : > { %v7495_v37 = vpop.permute.xlu0 %7494  ;;  %v6113_v19 = vsel %vm6112_vm4, %v6110_v7, %v7491_v1  ;;  %v6114_v18 = vsel %vm6112_vm4, %v6111_v46, %v7492_v5  ;;  %6391 = vmatprep.subr.bf16.mxu1 %v7569_v61  ;;  %v7570_v5 = vld [vmem:[%s8307_s13 + $0x40] ss:$8 sps:$4 sm:$0xff]   ;;  %v7575_v1 = vld [vmem:[%s8307_s13 + $0x54] ss:$8 sps:$4 sm:$0xff]   ;;  %v7573_v46 = vld [vmem:[%s8307_s13 + $0x50] ss:$8 sps:$4 sm:$0xff]  }
 0x84d   : > { %v7497_v45 = vunpack.i.h.bf16 %v7495_v37  ;;  %v7496_v51 = vunpack.i.l.bf16 %v7495_v37  ;;  %v7572_v37 = vld [vmem:[%s8307_s13 + $0x44] ss:$8 sps:$4 sm:$0xff]  }
 0x84e   : > { %v7578_v7 = vld [vmem:[%s8307_s13 + $0x64] ss:$8 sps:$4 sm:$0xff]  }
 0x84f   : > { %v6116_v39 = vsel %vm6115_vm5, %v6113_v19, %v7496_v51  ;;  %v6117_v38 = vsel %vm6115_vm5, %v6114_v18, %v7497_v45  ;;  %6392 = vmatpush1.bf16.msra.mxu1 %v7567_v59  ;;  %v7582_v45 = vld [vmem:[%s8309_s16 + $0x40] sm:$0xff]   ;;  %v7585_v19 = vld [vmem:[%s8309_s16 + $0x8] sm:$0xff]   ;;  %v7581_v18 = vld [vmem:[%s8307_s13 + $0x74] ss:$8 sps:$4 sm:$0xff]  }
 0x850   : > { %6393 = vmatprep.subr.bf16.mxu1 %v7572_v37  ;;  %v7583_v51 = vld [vmem:[%s8309_s16] sm:$0xff]   ;;  %7108 = vmatprep.subr.bf16.mxu0 %v7582_v45 }
 0x853   : > { %6394 = vmatpush1.bf16.msra.mxu1 %v7570_v5 }
 0x854   : > { %6395 = vmatprep.subr.bf16.mxu1 %v7575_v1 }
 0x857   : > { %6396 = vmatpush1.bf16.msra.mxu1 %v7573_v46 }
 0x858   : > { %6397 = vmatprep.subr.bf16.mxu1 %v7578_v7 }
 0x87d   : > { %v7500_v30 = vpop.permute.xlu1 %7499  ;;  %v7505_v14 = vpop.permute.xlu0 %7504 }
 0x87e   : > { %v7502_v49 = vunpack.i.h.bf16 %v7500_v30  ;;  %v7501_v32 = vunpack.i.l.bf16 %v7500_v30  ;;  %v7507_v50 = vunpack.i.h.bf16 %v7505_v14  ;;  %v7506_v8 = vunpack.i.l.bf16 %v7505_v14  ;;  %v7584_v30 = vld [vmem:[%s8309_s16 + $0x48] sm:$0xff]  }
 0x87f   : > { %v7576_v14 = vld [vmem:[%s8307_s13 + $0x60] ss:$8 sps:$4 sm:$0xff]  }
 0x880   : > { %v6119_v3 = vsel %vm6118_vm6, %v6116_v39, %v7501_v32  ;;  %v6120_v6 = vsel %vm6118_vm6, %v6117_v38, %v7502_v49  ;;  %v7586_v49 = vld [vmem:[%s8309_s16 + $0x50] sm:$0xff]   ;;  %6398 = vmatpush1.bf16.msra.mxu1 %v7576_v14  ;;  %v7588_v38 = vld [vmem:[%s8309_s16 + $0x58] sm:$0xff]  }
 0x881   : > { %v7510_v54 = vpop.permute.xlu1 %7509  ;;  %v7515_v63 = vpop.permute.xlu0 %7514  ;;  %v6122_v26 = vsel %vm6121_vm7, %v6119_v3, %v7506_v8  ;;  %v6123_v21 = vsel %vm6121_vm7, %v6120_v6, %v7507_v50  ;;  %v7579_v32 = vld [vmem:[%s8307_s13 + $0x70] ss:$8 sps:$4 sm:$0xff]   ;;  %6399 = vmatprep.subr.bf16.mxu1 %v7581_v18  ;;  %v7590_v8 = vld [vmem:[%s8309_s16 + $0x60] sm:$0xff]   ;;  %v7592_v6 = vld [vmem:[%s8309_s16 + $0x68] sm:$0xff]  }
 0x882   : > { %v7512_v40 = vunpack.i.h.bf16 %v7510_v54  ;;  %v7511_v34 = vunpack.i.l.bf16 %v7510_v54  ;;  %v7517_v28 = vunpack.i.h.bf16 %v7515_v63  ;;  %v7516_v58 = vunpack.i.l.bf16 %v7515_v63  ;;  %v7587_v39 = vld [vmem:[%s8309_s16 + $0x10] sm:$0xff]   ;;  %v7589_v50 = vld [vmem:[%s8309_s16 + $0x18] sm:$0xff]   ;;  %v7591_v3 = vld [vmem:[%s8309_s16 + $0x20] sm:$0xff]  }
 0x884   : > { %v6125_v35 = vsel %vm6124_vm8, %v6122_v26, %v7511_v34  ;;  %v6126_v9 = vsel %vm6124_vm8, %v6123_v21, %v7512_v40  ;;  %6400 = vmatpush1.bf16.msra.mxu1 %v7579_v32  ;;  %v6266_v26 = vsub.s32 3, %v8378_v56 }
 0x885   : > { %v6128_v47 = vsel %vm6127_vm9, %v6125_v35, %v7516_v58  ;;  %v6129_v25 = vsel %vm6127_vm9, %v6126_v9, %v7517_v28 }
 0x886   : > { %v6130_v53 = vpack.c.bf16 %v6129_v25, %v6128_v47  ;;  %v6267_v9 = vrot.slane %v9493_v23, %v6266_v26  ;;  %v6272_v47 = vsub.s32 4, %v8378_v56 }
 0x888   : > { %7327 = vmatmul.mubr.bf16.vlgmr.msra.gmra.mrb[28].mxu0 %v6130_v53 }
 0x889   : > { %7109 = vmatpush3.bf16.msra.mxu0 %v7583_v51 }
 0x88a   : > { %7110 = vmatprep.subr.bf16.mxu0 %v7584_v30 }
 0x88d   : > { %7111 = vmatpush3.bf16.msra.mxu0 %v7585_v19 }
 0x88e   : > { %7112 = vmatprep.subr.bf16.mxu0 %v7586_v49 }
 0x891   : > { %7113 = vmatpush3.bf16.msra.mxu0 %v7587_v39 }
 0x892   : > { %7114 = vmatprep.subr.bf16.mxu0 %v7588_v38 }
 0x895   : > { %7115 = vmatpush3.bf16.msra.mxu0 %v7589_v50 }
 0x896   : > { %7116 = vmatprep.subr.bf16.mxu0 %v7590_v8 }
 0x899   : > { %7117 = vmatpush3.bf16.msra.mxu0 %v7591_v3 }
 0x89a   : > { %7118 = vmatprep.subr.bf16.mxu0 %v7592_v6 }
 0x95b   : > { %v6233_v27 = vpop.f32.mrb[28].mxu0 }
 0x95c   : > { %v6234_v43 = vadd.f32 %v6233_v27, %v6150_v36  ;;  %v7328_v48 = vpop.f32.mrb[29].mxu0 }
 0x95d   : > { %v6236_v13 = vpop.f32.mrb[30].mxu0 }
 0x95e   : > { %v9496_v29 = vadd.f32 %v7671_v4, %v6234_v43  ;;  %v6237_v60 = vadd.f32 %v6236_v13, %v6150_v36  ;;  %v7329_v11 = vpop.f32.mrb[31].mxu0  ;;  %v6273_v36 = vrot.slane %v9493_v23, %v6272_v47  ;;  %v7593_v4 = vld [vmem:[%s8309_s16 + $0x28] sm:$0xff]  }
 0x95f   : > { %7119 = vmatpush3.bf16.msra.mxu0 %v7593_v4  ;;  %v7595_v11 = vld [vmem:[%s8309_s16 + $0x30] sm:$0xff]  }
 0x960   : > { %v9498_v15 = vadd.f32 %v7672_v22, %v6237_v60  ;;  %6242 = vadd.xlane.f32.xlu1 %v9496_v29  ;;  %v7594_v60 = vld [vmem:[%s8309_s16 + $0x70] sm:$0xff]   ;;  %v7596_v22 = vld [vmem:[%s8309_s16 + $0x78] sm:$0xff]  }
 0x961   : > { %7120 = vmatprep.subr.bf16.mxu0 %v7594_v60 }
 0x962   : > { %6244 = vadd.xlane.f32.xlu0 %v9498_v15 }
 0x963   : > { %7121 = vmatpush3.bf16.msra.mxu0 %v7595_v11 }
 0x964   : > { %7122 = vmatprep.subr.bf16.mxu0 %v7596_v22 }
 0x967   : > { %7123 = vmatpush3.bf16.msra.mxu0 %v7597_v44 }
 0x9ed   : > { %v6243_v16 = vpop.xlane.xlu1 %6242 }
 0x9ee   : > { %v6246_v52 = vmul.f32 0.0078125, %v6243_v16 }
 0x9ef   : > { %v6245_v24 = vpop.xlane.xlu0 %6244 }
 0x9f0   : > { %v9507_v42 = vsub.f32 %v9496_v29, %v6246_v52  ;;  %v6247_v33 = vmul.f32 0.0078125, %v6245_v24 }
 0x9f2   : > { %v9510_v17 = vsub.f32 %v9498_v15, %v6247_v33  ;;  %v6250_v10 = vmul.f32 %v9507_v42, %v9507_v42 }
 0x9f4   : > { %6252 = vadd.xlane.f32.xlu0 %v6250_v10  ;;  %v6251_v31 = vmul.f32 %v9510_v17, %v9510_v17 }
 0x9f8   : > { %6254 = vadd.xlane.f32.xlu0 %v6251_v31 }
 0xa81   : > { %v6253_v54 = vpop.xlane.xlu0 %6252 }
 0xa82   : > { %v6256_v63 = vmul.f32 0.0078125, %v6253_v54 }
 0xa84   : > { %v6258_v40 = vadd.f32 1e-05, %v6256_v63 }
 0xa85   : > { %v6255_v34 = vpop.xlane.xlu0 %6254 }
 0xa86   : > { %7666 = vrsqrt.f32 %v6258_v40  ;;  %v6257_v28 = vmul.f32 0.0078125, %v6255_v34 }
 0xa88   : > { %v6259_v58 = vadd.f32 1e-05, %v6257_v28 }
 0xa8a   : > { %7668 = vrsqrt.f32 %v6259_v58 }
 0xa90   : > { %v7667_v21 = vpop.eup %7666 }
 0xa91   : > { %v6262_v35 = vmul.f32 %v7667_v21, %v9507_v42 }
 0xa93   : > { %v6268_v0 = vmul.f32 %v6267_v9, %v6262_v35 }
 0xa94   : > { %v7669_v25 = vpop.eup %7668 }
 0xa95   : > { %v6263_v53 = vmul.f32 %v7669_v25, %v9510_v17  ;;  %v6274_v43 = vadd.f32 %v6273_v36, %v6268_v0 }
 0xa97   : > { %v6269_v27 = vmul.f32 %v6267_v9, %v6263_v53 }
 0xa99   : > { %v6275_v48 = vadd.f32 %v6273_v36, %v6269_v27 }
 0xa9b   : > { %v6276_v13 = vpack.c.bf16 %v6275_v48, %v6274_v43 }
 0xa9d   : > { %6418 = vmatmul.mubr.bf16.vlgmr.msra.gmra.mrb[44].mxu1 %v6276_v13 }
 0xb70   : > { %v6419_v16 = vpop.f32.mrb[44].mxu1 }
 0xb71   : > { %v6420_v52 = vadd.f32 %v6419_v16, %v6298_v2  ;;  %v6421_v24 = vpop.f32.mrb[45].mxu1 }
 0xb72   : > { %v6422_v42 = vadd.f32 %v6421_v24, %v6302_v12  ;;  %v6423_v33 = vpop.f32.mrb[46].mxu1 }
 0xb73   : > { %v6424_v17 = vadd.f32 %v6423_v33, %v6298_v2  ;;  %v6425_v10 = vpop.f32.mrb[47].mxu1  ;;  %v6428_v55 = vmax.f32 %v6420_v52, 0.0 }
 0xb74   : > { %v6426_v31 = vadd.f32 %v6425_v10, %v6302_v12  ;;  %v6429_v59 = vmax.f32 %v6422_v42, 0.0 }
 0xb75   : > { %v6430_v20 = vmax.f32 %v6424_v17, 0.0 }
 0xb76   : > { %v6431_v61 = vmax.f32 %v6426_v31, 0.0 }
 0xb77   : > { %v6432_v37 = vpack.c.bf16 %v6430_v20, %v6428_v55 }
 0xb78   : > { %v6433_v5 = vpack.c.bf16 %v6431_v61, %v6429_v59 }
 0xb7a   : > { %6598 = vmatprep.mubr.bf16.mxu0 %v6433_v5 }
 0xb7b   : > { %6599 = vmatmul.mubr.bf16.vlgmr.msra.gmra.mrb[32].mxu0 %v6432_v37 }
 0xc4e   : > { %v7124_v1 = vpop.f32.mrb[32].mxu0 }
 0xc4f   : > { %v7125_v46 = vpop.f32.mrb[33].mxu0 }
 0xc50   : > { %v7126_v7 = vadd.f32 %v7125_v46, %v7124_v1  ;;  %v7127_v45 = vpop.f32.mrb[34].mxu0 }
 0xc51   : > { %v7128_v51 = vpop.f32.mrb[35].mxu0 }
 0xc52   : > { %v6601_v30 = vadd.f32 %v7126_v7, %v6469_v62  ;;  %v7129_v14 = vadd.f32 %v7128_v51, %v7127_v45  ;;  %6614 = sbr.rel (%p7018_p10) target bundleno = 3161 (0xc59), region = 92 }
 0xc54   : > { %v6607_v19 = vadd.f32 %v6601_v30, %v9496_v29  ;;  %v6604_v18 = vadd.f32 %v7129_v14, %v6469_v62 }
 0xc56   : > { %6609 = vst [vmem:[#allocation2] sm:$0xff] %v6607_v19  ;;  %v6608_v49 = vadd.f32 %v6604_v18, %v9498_v15  ;;  %6615 = vst [vmem:[#allocation14 - $0x4] sm:$0xf0] (!%p7018_p10), %v6607_v19 }
 0xc58   : > { %6610 = vst [vmem:[#allocation2 + $0x8] sm:$0xff] %v6608_v49  ;;  %6616 = vst [vmem:[#allocation14] sm:$0xf0] (!%p7018_p10), %v6608_v49 }
 0xc59 PF: > { %p7374_p9 = scmp.eq.s32.totalorder %s8139_s18, 2  ;;  %s7959_s22 = smov [#allocation14]  }
 0xc5a   : > { %s6623_s29 = sshll.u32 %s7959_s22, 4  ;;  %s6624_s29 = int_to_ptr.vmem [resolvable:$true] %s6623_s29 }
 0xc5b   : > { %s7851_s13 = scalar_lea.vmem %s6624_s29, 128  ;;  %p7858_p13 = scmp.lt.s32.totalorder %s6624_s29, %s6624_s29 }
 0xc5c   : > { %p7852_p0 = scmp.ne.s32.totalorder %s6624_s29, %s7851_s13  ;;  %p7859_p4 = scmp.lt.s32.totalorder %s7851_s13, %s7851_s13 }
 0xc5e   : > { %p7853_p1 = pnand %p7852_p0, %p7374_p9  ;;  %p7860_p11 = por %p7859_p4, %p7858_p13 }
 0xc60   : > { %p7854_p12 = pneg %p7853_p1 }
 0xc62   : > { %p7861_p7 = pnand %p7860_p11, %p7854_p12 }
 0xc64   : > { %7864 = shalt.err (!%p7861_p7)
}
 0xc65   : > { %s9652_s21 = sld [smem:[#allocation28_spill]] }
 0xc6b   : > { %s7865_s26 = scalar_lea.hbm %s9652_s21, 128 }
 0xc6c   : > { %p7866_p3 = scmp.ne.s32.totalorder %s9652_s21, %s7865_s26  ;;  %p7871_p6 = scmp.lt.u32.totalorder %s7865_s26, %s9652_s21 }
 0xc6e   : > { %p7867_p5 = pnand %p7866_p3, %p7374_p9 }
 0xc70   : > { %p7868_p2 = pneg %p7867_p5 }
 0xc72   : > { %p7873_p8 = pnand %p7871_p6, %p7868_p2 }
 0xc74   : > { %7876 = shalt.err (!%p7873_p8)
}
 0xc75   : > { %s7960_s3 = smov 4  }
 0xc76   : > { %7348 = dma.vmem_to_hbm [thread:$0]  (%p7374_p9), %s6624_s29, 128, %s9652_s21, [#allocation5], %s7953_s20, %s7953_s20, %s7960_s3  }
 0xc77   : > { %7910 = dma.done.wait (%p7374_p9), [#allocation5], 128  }
 0xc78   : > { %7912 = vsyncadd (%p7374_p9), [#allocation5], 4294967168 }
 0xc79 PF: > { %s9653_s16 = sld [smem:[#allocation21_spill]]  ;;  %s9654_s19 = sld [smem:[#allocation20_spill]] }
 0xc7a   : > { %s9655_s15 = sld [smem:[#allocation22_spill]]  ;;  %s9656_s13 = smov %s7919_s14 }
 0xc7f   : > { %p28_p10 = scmp.ge.s32.totalorder %s9653_s16, 5   ;;  %s9657_s14 = smov %s9654_s19 }
 0xc81   :  { %30 = sbr.rel (!%p28_p10) target bundleno = 16 (0x10), region = 161 }
 0xc88   :  { %6639 = vsyncpa [#allocation4], 1 }
 0xc89   :  { %6641 = vsyncpa [#allocation4 + $0x1], 1 }
 0xc8a   :  { %6642 = vsyncpa [#allocation7], 1 }
 0xc8b   :  { %6644 = vsyncpa [#allocation7 + $0x1], 1 }
 0xc8c   :  { %6645 = vsyncpa [#allocation10], 1 }
 0xc8d   :  { %6647 = vsyncpa [#allocation10 + $0x1], 1 }
 0xc8e   :  { %6648 = vsyncpa [#allocation13], 1 }
 0xc8f   :  { %6650 = vsyncpa [#allocation13 + $0x1], 1 }
 0xc90   :  { %6651 = vsyncpa [#allocation5], 1 }
 0xc91   :  { %6653 = vsyncpa [#allocation5 + $0x1], 1 }

</bundles_post_ra>
